<compile_context>
chip_gen: v6e
topology: v6e:2x2x1
jax: 0.10.0
libtpu: 0.0.40
codegen_flags: <defaults>
</compile_context>

<pallas_src>
import functools

import numpy as np
import jax
import jax.numpy as jnp
from jax import lax
from jax.experimental import pallas as pl
from jax.experimental.pallas import tpu as pltpu


# ----------------------------------------------------------------------------
# Pallas kernel: one full decoder layer (self-attn + cross-attn + FFN + norms)
# for one (batch, query-tile) grid step.  K/V caches persist across q tiles.
# ----------------------------------------------------------------------------
def _decoder_layer_kernel(*refs, heads, q_tile, self_cond):
    if self_cond:
        (x_ref, aw_ref, ab_ref, w1_ref, b1_ref, w2_ref, b2_ref,
         g_ref, bt_ref, out_ref,
         k1_ref, v1_ref, k2_ref, v2_ref, qh_ref, cat_ref) = refs
        e_ref = None
    else:
        (x_ref, e_ref, aw_ref, ab_ref, w1_ref, b1_ref, w2_ref, b2_ref,
         g_ref, bt_ref, out_ref,
         k1_ref, v1_ref, k2_ref, v2_ref, qh_ref, cat_ref) = refs

    D = x_ref.shape[-1]
    dk = D // heads
    scale = 1.0 / float(np.sqrt(dk))
    qi = pl.program_id(1)

    # ---- Once per batch element (first query tile): project K/V for both
    # attentions into persistent head-major bf16 VMEM caches. ----------------
    @pl.when(qi == 0)
    def _():
        x_bf = x_ref[0].astype(jnp.bfloat16)                 # (S, D)
        e_bf = x_bf if self_cond else e_ref[0]                # e arrives bf16

        def project(src_bf, w_idx, cache_ref):
            kv = jnp.dot(src_bf, aw_ref[w_idx],
                         preferred_element_type=jnp.float32)
            kv = (kv + ab_ref[pl.ds(w_idx, 1), :]).astype(jnp.bfloat16)
            for h in range(heads):                            # head-major repack
                cache_ref[h] = kv[:, h * dk:(h + 1) * dk]

        project(x_bf, 1, k1_ref)      # self-attn K
        project(x_bf, 2, v1_ref)      # self-attn V
        project(e_bf, 5, k2_ref)      # cross-attn K
        project(e_bf, 6, v2_ref)      # cross-attn V

    # ---- Per query tile ----------------------------------------------------
    q0 = pl.multiple_of(qi * q_tile, q_tile)
    x_q = x_ref[0, pl.ds(q0, q_tile), :]                      # (tq, D) f32 residual
    x_q_bf = x_q.astype(jnp.bfloat16)

    # Hoist LayerNorm gamma/beta rows (3 norms) out of the calls.
    gs = [g_ref[pl.ds(i, 1), :] for i in range(3)]
    bs = [bt_ref[pl.ds(i, 1), :] for i in range(3)]

    def layer_norm(v, i):
        mu = jnp.mean(v, axis=-1, keepdims=True)
        var = jnp.mean(jnp.square(v - mu), axis=-1, keepdims=True)
        return (v - mu) * lax.rsqrt(var + 1e-5) * gs[i] + bs[i]

    def mha(q_in_bf, base, k_ref, v_ref):
        Wq = aw_ref[base + 0]                                 # (D, D) bf16
        Wo = aw_ref[base + 3]
        bq = ab_ref[pl.ds(base + 0, 1), :]                    # (1, D) f32
        bo = ab_ref[pl.ds(base + 3, 1), :]

        # Query projection for this tile only (fold 1/sqrt(dk) into q).
        q = jnp.dot(q_in_bf, Wq, preferred_element_type=jnp.float32) + bq
        q = (q * scale).astype(jnp.bfloat16)                  # (tq, D)
        for h in range(heads):                                # head-major staging
            qh_ref[h] = q[:, h * dk:(h + 1) * dk]

        qh = qh_ref[...]                                      # (H, tq, dk) bf16
        k = k_ref[...]                                        # (H, Skv, dk) bf16
        v = v_ref[...]                                        # (H, Skv, dk) bf16

        # Head-batched scores / softmax / PV.
        s = lax.dot_general(qh, k, (((2,), (2,)), ((0,), (0,))),
                            preferred_element_type=jnp.float32)   # (H,tq,Skv) f32
        s = s - jnp.max(s, axis=-1, keepdims=True)
        p = jnp.exp(s)
        p = p * pl.reciprocal(jnp.sum(p, axis=-1, keepdims=True), approx=True)
        o = lax.dot_general(p.astype(jnp.bfloat16), v,
                            (((2,), (1,)), ((0,), (0,))),
                            preferred_element_type=jnp.float32)   # (H, tq, dk)
        ob = o.astype(jnp.bfloat16)
        for h in range(heads):                                # bf16 concat scratch
            cat_ref[:, h * dk:(h + 1) * dk] = ob[h]
        return jnp.dot(cat_ref[...], Wo,
                       preferred_element_type=jnp.float32) + bo  # (tq, D) f32

    # Self-attention + residual + norm   (dropout_1 = identity in eval mode)
    a1 = mha(x_q_bf, 0, k1_ref, v1_ref)
    h1 = layer_norm(a1 + x_q, 0)
    # Cross-attention (encoder-decoder, or x itself when e_outputs is None)
    a2 = mha(h1.astype(jnp.bfloat16), 4, k2_ref, v2_ref)
    h2 = layer_norm(a2 + h1, 1)
    # Position-wise FFN + residual + norm (hidden cast to bf16 as produced)
    hid = jnp.maximum(
        jnp.dot(h2.astype(jnp.bfloat16), w1_ref[...],
                preferred_element_type=jnp.float32) + b1_ref[...],
        0.0).astype(jnp.bfloat16)
    f = jnp.dot(hid, w2_ref[...], preferred_element_type=jnp.float32) + b2_ref[...]
    out_ref[0] = layer_norm(f + h2, 2).astype(out_ref.dtype)


# ----------------------------------------------------------------------------
# Helpers
# ----------------------------------------------------------------------------
def _lane(n):
    return ((n + 127) // 128) * 128


def _tpu_vmem_capacity():
    try:
        return int(pltpu.get_tpu_info().vmem_capacity_bytes)
    except Exception:
        return 64 << 20        # conservative (v7x per-TensorCore VMEM)


def _pick_q_tile(S, vmem_cap):
    """Largest sublane-aligned query tile <= target that divides S."""
    target = 256 if vmem_cap <= (64 << 20) else 512
    if S <= target:
        return S
    t = (target // 8) * 8
    while t >= 8:
        if S % t == 0:
            return t
        t -= 8
    return S


def _vmem_limit_bytes(S, Se, D, F, tq, heads, cap, weight_bufs):
    bf16, f32 = 2, 4
    dk_l = _lane(max(D // heads, 1))
    # Resident bf16 weights (single- or double-buffered) + small f32 params.
    w = weight_bufs * bf16 * (8 * D * D + 2 * D * F)
    small = 2 * f32 * (8 * D + F + 2 * D + 6 * D)
    # Pipelined activation blocks: x (f32), e (bf16), out tile (f32).
    acts = 2 * f32 * S * D + 2 * bf16 * Se * D + 2 * f32 * tq * D
    # Persistent scratch: head-major K/V caches + q staging + concat.
    scr = bf16 * heads * dk_l * (2 * S + 2 * Se + tq) + bf16 * tq * _lane(D)
    # Transients: scores/probs, projections, FFN hidden.
    skv = max(S, Se)
    tmp = ((2 * f32 + bf16) * heads * tq * skv
           + f32 * (2 * skv * D + 3 * tq * D)
           + (f32 + bf16) * tq * F)
    est = int(1.25 * (w + small + acts + scr + tmp)) + (4 << 20)
    return int(max(min(est, int(cap * 0.85)), 16 << 20))


# ----------------------------------------------------------------------------
# Wrapper: one decoder layer via pallas_call (grid = batch x query tiles)
# ----------------------------------------------------------------------------
_SINGLE_BUFFER_WEIGHTS = True   # pl.Buffered(1) on constant-index weight specs


def decoder_layer_pallas(x, p, heads, e_bf16=None):
    global _SINGLE_BUFFER_WEIGHTS
    B, S, D = x.shape
    self_cond = e_bf16 is None
    Se = S if self_cond else e_bf16.shape[1]
    F = p["w1"].shape[1]
    dk = D // heads

    cap = _tpu_vmem_capacity()
    q_tile = _pick_q_tile(S, cap)
    nq = S // q_tile

    kernel = functools.partial(_decoder_layer_kernel, heads=heads,
                               q_tile=q_tile, self_cond=self_cond)

    def build(single_buffer):
        def wspec(shape):
            idx = lambda b, q: (0,) * len(shape)
            if single_buffer:
                # Constant block index -> single buffering halves residency.
                return pl.BlockSpec(shape, idx, pipeline_mode=pl.Buffered(1))
            return pl.BlockSpec(shape, idx)

        in_specs = [pl.BlockSpec((1, S, D), lambda b, q: (b, 0, 0))]  # x, per-b resident
        if not self_cond:
            in_specs.append(pl.BlockSpec((1, Se, D), lambda b, q: (b, 0, 0)))
        in_specs += [
            wspec((8, D, D)),   # attn weights (q,k,v,o) x 2 attentions, bf16
            wspec((8, D)),      # attn biases, f32
            wspec((D, F)),      # ffn W1, bf16
            wspec((1, F)),      # ffn b1
            wspec((F, D)),      # ffn W2, bf16
            wspec((1, D)),      # ffn b2
            wspec((3, D)),      # norm gammas
            wspec((3, D)),      # norm betas
        ]
        scratch = [
            pltpu.VMEM((heads, S, dk), jnp.bfloat16),       # self-attn K cache
            pltpu.VMEM((heads, S, dk), jnp.bfloat16),       # self-attn V cache
            pltpu.VMEM((heads, Se, dk), jnp.bfloat16),      # cross-attn K cache
            pltpu.VMEM((heads, Se, dk), jnp.bfloat16),      # cross-attn V cache
            pltpu.VMEM((heads, q_tile, dk), jnp.bfloat16),  # head-major q staging
            pltpu.VMEM((q_tile, D), jnp.bfloat16),          # head concat (bf16)
        ]
        return pl.pallas_call(
            kernel,
            out_shape=jax.ShapeDtypeStruct((B, S, D), x.dtype),
            grid=(B, nq),
            in_specs=in_specs,
            out_specs=pl.BlockSpec((1, q_tile, D), lambda b, q: (b, q, 0)),
            scratch_shapes=scratch,
            compiler_params=pltpu.CompilerParams(
                # b parallel (megacore shards batch), q arbitrary (K/V scratch
                # carries across query tiles).
                dimension_semantics=("parallel", "arbitrary"),
                vmem_limit_bytes=_vmem_limit_bytes(
                    S, Se, D, F, q_tile, heads, cap,
                    weight_bufs=1 if single_buffer else 2)),
        )

    args = [x] if self_cond else [x, e_bf16]
    args += [p["attn_w"], p["attn_b"], p["w1"], p["b1"], p["w2"], p["b2"],
             p["gamma"], p["beta"]]

    if _SINGLE_BUFFER_WEIGHTS:
        try:
            return build(True)(*args)
        except Exception:
            # pipeline_mode not supported by this JAX build -> default buffering.
            _SINGLE_BUFFER_WEIGHTS = False
    return build(False)(*args)


def decoder_forward(x, layer_params, heads, e_outputs=None):
    # Matches torch Decoder.forward: loop layers; if e_outputs is None each
    # layer uses its own input as the encoder output (no second DMA of x).
    # e_outputs is cast to bf16 once per forward (halves its per-layer DMA).
    e_bf16 = None if e_outputs is None else e_outputs.astype(jnp.bfloat16)
    for p in layer_params:
        x = decoder_layer_pallas(x, p, heads, e_bf16=e_bf16)
    return x


# ----------------------------------------------------------------------------
# Parameters: deterministic f32 init + ONE-TIME bf16 weight preparation
# ----------------------------------------------------------------------------
def init_layer_params(key, d_model, d_ff):
    ks = jax.random.split(key, 8)
    return {
        "attn_w": 0.05 * jax.random.normal(ks[0], (8, d_model, d_model), jnp.float32),
        "attn_b": 0.02 * jax.random.normal(ks[1], (8, d_model), jnp.float32),
        "w1": 0.05 * jax.random.normal(ks[2], (d_model, d_ff), jnp.float32),
        "b1": 0.02 * jax.random.normal(ks[3], (1, d_ff), jnp.float32),
        "w2": 0.05 * jax.random.normal(ks[4], (d_ff, d_model), jnp.float32),
        "b2": 0.02 * jax.random.normal(ks[5], (1, d_model), jnp.float32),
        "gamma": 1.0 + 0.02 * jax.random.normal(ks[6], (3, d_model), jnp.float32),
        "beta": 0.02 * jax.random.normal(ks[7], (3, d_model), jnp.float32),
    }


def prepare_layer_params(p):
    """One-time f32 -> bf16 conversion of matmul weights (done at setup, not
    on every forward call).  Biases / LayerNorm params stay f32."""
    q = dict(p)
    q["attn_w"] = p["attn_w"].astype(jnp.bfloat16)
    q["w1"] = p["w1"].astype(jnp.bfloat16)
    q["w2"] = p["w2"].astype(jnp.bfloat16)
    return q


# ----------------------------------------------------------------------------
# Pure-JAX f32 reference (same math) for correctness check
# ----------------------------------------------------------------------------
def _ref_layer(x, e, p, heads):
    def ln(v, g, b):
        mu = v.mean(-1, keepdims=True)
        var = ((v - mu) ** 2).mean(-1, keepdims=True)
        return (v - mu) / jnp.sqrt(var + 1e-5) * g + b

    def mha(qin, kvin, base):
        Wq, Wk, Wv, Wo = [p["attn_w"][base + i] for i in range(4)]
        bq, bk, bv, bo = [p["attn_b"][base + i] for i in range(4)]
        q = qin @ Wq + bq
        k = kvin @ Wk + bk
        v = kvin @ Wv + bv
        B, S, D = q.shape
        Se = k.shape[1]
        dk = D // heads
        q = q.reshape(B, S, heads, dk).transpose(0, 2, 1, 3)
        k = k.reshape(B, Se, heads, dk).transpose(0, 2, 1, 3)
        v = v.reshape(B, Se, heads, dk).transpose(0, 2, 1, 3)
        s = jnp.einsum("bhqd,bhkd->bhqk", q, k) / jnp.sqrt(jnp.float32(dk))
        pr = jax.nn.softmax(s, axis=-1)
        o = jnp.einsum("bhqk,bhkd->bhqd", pr, v)
        o = o.transpose(0, 2, 1, 3).reshape(B, S, D)
        return o @ Wo + bo

    a1 = mha(x, x, 0)
    h1 = ln(a1 + x, p["gamma"][0], p["beta"][0])
    a2 = mha(h1, e, 4)
    h2 = ln(a2 + h1, p["gamma"][1], p["beta"][1])
    f = jax.nn.relu(h2 @ p["w1"] + p["b1"][0]) @ p["w2"] + p["b2"][0]
    return ln(f + h2, p["gamma"][2], p["beta"][2])


def _ref_decoder(x, layer_params, heads, e_outputs=None):
    for p in layer_params:
        e = x if e_outputs is None else e_outputs
        x = _ref_layer(x, e, p, heads)
    return x


if __name__ == "__main__":
    # Small shapes consistent with the module
    B, S, d_model, heads, d_ff, num_layers = 2, 8, 32, 4, 64, 2

    key = jax.random.PRNGKey(0)
    kx, ke, *kls = jax.random.split(key, num_layers + 2)
    x = jax.random.normal(kx, (B, S, d_model), jnp.float32)
    layer_params_f32 = [init_layer_params(k, d_model, d_ff) for k in kls]
    layer_params = [prepare_layer_params(p) for p in layer_params_f32]  # one-time bf16

    # TODO(synk): dropout layers are identity (eval mode); src/trg masks default
    # to None (as in the reference forward) and are therefore not applied.

    # bf16 matmul operands + approx reciprocal -> tolerance loosened vs f32 ref.
    # 1) self-conditioning path (e_outputs=None): each layer uses its own input.
    out = jax.block_until_ready(decoder_forward(x, layer_params, heads, e_outputs=None))
    ref = jax.block_until_ready(_ref_decoder(x, layer_params_f32, heads, e_outputs=None))
    np.testing.assert_allclose(np.asarray(out), np.asarray(ref), rtol=2e-2, atol=2e-2)

    # 2) explicit encoder outputs (cross-attention path with Se != S).
    e_outputs = jax.random.normal(ke, (B, 16, d_model), jnp.float32)
    out2 = jax.block_until_ready(decoder_forward(x, layer_params, heads, e_outputs=e_outputs))
    ref2 = jax.block_until_ready(_ref_decoder(x, layer_params_f32, heads, e_outputs=e_outputs))
    np.testing.assert_allclose(np.asarray(out2), np.asarray(ref2), rtol=2e-2, atol=2e-2)

    print("KERNEL_OK")
</pallas_src>

<mosaic_0001>
module attributes {stable_mosaic.version = 11 : i64} {
  func.func @_decoder_layer_kernel(%arg0: i32, %arg1: i32, %arg2: memref<1x8x32xf32, #tpu.memory_space<vmem>>, %arg3: memref<8x32x32xbf16, #tpu.memory_space<vmem>>, %arg4: memref<8x32xf32, #tpu.memory_space<vmem>>, %arg5: memref<32x64xbf16, #tpu.memory_space<vmem>>, %arg6: memref<1x64xf32, #tpu.memory_space<vmem>>, %arg7: memref<64x32xbf16, #tpu.memory_space<vmem>>, %arg8: memref<1x32xf32, #tpu.memory_space<vmem>>, %arg9: memref<3x32xf32, #tpu.memory_space<vmem>>, %arg10: memref<3x32xf32, #tpu.memory_space<vmem>>, %arg11: memref<1x8x32xf32, #tpu.memory_space<vmem>>, %arg12: memref<4x8x8xbf16, #tpu.memory_space<vmem>>, %arg13: memref<4x8x8xbf16, #tpu.memory_space<vmem>>, %arg14: memref<4x8x8xbf16, #tpu.memory_space<vmem>>, %arg15: memref<4x8x8xbf16, #tpu.memory_space<vmem>>, %arg16: memref<4x8x8xbf16, #tpu.memory_space<vmem>>, %arg17: memref<8x32xbf16, #tpu.memory_space<vmem>>) attributes {dimension_semantics = [#tpu.dimension_semantics<parallel>, #tpu.dimension_semantics<arbitrary>], iteration_bounds = array<i64: 2, 1>, scalar_prefetch = 0 : i64, scratch_operands = 6 : i64, tpu.core_type = #tpu.core_type<tc>, window_params = [{transform_indices = @transform_0, window_bounds = array<i64: 1, 8, 32>}, {pipeline_mode = #tpu.pipeline_mode<synchronous>, transform_indices = @transform_1, window_bounds = array<i64: 8, 32, 32>}, {pipeline_mode = #tpu.pipeline_mode<synchronous>, transform_indices = @transform_2, window_bounds = array<i64: 8, 32>}, {pipeline_mode = #tpu.pipeline_mode<synchronous>, transform_indices = @transform_3, window_bounds = array<i64: 32, 64>}, {pipeline_mode = #tpu.pipeline_mode<synchronous>, transform_indices = @transform_4, window_bounds = array<i64: 1, 64>}, {pipeline_mode = #tpu.pipeline_mode<synchronous>, transform_indices = @transform_5, window_bounds = array<i64: 64, 32>}, {pipeline_mode = #tpu.pipeline_mode<synchronous>, transform_indices = @transform_6, window_bounds = array<i64: 1, 32>}, {pipeline_mode = #tpu.pipeline_mode<synchronous>, transform_indices = @transform_7, window_bounds = array<i64: 3, 32>}, {pipeline_mode = #tpu.pipeline_mode<synchronous>, transform_indices = @transform_8, window_bounds = array<i64: 3, 32>}, {transform_indices = @transform_9, window_bounds = array<i64: 1, 8, 32>}]} {
    %c0_i32 = arith.constant 0 : i32
    %0 = arith.cmpi eq, %arg1, %c0_i32 : i32
    %1 = arith.extui %0 : i1 to i32
    %c0_i32_0 = arith.constant 0 : i32
    %2 = arith.cmpi ne, %1, %c0_i32_0 : i32
    scf.if %2 {
      %c0_130 = arith.constant 0 : index
      %c0_131 = arith.constant 0 : index
      %c0_132 = arith.constant 0 : index
      %224 = vector.load %arg2[%c0_130, %c0_131, %c0_132] : memref<1x8x32xf32, #tpu.memory_space<vmem>>, vector<1x8x32xf32>
      %225 = vector.shape_cast %224 : vector<1x8x32xf32> to vector<8x32xf32>
      %226 = arith.truncf %225 : vector<8x32xf32> to vector<8x32xbf16>
      %c1_133 = arith.constant 1 : index
      %c0_134 = arith.constant 0 : index
      %c0_135 = arith.constant 0 : index
      %227 = vector.load %arg3[%c1_133, %c0_134, %c0_135] : memref<8x32x32xbf16, #tpu.memory_space<vmem>>, vector<1x32x32xbf16>
      %228 = vector.shape_cast %227 : vector<1x32x32xbf16> to vector<32x32xbf16>
      %cst_136 = arith.constant dense<0.000000e+00> : vector<8x32xf32>
      %229 = tpu.matmul %226, %228, %cst_136 {dimension_numbers = #tpu.dot_dimension_numbers<[1], [0], [0], [1], [0, 0, 1, 1], [], []>} : vector<8x32xbf16>, vector<32x32xbf16>, vector<8x32xf32> -> vector<8x32xf32>
      %c1_137 = arith.constant 1 : index
      %c0_138 = arith.constant 0 : index
      %230 = vector.load %arg4[%c1_137, %c0_138] : memref<8x32xf32, #tpu.memory_space<vmem>>, vector<1x32xf32>
      %231 = vector.broadcast %230 : vector<1x32xf32> to vector<8x32xf32>
      %232 = arith.addf %229, %231 : vector<8x32xf32>
      %233 = arith.truncf %232 : vector<8x32xf32> to vector<8x32xbf16>
      %234 = vector.extract_strided_slice %233 {offsets = [0, 0], sizes = [8, 8], strides = [1, 1]} : vector<8x32xbf16> to vector<8x8xbf16>
      %c0_139 = arith.constant 0 : index
      %c0_140 = arith.constant 0 : index
      %c0_141 = arith.constant 0 : index
      %235 = vector.load %arg12[%c0_139, %c0_140, %c0_141] : memref<4x8x8xbf16, #tpu.memory_space<vmem>>, vector<1x8x8xbf16>
      %236 = vector.shape_cast %235 : vector<1x8x8xbf16> to vector<8x8xbf16>
      %237 = vector.shape_cast %234 : vector<8x8xbf16> to vector<1x8x8xbf16>
      tpu.vector_store %arg12[%c0_139, %c0_140, %c0_141], %237 {strides = array<i32>} : memref<4x8x8xbf16, #tpu.memory_space<vmem>>, vector<1x8x8xbf16>,
      %238 = vector.extract_strided_slice %233 {offsets = [0, 8], sizes = [8, 8], strides = [1, 1]} : vector<8x32xbf16> to vector<8x8xbf16>
      %c1_142 = arith.constant 1 : index
      %c0_143 = arith.constant 0 : index
      %c0_144 = arith.constant 0 : index
      %239 = vector.load %arg12[%c1_142, %c0_143, %c0_144] : memref<4x8x8xbf16, #tpu.memory_space<vmem>>, vector<1x8x8xbf16>
      %240 = vector.shape_cast %239 : vector<1x8x8xbf16> to vector<8x8xbf16>
      %241 = vector.shape_cast %238 : vector<8x8xbf16> to vector<1x8x8xbf16>
      tpu.vector_store %arg12[%c1_142, %c0_143, %c0_144], %241 {strides = array<i32>} : memref<4x8x8xbf16, #tpu.memory_space<vmem>>, vector<1x8x8xbf16>,
      %242 = vector.extract_strided_slice %233 {offsets = [0, 16], sizes = [8, 8], strides = [1, 1]} : vector<8x32xbf16> to vector<8x8xbf16>
      %c2_145 = arith.constant 2 : index
      %c0_146 = arith.constant 0 : index
      %c0_147 = arith.constant 0 : index
      %243 = vector.load %arg12[%c2_145, %c0_146, %c0_147] : memref<4x8x8xbf16, #tpu.memory_space<vmem>>, vector<1x8x8xbf16>
      %244 = vector.shape_cast %243 : vector<1x8x8xbf16> to vector<8x8xbf16>
      %245 = vector.shape_cast %242 : vector<8x8xbf16> to vector<1x8x8xbf16>
      tpu.vector_store %arg12[%c2_145, %c0_146, %c0_147], %245 {strides = array<i32>} : memref<4x8x8xbf16, #tpu.memory_space<vmem>>, vector<1x8x8xbf16>,
      %246 = vector.extract_strided_slice %233 {offsets = [0, 24], sizes = [8, 8], strides = [1, 1]} : vector<8x32xbf16> to vector<8x8xbf16>
      %c3_148 = arith.constant 3 : index
      %c0_149 = arith.constant 0 : index
      %c0_150 = arith.constant 0 : index
      %247 = vector.load %arg12[%c3_148, %c0_149, %c0_150] : memref<4x8x8xbf16, #tpu.memory_space<vmem>>, vector<1x8x8xbf16>
      %248 = vector.shape_cast %247 : vector<1x8x8xbf16> to vector<8x8xbf16>
      %249 = vector.shape_cast %246 : vector<8x8xbf16> to vector<1x8x8xbf16>
      tpu.vector_store %arg12[%c3_148, %c0_149, %c0_150], %249 {strides = array<i32>} : memref<4x8x8xbf16, #tpu.memory_space<vmem>>, vector<1x8x8xbf16>,
      %c2_151 = arith.constant 2 : index
      %c0_152 = arith.constant 0 : index
      %c0_153 = arith.constant 0 : index
      %250 = vector.load %arg3[%c2_151, %c0_152, %c0_153] : memref<8x32x32xbf16, #tpu.memory_space<vmem>>, vector<1x32x32xbf16>
      %251 = vector.shape_cast %250 : vector<1x32x32xbf16> to vector<32x32xbf16>
      %cst_154 = arith.constant dense<0.000000e+00> : vector<8x32xf32>
      %252 = tpu.matmul %226, %251, %cst_154 {dimension_numbers = #tpu.dot_dimension_numbers<[1], [0], [0], [1], [0, 0, 1, 1], [], []>} : vector<8x32xbf16>, vector<32x32xbf16>, vector<8x32xf32> -> vector<8x32xf32>
      %c2_155 = arith.constant 2 : index
      %c0_156 = arith.constant 0 : index
      %253 = vector.load %arg4[%c2_155, %c0_156] : memref<8x32xf32, #tpu.memory_space<vmem>>, vector<1x32xf32>
      %254 = vector.broadcast %253 : vector<1x32xf32> to vector<8x32xf32>
      %255 = arith.addf %252, %254 : vector<8x32xf32>
      %256 = arith.truncf %255 : vector<8x32xf32> to vector<8x32xbf16>
      %257 = vector.extract_strided_slice %256 {offsets = [0, 0], sizes = [8, 8], strides = [1, 1]} : vector<8x32xbf16> to vector<8x8xbf16>
      %c0_157 = arith.constant 0 : index
      %c0_158 = arith.constant 0 : index
      %c0_159 = arith.constant 0 : index
      %258 = vector.load %arg13[%c0_157, %c0_158, %c0_159] : memref<4x8x8xbf16, #tpu.memory_space<vmem>>, vector<1x8x8xbf16>
      %259 = vector.shape_cast %258 : vector<1x8x8xbf16> to vector<8x8xbf16>
      %260 = vector.shape_cast %257 : vector<8x8xbf16> to vector<1x8x8xbf16>
      tpu.vector_store %arg13[%c0_157, %c0_158, %c0_159], %260 {strides = array<i32>} : memref<4x8x8xbf16, #tpu.memory_space<vmem>>, vector<1x8x8xbf16>,
      %261 = vector.extract_strided_slice %256 {offsets = [0, 8], sizes = [8, 8], strides = [1, 1]} : vector<8x32xbf16> to vector<8x8xbf16>
      %c1_160 = arith.constant 1 : index
      %c0_161 = arith.constant 0 : index
      %c0_162 = arith.constant 0 : index
      %262 = vector.load %arg13[%c1_160, %c0_161, %c0_162] : memref<4x8x8xbf16, #tpu.memory_space<vmem>>, vector<1x8x8xbf16>
      %263 = vector.shape_cast %262 : vector<1x8x8xbf16> to vector<8x8xbf16>
      %264 = vector.shape_cast %261 : vector<8x8xbf16> to vector<1x8x8xbf16>
      tpu.vector_store %arg13[%c1_160, %c0_161, %c0_162], %264 {strides = array<i32>} : memref<4x8x8xbf16, #tpu.memory_space<vmem>>, vector<1x8x8xbf16>,
      %265 = vector.extract_strided_slice %256 {offsets = [0, 16], sizes = [8, 8], strides = [1, 1]} : vector<8x32xbf16> to vector<8x8xbf16>
      %c2_163 = arith.constant 2 : index
      %c0_164 = arith.constant 0 : index
      %c0_165 = arith.constant 0 : index
      %266 = vector.load %arg13[%c2_163, %c0_164, %c0_165] : memref<4x8x8xbf16, #tpu.memory_space<vmem>>, vector<1x8x8xbf16>
      %267 = vector.shape_cast %266 : vector<1x8x8xbf16> to vector<8x8xbf16>
      %268 = vector.shape_cast %265 : vector<8x8xbf16> to vector<1x8x8xbf16>
      tpu.vector_store %arg13[%c2_163, %c0_164, %c0_165], %268 {strides = array<i32>} : memref<4x8x8xbf16, #tpu.memory_space<vmem>>, vector<1x8x8xbf16>,
      %269 = vector.extract_strided_slice %256 {offsets = [0, 24], sizes = [8, 8], strides = [1, 1]} : vector<8x32xbf16> to vector<8x8xbf16>
      %c3_166 = arith.constant 3 : index
      %c0_167 = arith.constant 0 : index
      %c0_168 = arith.constant 0 : index
      %270 = vector.load %arg13[%c3_166, %c0_167, %c0_168] : memref<4x8x8xbf16, #tpu.memory_space<vmem>>, vector<1x8x8xbf16>
      %271 = vector.shape_cast %270 : vector<1x8x8xbf16> to vector<8x8xbf16>
      %272 = vector.shape_cast %269 : vector<8x8xbf16> to vector<1x8x8xbf16>
      tpu.vector_store %arg13[%c3_166, %c0_167, %c0_168], %272 {strides = array<i32>} : memref<4x8x8xbf16, #tpu.memory_space<vmem>>, vector<1x8x8xbf16>,
      %c5 = arith.constant 5 : index
      %c0_169 = arith.constant 0 : index
      %c0_170 = arith.constant 0 : index
      %273 = vector.load %arg3[%c5, %c0_169, %c0_170] : memref<8x32x32xbf16, #tpu.memory_space<vmem>>, vector<1x32x32xbf16>
      %274 = vector.shape_cast %273 : vector<1x32x32xbf16> to vector<32x32xbf16>
      %cst_171 = arith.constant dense<0.000000e+00> : vector<8x32xf32>
      %275 = tpu.matmul %226, %274, %cst_171 {dimension_numbers = #tpu.dot_dimension_numbers<[1], [0], [0], [1], [0, 0, 1, 1], [], []>} : vector<8x32xbf16>, vector<32x32xbf16>, vector<8x32xf32> -> vector<8x32xf32>
      %c5_172 = arith.constant 5 : index
      %c0_173 = arith.constant 0 : index
      %276 = vector.load %arg4[%c5_172, %c0_173] : memref<8x32xf32, #tpu.memory_space<vmem>>, vector<1x32xf32>
      %277 = vector.broadcast %276 : vector<1x32xf32> to vector<8x32xf32>
      %278 = arith.addf %275, %277 : vector<8x32xf32>
      %279 = arith.truncf %278 : vector<8x32xf32> to vector<8x32xbf16>
      %280 = vector.extract_strided_slice %279 {offsets = [0, 0], sizes = [8, 8], strides = [1, 1]} : vector<8x32xbf16> to vector<8x8xbf16>
      %c0_174 = arith.constant 0 : index
      %c0_175 = arith.constant 0 : index
      %c0_176 = arith.constant 0 : index
      %281 = vector.load %arg14[%c0_174, %c0_175, %c0_176] : memref<4x8x8xbf16, #tpu.memory_space<vmem>>, vector<1x8x8xbf16>
      %282 = vector.shape_cast %281 : vector<1x8x8xbf16> to vector<8x8xbf16>
      %283 = vector.shape_cast %280 : vector<8x8xbf16> to vector<1x8x8xbf16>
      tpu.vector_store %arg14[%c0_174, %c0_175, %c0_176], %283 {strides = array<i32>} : memref<4x8x8xbf16, #tpu.memory_space<vmem>>, vector<1x8x8xbf16>,
      %284 = vector.extract_strided_slice %279 {offsets = [0, 8], sizes = [8, 8], strides = [1, 1]} : vector<8x32xbf16> to vector<8x8xbf16>
      %c1_177 = arith.constant 1 : index
      %c0_178 = arith.constant 0 : index
      %c0_179 = arith.constant 0 : index
      %285 = vector.load %arg14[%c1_177, %c0_178, %c0_179] : memref<4x8x8xbf16, #tpu.memory_space<vmem>>, vector<1x8x8xbf16>
      %286 = vector.shape_cast %285 : vector<1x8x8xbf16> to vector<8x8xbf16>
      %287 = vector.shape_cast %284 : vector<8x8xbf16> to vector<1x8x8xbf16>
      tpu.vector_store %arg14[%c1_177, %c0_178, %c0_179], %287 {strides = array<i32>} : memref<4x8x8xbf16, #tpu.memory_space<vmem>>, vector<1x8x8xbf16>,
      %288 = vector.extract_strided_slice %279 {offsets = [0, 16], sizes = [8, 8], strides = [1, 1]} : vector<8x32xbf16> to vector<8x8xbf16>
      %c2_180 = arith.constant 2 : index
      %c0_181 = arith.constant 0 : index
      %c0_182 = arith.constant 0 : index
      %289 = vector.load %arg14[%c2_180, %c0_181, %c0_182] : memref<4x8x8xbf16, #tpu.memory_space<vmem>>, vector<1x8x8xbf16>
      %290 = vector.shape_cast %289 : vector<1x8x8xbf16> to vector<8x8xbf16>
      %291 = vector.shape_cast %288 : vector<8x8xbf16> to vector<1x8x8xbf16>
      tpu.vector_store %arg14[%c2_180, %c0_181, %c0_182], %291 {strides = array<i32>} : memref<4x8x8xbf16, #tpu.memory_space<vmem>>, vector<1x8x8xbf16>,
      %292 = vector.extract_strided_slice %279 {offsets = [0, 24], sizes = [8, 8], strides = [1, 1]} : vector<8x32xbf16> to vector<8x8xbf16>
      %c3_183 = arith.constant 3 : index
      %c0_184 = arith.constant 0 : index
      %c0_185 = arith.constant 0 : index
      %293 = vector.load %arg14[%c3_183, %c0_184, %c0_185] : memref<4x8x8xbf16, #tpu.memory_space<vmem>>, vector<1x8x8xbf16>
      %294 = vector.shape_cast %293 : vector<1x8x8xbf16> to vector<8x8xbf16>
      %295 = vector.shape_cast %292 : vector<8x8xbf16> to vector<1x8x8xbf16>
      tpu.vector_store %arg14[%c3_183, %c0_184, %c0_185], %295 {strides = array<i32>} : memref<4x8x8xbf16, #tpu.memory_space<vmem>>, vector<1x8x8xbf16>,
      %c6 = arith.constant 6 : index
      %c0_186 = arith.constant 0 : index
      %c0_187 = arith.constant 0 : index
      %296 = vector.load %arg3[%c6, %c0_186, %c0_187] : memref<8x32x32xbf16, #tpu.memory_space<vmem>>, vector<1x32x32xbf16>
      %297 = vector.shape_cast %296 : vector<1x32x32xbf16> to vector<32x32xbf16>
      %cst_188 = arith.constant dense<0.000000e+00> : vector<8x32xf32>
      %298 = tpu.matmul %226, %297, %cst_188 {dimension_numbers = #tpu.dot_dimension_numbers<[1], [0], [0], [1], [0, 0, 1, 1], [], []>} : vector<8x32xbf16>, vector<32x32xbf16>, vector<8x32xf32> -> vector<8x32xf32>
      %c6_189 = arith.constant 6 : index
      %c0_190 = arith.constant 0 : index
      %299 = vector.load %arg4[%c6_189, %c0_190] : memref<8x32xf32, #tpu.memory_space<vmem>>, vector<1x32xf32>
      %300 = vector.broadcast %299 : vector<1x32xf32> to vector<8x32xf32>
      %301 = arith.addf %298, %300 : vector<8x32xf32>
      %302 = arith.truncf %301 : vector<8x32xf32> to vector<8x32xbf16>
      %303 = vector.extract_strided_slice %302 {offsets = [0, 0], sizes = [8, 8], strides = [1, 1]} : vector<8x32xbf16> to vector<8x8xbf16>
      %c0_191 = arith.constant 0 : index
      %c0_192 = arith.constant 0 : index
      %c0_193 = arith.constant 0 : index
      %304 = vector.load %arg15[%c0_191, %c0_192, %c0_193] : memref<4x8x8xbf16, #tpu.memory_space<vmem>>, vector<1x8x8xbf16>
      %305 = vector.shape_cast %304 : vector<1x8x8xbf16> to vector<8x8xbf16>
      %306 = vector.shape_cast %303 : vector<8x8xbf16> to vector<1x8x8xbf16>
      tpu.vector_store %arg15[%c0_191, %c0_192, %c0_193], %306 {strides = array<i32>} : memref<4x8x8xbf16, #tpu.memory_space<vmem>>, vector<1x8x8xbf16>,
      %307 = vector.extract_strided_slice %302 {offsets = [0, 8], sizes = [8, 8], strides = [1, 1]} : vector<8x32xbf16> to vector<8x8xbf16>
      %c1_194 = arith.constant 1 : index
      %c0_195 = arith.constant 0 : index
      %c0_196 = arith.constant 0 : index
      %308 = vector.load %arg15[%c1_194, %c0_195, %c0_196] : memref<4x8x8xbf16, #tpu.memory_space<vmem>>, vector<1x8x8xbf16>
      %309 = vector.shape_cast %308 : vector<1x8x8xbf16> to vector<8x8xbf16>
      %310 = vector.shape_cast %307 : vector<8x8xbf16> to vector<1x8x8xbf16>
      tpu.vector_store %arg15[%c1_194, %c0_195, %c0_196], %310 {strides = array<i32>} : memref<4x8x8xbf16, #tpu.memory_space<vmem>>, vector<1x8x8xbf16>,
      %311 = vector.extract_strided_slice %302 {offsets = [0, 16], sizes = [8, 8], strides = [1, 1]} : vector<8x32xbf16> to vector<8x8xbf16>
      %c2_197 = arith.constant 2 : index
      %c0_198 = arith.constant 0 : index
      %c0_199 = arith.constant 0 : index
      %312 = vector.load %arg15[%c2_197, %c0_198, %c0_199] : memref<4x8x8xbf16, #tpu.memory_space<vmem>>, vector<1x8x8xbf16>
      %313 = vector.shape_cast %312 : vector<1x8x8xbf16> to vector<8x8xbf16>
      %314 = vector.shape_cast %311 : vector<8x8xbf16> to vector<1x8x8xbf16>
      tpu.vector_store %arg15[%c2_197, %c0_198, %c0_199], %314 {strides = array<i32>} : memref<4x8x8xbf16, #tpu.memory_space<vmem>>, vector<1x8x8xbf16>,
      %315 = vector.extract_strided_slice %302 {offsets = [0, 24], sizes = [8, 8], strides = [1, 1]} : vector<8x32xbf16> to vector<8x8xbf16>
      %c3_200 = arith.constant 3 : index
      %c0_201 = arith.constant 0 : index
      %c0_202 = arith.constant 0 : index
      %316 = vector.load %arg15[%c3_200, %c0_201, %c0_202] : memref<4x8x8xbf16, #tpu.memory_space<vmem>>, vector<1x8x8xbf16>
      %317 = vector.shape_cast %316 : vector<1x8x8xbf16> to vector<8x8xbf16>
      %318 = vector.shape_cast %315 : vector<8x8xbf16> to vector<1x8x8xbf16>
      tpu.vector_store %arg15[%c3_200, %c0_201, %c0_202], %318 {strides = array<i32>} : memref<4x8x8xbf16, #tpu.memory_space<vmem>>, vector<1x8x8xbf16>,
    } else {
    }
    %c8_i32 = arith.constant 8 : i32
    %3 = arith.muli %arg1, %c8_i32 : i32
    %4 = tpu.assume_multiple %3, 8 : i32
    %c0 = arith.constant 0 : index
    %5 = arith.index_cast %4 : i32 to index
    %c0_1 = arith.constant 0 : index
    %6 = vector.load %arg2[%c0, %5, %c0_1] : memref<1x8x32xf32, #tpu.memory_space<vmem>>, vector<1x8x32xf32>
    %7 = vector.shape_cast %6 : vector<1x8x32xf32> to vector<8x32xf32>
    %8 = arith.truncf %7 : vector<8x32xf32> to vector<8x32xbf16>
    %c0_2 = arith.constant 0 : index
    %c0_3 = arith.constant 0 : index
    %9 = vector.load %arg9[%c0_2, %c0_3] : memref<3x32xf32, #tpu.memory_space<vmem>>, vector<1x32xf32>
    %c1 = arith.constant 1 : index
    %c0_4 = arith.constant 0 : index
    %10 = vector.load %arg9[%c1, %c0_4] : memref<3x32xf32, #tpu.memory_space<vmem>>, vector<1x32xf32>
    %c2 = arith.constant 2 : index
    %c0_5 = arith.constant 0 : index
    %11 = vector.load %arg9[%c2, %c0_5] : memref<3x32xf32, #tpu.memory_space<vmem>>, vector<1x32xf32>
    %c0_6 = arith.constant 0 : index
    %c0_7 = arith.constant 0 : index
    %12 = vector.load %arg10[%c0_6, %c0_7] : memref<3x32xf32, #tpu.memory_space<vmem>>, vector<1x32xf32>
    %c1_8 = arith.constant 1 : index
    %c0_9 = arith.constant 0 : index
    %13 = vector.load %arg10[%c1_8, %c0_9] : memref<3x32xf32, #tpu.memory_space<vmem>>, vector<1x32xf32>
    %c2_10 = arith.constant 2 : index
    %c0_11 = arith.constant 0 : index
    %14 = vector.load %arg10[%c2_10, %c0_11] : memref<3x32xf32, #tpu.memory_space<vmem>>, vector<1x32xf32>
    %c0_12 = arith.constant 0 : index
    %c0_13 = arith.constant 0 : index
    %c0_14 = arith.constant 0 : index
    %15 = vector.load %arg3[%c0_12, %c0_13, %c0_14] : memref<8x32x32xbf16, #tpu.memory_space<vmem>>, vector<1x32x32xbf16>
    %16 = vector.shape_cast %15 : vector<1x32x32xbf16> to vector<32x32xbf16>
    %c3 = arith.constant 3 : index
    %c0_15 = arith.constant 0 : index
    %c0_16 = arith.constant 0 : index
    %17 = vector.load %arg3[%c3, %c0_15, %c0_16] : memref<8x32x32xbf16, #tpu.memory_space<vmem>>, vector<1x32x32xbf16>
    %18 = vector.shape_cast %17 : vector<1x32x32xbf16> to vector<32x32xbf16>
    %c0_17 = arith.constant 0 : index
    %c0_18 = arith.constant 0 : index
    %19 = vector.load %arg4[%c0_17, %c0_18] : memref<8x32xf32, #tpu.memory_space<vmem>>, vector<1x32xf32>
    %c3_19 = arith.constant 3 : index
    %c0_20 = arith.constant 0 : index
    %20 = vector.load %arg4[%c3_19, %c0_20] : memref<8x32xf32, #tpu.memory_space<vmem>>, vector<1x32xf32>
    %cst = arith.constant dense<0.000000e+00> : vector<8x32xf32>
    %21 = tpu.matmul %8, %16, %cst {dimension_numbers = #tpu.dot_dimension_numbers<[1], [0], [0], [1], [0, 0, 1, 1], [], []>} : vector<8x32xbf16>, vector<32x32xbf16>, vector<8x32xf32> -> vector<8x32xf32>
    %22 = vector.broadcast %19 : vector<1x32xf32> to vector<8x32xf32>
    %23 = arith.addf %21, %22 : vector<8x32xf32>
    %cst_21 = arith.constant 0.353553385 : f32
    %24 = vector.broadcast %cst_21 : f32 to vector<8x32xf32>
    %25 = arith.mulf %23, %24 : vector<8x32xf32>
    %26 = arith.truncf %25 : vector<8x32xf32> to vector<8x32xbf16>
    %27 = vector.extract_strided_slice %26 {offsets = [0, 0], sizes = [8, 8], strides = [1, 1]} : vector<8x32xbf16> to vector<8x8xbf16>
    %c0_22 = arith.constant 0 : index
    %c0_23 = arith.constant 0 : index
    %c0_24 = arith.constant 0 : index
    %28 = vector.load %arg16[%c0_22, %c0_23, %c0_24] : memref<4x8x8xbf16, #tpu.memory_space<vmem>>, vector<1x8x8xbf16>
    %29 = vector.shape_cast %28 : vector<1x8x8xbf16> to vector<8x8xbf16>
    %30 = vector.shape_cast %27 : vector<8x8xbf16> to vector<1x8x8xbf16>
    tpu.vector_store %arg16[%c0_22, %c0_23, %c0_24], %30 {strides = array<i32>} : memref<4x8x8xbf16, #tpu.memory_space<vmem>>, vector<1x8x8xbf16>,
    %31 = vector.extract_strided_slice %26 {offsets = [0, 8], sizes = [8, 8], strides = [1, 1]} : vector<8x32xbf16> to vector<8x8xbf16>
    %c1_25 = arith.constant 1 : index
    %c0_26 = arith.constant 0 : index
    %c0_27 = arith.constant 0 : index
    %32 = vector.load %arg16[%c1_25, %c0_26, %c0_27] : memref<4x8x8xbf16, #tpu.memory_space<vmem>>, vector<1x8x8xbf16>
    %33 = vector.shape_cast %32 : vector<1x8x8xbf16> to vector<8x8xbf16>
    %34 = vector.shape_cast %31 : vector<8x8xbf16> to vector<1x8x8xbf16>
    tpu.vector_store %arg16[%c1_25, %c0_26, %c0_27], %34 {strides = array<i32>} : memref<4x8x8xbf16, #tpu.memory_space<vmem>>, vector<1x8x8xbf16>,
    %35 = vector.extract_strided_slice %26 {offsets = [0, 16], sizes = [8, 8], strides = [1, 1]} : vector<8x32xbf16> to vector<8x8xbf16>
    %c2_28 = arith.constant 2 : index
    %c0_29 = arith.constant 0 : index
    %c0_30 = arith.constant 0 : index
    %36 = vector.load %arg16[%c2_28, %c0_29, %c0_30] : memref<4x8x8xbf16, #tpu.memory_space<vmem>>, vector<1x8x8xbf16>
    %37 = vector.shape_cast %36 : vector<1x8x8xbf16> to vector<8x8xbf16>
    %38 = vector.shape_cast %35 : vector<8x8xbf16> to vector<1x8x8xbf16>
    tpu.vector_store %arg16[%c2_28, %c0_29, %c0_30], %38 {strides = array<i32>} : memref<4x8x8xbf16, #tpu.memory_space<vmem>>, vector<1x8x8xbf16>,
    %39 = vector.extract_strided_slice %26 {offsets = [0, 24], sizes = [8, 8], strides = [1, 1]} : vector<8x32xbf16> to vector<8x8xbf16>
    %c3_31 = arith.constant 3 : index
    %c0_32 = arith.constant 0 : index
    %c0_33 = arith.constant 0 : index
    %40 = vector.load %arg16[%c3_31, %c0_32, %c0_33] : memref<4x8x8xbf16, #tpu.memory_space<vmem>>, vector<1x8x8xbf16>
    %41 = vector.shape_cast %40 : vector<1x8x8xbf16> to vector<8x8xbf16>
    %42 = vector.shape_cast %39 : vector<8x8xbf16> to vector<1x8x8xbf16>
    tpu.vector_store %arg16[%c3_31, %c0_32, %c0_33], %42 {strides = array<i32>} : memref<4x8x8xbf16, #tpu.memory_space<vmem>>, vector<1x8x8xbf16>,
    %c0_34 = arith.constant 0 : index
    %c0_35 = arith.constant 0 : index
    %c0_36 = arith.constant 0 : index
    %43 = vector.load %arg16[%c0_34, %c0_35, %c0_36] : memref<4x8x8xbf16, #tpu.memory_space<vmem>>, vector<4x8x8xbf16>
    %c0_37 = arith.constant 0 : index
    %c0_38 = arith.constant 0 : index
    %c0_39 = arith.constant 0 : index
    %44 = vector.load %arg12[%c0_37, %c0_38, %c0_39] : memref<4x8x8xbf16, #tpu.memory_space<vmem>>, vector<4x8x8xbf16>
    %c0_40 = arith.constant 0 : index
    %c0_41 = arith.constant 0 : index
    %c0_42 = arith.constant 0 : index
    %45 = vector.load %arg13[%c0_40, %c0_41, %c0_42] : memref<4x8x8xbf16, #tpu.memory_space<vmem>>, vector<4x8x8xbf16>
    %cst_43 = arith.constant dense<0.000000e+00> : vector<4x8x8xf32>
    %46 = tpu.matmul %43, %44, %cst_43 {dimension_numbers = #tpu.dot_dimension_numbers<[2], [2], [1], [1], [0, 0, 0, 1, 1, 1], [0], [0]>} : vector<4x8x8xbf16>, vector<4x8x8xbf16>, vector<4x8x8xf32> -> vector<4x8x8xf32>
    %cst_44 = arith.constant dense<0xFF800000> : vector<4x8xf32>
    %47 = vector.multi_reduction <maximumf>, %46, %cst_44 [2] : vector<4x8x8xf32> to vector<4x8xf32>
    %48 = vector.shape_cast %47 : vector<4x8xf32> to vector<4x8x1xf32>
    %49 = vector.broadcast %48 : vector<4x8x1xf32> to vector<4x8x8xf32>
    %50 = arith.subf %46, %49 : vector<4x8x8xf32>
    %51 = math.exp %50 : vector<4x8x8xf32>
    %cst_45 = arith.constant dense<0.000000e+00> : vector<4x8xf32>
    %52 = vector.multi_reduction <add>, %51, %cst_45 [2] : vector<4x8x8xf32> to vector<4x8xf32>
    %53 = vector.shape_cast %52 : vector<4x8xf32> to vector<4x8x1xf32>
    %54 = tpu.reciprocal %53 {approx = true} : vector<4x8x1xf32> -> vector<4x8x1xf32>
    %55 = vector.broadcast %54 : vector<4x8x1xf32> to vector<4x8x8xf32>
    %56 = arith.mulf %51, %55 : vector<4x8x8xf32>
    %57 = arith.truncf %56 : vector<4x8x8xf32> to vector<4x8x8xbf16>
    %cst_46 = arith.constant dense<0.000000e+00> : vector<4x8x8xf32>
    %58 = tpu.matmul %57, %45, %cst_46 {dimension_numbers = #tpu.dot_dimension_numbers<[2], [1], [1], [2], [0, 0, 0, 1, 1, 2], [0], [0]>} : vector<4x8x8xbf16>, vector<4x8x8xbf16>, vector<4x8x8xf32> -> vector<4x8x8xf32>
    %59 = arith.truncf %58 : vector<4x8x8xf32> to vector<4x8x8xbf16>
    %60 = vector.extract_strided_slice %59 {offsets = [0, 0, 0], sizes = [1, 8, 8], strides = [1, 1, 1]} : vector<4x8x8xbf16> to vector<1x8x8xbf16>
    %61 = vector.shape_cast %60 : vector<1x8x8xbf16> to vector<8x8xbf16>
    %c0_47 = arith.constant 0 : index
    %c0_48 = arith.constant 0 : index
    %62 = vector.load %arg17[%c0_47, %c0_48] : memref<8x32xbf16, #tpu.memory_space<vmem>>, vector<8x8xbf16>
    tpu.vector_store %arg17[%c0_47, %c0_48], %61 {strides = array<i32>} : memref<8x32xbf16, #tpu.memory_space<vmem>>, vector<8x8xbf16>,
    %63 = vector.extract_strided_slice %59 {offsets = [1, 0, 0], sizes = [1, 8, 8], strides = [1, 1, 1]} : vector<4x8x8xbf16> to vector<1x8x8xbf16>
    %64 = vector.shape_cast %63 : vector<1x8x8xbf16> to vector<8x8xbf16>
    %c0_49 = arith.constant 0 : index
    %c8 = arith.constant 8 : index
    %65 = vector.load %arg17[%c0_49, %c8] : memref<8x32xbf16, #tpu.memory_space<vmem>>, vector<8x8xbf16>
    tpu.vector_store %arg17[%c0_49, %c8], %64 {strides = array<i32>} : memref<8x32xbf16, #tpu.memory_space<vmem>>, vector<8x8xbf16>,
    %66 = vector.extract_strided_slice %59 {offsets = [2, 0, 0], sizes = [1, 8, 8], strides = [1, 1, 1]} : vector<4x8x8xbf16> to vector<1x8x8xbf16>
    %67 = vector.shape_cast %66 : vector<1x8x8xbf16> to vector<8x8xbf16>
    %c0_50 = arith.constant 0 : index
    %c16 = arith.constant 16 : index
    %68 = vector.load %arg17[%c0_50, %c16] : memref<8x32xbf16, #tpu.memory_space<vmem>>, vector<8x8xbf16>
    tpu.vector_store %arg17[%c0_50, %c16], %67 {strides = array<i32>} : memref<8x32xbf16, #tpu.memory_space<vmem>>, vector<8x8xbf16>,
    %69 = vector.extract_strided_slice %59 {offsets = [3, 0, 0], sizes = [1, 8, 8], strides = [1, 1, 1]} : vector<4x8x8xbf16> to vector<1x8x8xbf16>
    %70 = vector.shape_cast %69 : vector<1x8x8xbf16> to vector<8x8xbf16>
    %c0_51 = arith.constant 0 : index
    %c24 = arith.constant 24 : index
    %71 = vector.load %arg17[%c0_51, %c24] : memref<8x32xbf16, #tpu.memory_space<vmem>>, vector<8x8xbf16>
    tpu.vector_store %arg17[%c0_51, %c24], %70 {strides = array<i32>} : memref<8x32xbf16, #tpu.memory_space<vmem>>, vector<8x8xbf16>,
    %c0_52 = arith.constant 0 : index
    %c0_53 = arith.constant 0 : index
    %72 = vector.load %arg17[%c0_52, %c0_53] : memref<8x32xbf16, #tpu.memory_space<vmem>>, vector<8x32xbf16>
    %cst_54 = arith.constant dense<0.000000e+00> : vector<8x32xf32>
    %73 = tpu.matmul %72, %18, %cst_54 {dimension_numbers = #tpu.dot_dimension_numbers<[1], [0], [0], [1], [0, 0, 1, 1], [], []>} : vector<8x32xbf16>, vector<32x32xbf16>, vector<8x32xf32> -> vector<8x32xf32>
    %74 = vector.broadcast %20 : vector<1x32xf32> to vector<8x32xf32>
    %75 = arith.addf %73, %74 : vector<8x32xf32>
    %76 = arith.addf %75, %7 : vector<8x32xf32>
    %cst_55 = arith.constant dense<0.000000e+00> : vector<8xf32>
    %77 = vector.multi_reduction <add>, %76, %cst_55 [1] : vector<8x32xf32> to vector<8xf32>
    %78 = vector.shape_cast %77 : vector<8xf32> to vector<8x1xf32>
    %cst_56 = arith.constant 3.200000e+01 : f32
    %79 = vector.broadcast %cst_56 : f32 to vector<8x1xf32>
    %80 = arith.divf %78, %79 : vector<8x1xf32>
    %81 = vector.broadcast %80 : vector<8x1xf32> to vector<8x32xf32>
    %82 = arith.subf %76, %81 : vector<8x32xf32>
    %83 = arith.mulf %82, %82 : vector<8x32xf32>
    %cst_57 = arith.constant dense<0.000000e+00> : vector<8xf32>
    %84 = vector.multi_reduction <add>, %83, %cst_57 [1] : vector<8x32xf32> to vector<8xf32>
    %85 = vector.shape_cast %84 : vector<8xf32> to vector<8x1xf32>
    %cst_58 = arith.constant 3.200000e+01 : f32
    %86 = vector.broadcast %cst_58 : f32 to vector<8x1xf32>
    %87 = arith.divf %85, %86 : vector<8x1xf32>
    %88 = vector.broadcast %80 : vector<8x1xf32> to vector<8x32xf32>
    %89 = arith.subf %76, %88 : vector<8x32xf32>
    %cst_59 = arith.constant 9.99999974E-6 : f32
    %90 = vector.broadcast %cst_59 : f32 to vector<8x1xf32>
    %91 = arith.addf %87, %90 : vector<8x1xf32>
    %92 = math.rsqrt %91 : vector<8x1xf32>
    %93 = vector.broadcast %92 : vector<8x1xf32> to vector<8x32xf32>
    %94 = arith.mulf %89, %93 : vector<8x32xf32>
    %95 = vector.broadcast %9 : vector<1x32xf32> to vector<8x32xf32>
    %96 = arith.mulf %94, %95 : vector<8x32xf32>
    %97 = vector.broadcast %12 : vector<1x32xf32> to vector<8x32xf32>
    %98 = arith.addf %96, %97 : vector<8x32xf32>
    %99 = arith.truncf %98 : vector<8x32xf32> to vector<8x32xbf16>
    %c4 = arith.constant 4 : index
    %c0_60 = arith.constant 0 : index
    %c0_61 = arith.constant 0 : index
    %100 = vector.load %arg3[%c4, %c0_60, %c0_61] : memref<8x32x32xbf16, #tpu.memory_space<vmem>>, vector<1x32x32xbf16>
    %101 = vector.shape_cast %100 : vector<1x32x32xbf16> to vector<32x32xbf16>
    %c7 = arith.constant 7 : index
    %c0_62 = arith.constant 0 : index
    %c0_63 = arith.constant 0 : index
    %102 = vector.load %arg3[%c7, %c0_62, %c0_63] : memref<8x32x32xbf16, #tpu.memory_space<vmem>>, vector<1x32x32xbf16>
    %103 = vector.shape_cast %102 : vector<1x32x32xbf16> to vector<32x32xbf16>
    %c4_64 = arith.constant 4 : index
    %c0_65 = arith.constant 0 : index
    %104 = vector.load %arg4[%c4_64, %c0_65] : memref<8x32xf32, #tpu.memory_space<vmem>>, vector<1x32xf32>
    %c7_66 = arith.constant 7 : index
    %c0_67 = arith.constant 0 : index
    %105 = vector.load %arg4[%c7_66, %c0_67] : memref<8x32xf32, #tpu.memory_space<vmem>>, vector<1x32xf32>
    %cst_68 = arith.constant dense<0.000000e+00> : vector<8x32xf32>
    %106 = tpu.matmul %99, %101, %cst_68 {dimension_numbers = #tpu.dot_dimension_numbers<[1], [0], [0], [1], [0, 0, 1, 1], [], []>} : vector<8x32xbf16>, vector<32x32xbf16>, vector<8x32xf32> -> vector<8x32xf32>
    %107 = vector.broadcast %104 : vector<1x32xf32> to vector<8x32xf32>
    %108 = arith.addf %106, %107 : vector<8x32xf32>
    %cst_69 = arith.constant 0.353553385 : f32
    %109 = vector.broadcast %cst_69 : f32 to vector<8x32xf32>
    %110 = arith.mulf %108, %109 : vector<8x32xf32>
    %111 = arith.truncf %110 : vector<8x32xf32> to vector<8x32xbf16>
    %112 = vector.extract_strided_slice %111 {offsets = [0, 0], sizes = [8, 8], strides = [1, 1]} : vector<8x32xbf16> to vector<8x8xbf16>
    %c0_70 = arith.constant 0 : index
    %c0_71 = arith.constant 0 : index
    %c0_72 = arith.constant 0 : index
    %113 = vector.load %arg16[%c0_70, %c0_71, %c0_72] : memref<4x8x8xbf16, #tpu.memory_space<vmem>>, vector<1x8x8xbf16>
    %114 = vector.shape_cast %113 : vector<1x8x8xbf16> to vector<8x8xbf16>
    %115 = vector.shape_cast %112 : vector<8x8xbf16> to vector<1x8x8xbf16>
    tpu.vector_store %arg16[%c0_70, %c0_71, %c0_72], %115 {strides = array<i32>} : memref<4x8x8xbf16, #tpu.memory_space<vmem>>, vector<1x8x8xbf16>,
    %116 = vector.extract_strided_slice %111 {offsets = [0, 8], sizes = [8, 8], strides = [1, 1]} : vector<8x32xbf16> to vector<8x8xbf16>
    %c1_73 = arith.constant 1 : index
    %c0_74 = arith.constant 0 : index
    %c0_75 = arith.constant 0 : index
    %117 = vector.load %arg16[%c1_73, %c0_74, %c0_75] : memref<4x8x8xbf16, #tpu.memory_space<vmem>>, vector<1x8x8xbf16>
    %118 = vector.shape_cast %117 : vector<1x8x8xbf16> to vector<8x8xbf16>
    %119 = vector.shape_cast %116 : vector<8x8xbf16> to vector<1x8x8xbf16>
    tpu.vector_store %arg16[%c1_73, %c0_74, %c0_75], %119 {strides = array<i32>} : memref<4x8x8xbf16, #tpu.memory_space<vmem>>, vector<1x8x8xbf16>,
    %120 = vector.extract_strided_slice %111 {offsets = [0, 16], sizes = [8, 8], strides = [1, 1]} : vector<8x32xbf16> to vector<8x8xbf16>
    %c2_76 = arith.constant 2 : index
    %c0_77 = arith.constant 0 : index
    %c0_78 = arith.constant 0 : index
    %121 = vector.load %arg16[%c2_76, %c0_77, %c0_78] : memref<4x8x8xbf16, #tpu.memory_space<vmem>>, vector<1x8x8xbf16>
    %122 = vector.shape_cast %121 : vector<1x8x8xbf16> to vector<8x8xbf16>
    %123 = vector.shape_cast %120 : vector<8x8xbf16> to vector<1x8x8xbf16>
    tpu.vector_store %arg16[%c2_76, %c0_77, %c0_78], %123 {strides = array<i32>} : memref<4x8x8xbf16, #tpu.memory_space<vmem>>, vector<1x8x8xbf16>,
    %124 = vector.extract_strided_slice %111 {offsets = [0, 24], sizes = [8, 8], strides = [1, 1]} : vector<8x32xbf16> to vector<8x8xbf16>
    %c3_79 = arith.constant 3 : index
    %c0_80 = arith.constant 0 : index
    %c0_81 = arith.constant 0 : index
    %125 = vector.load %arg16[%c3_79, %c0_80, %c0_81] : memref<4x8x8xbf16, #tpu.memory_space<vmem>>, vector<1x8x8xbf16>
    %126 = vector.shape_cast %125 : vector<1x8x8xbf16> to vector<8x8xbf16>
    %127 = vector.shape_cast %124 : vector<8x8xbf16> to vector<1x8x8xbf16>
    tpu.vector_store %arg16[%c3_79, %c0_80, %c0_81], %127 {strides = array<i32>} : memref<4x8x8xbf16, #tpu.memory_space<vmem>>, vector<1x8x8xbf16>,
    %c0_82 = arith.constant 0 : index
    %c0_83 = arith.constant 0 : index
    %c0_84 = arith.constant 0 : index
    %128 = vector.load %arg16[%c0_82, %c0_83, %c0_84] : memref<4x8x8xbf16, #tpu.memory_space<vmem>>, vector<4x8x8xbf16>
    %c0_85 = arith.constant 0 : index
    %c0_86 = arith.constant 0 : index
    %c0_87 = arith.constant 0 : index
    %129 = vector.load %arg14[%c0_85, %c0_86, %c0_87] : memref<4x8x8xbf16, #tpu.memory_space<vmem>>, vector<4x8x8xbf16>
    %c0_88 = arith.constant 0 : index
    %c0_89 = arith.constant 0 : index
    %c0_90 = arith.constant 0 : index
    %130 = vector.load %arg15[%c0_88, %c0_89, %c0_90] : memref<4x8x8xbf16, #tpu.memory_space<vmem>>, vector<4x8x8xbf16>
    %cst_91 = arith.constant dense<0.000000e+00> : vector<4x8x8xf32>
    %131 = tpu.matmul %128, %129, %cst_91 {dimension_numbers = #tpu.dot_dimension_numbers<[2], [2], [1], [1], [0, 0, 0, 1, 1, 1], [0], [0]>} : vector<4x8x8xbf16>, vector<4x8x8xbf16>, vector<4x8x8xf32> -> vector<4x8x8xf32>
    %cst_92 = arith.constant dense<0xFF800000> : vector<4x8xf32>
    %132 = vector.multi_reduction <maximumf>, %131, %cst_92 [2] : vector<4x8x8xf32> to vector<4x8xf32>
    %133 = vector.shape_cast %132 : vector<4x8xf32> to vector<4x8x1xf32>
    %134 = vector.broadcast %133 : vector<4x8x1xf32> to vector<4x8x8xf32>
    %135 = arith.subf %131, %134 : vector<4x8x8xf32>
    %136 = math.exp %135 : vector<4x8x8xf32>
    %cst_93 = arith.constant dense<0.000000e+00> : vector<4x8xf32>
    %137 = vector.multi_reduction <add>, %136, %cst_93 [2] : vector<4x8x8xf32> to vector<4x8xf32>
    %138 = vector.shape_cast %137 : vector<4x8xf32> to vector<4x8x1xf32>
    %139 = tpu.reciprocal %138 {approx = true} : vector<4x8x1xf32> -> vector<4x8x1xf32>
    %140 = vector.broadcast %139 : vector<4x8x1xf32> to vector<4x8x8xf32>
    %141 = arith.mulf %136, %140 : vector<4x8x8xf32>
    %142 = arith.truncf %141 : vector<4x8x8xf32> to vector<4x8x8xbf16>
    %cst_94 = arith.constant dense<0.000000e+00> : vector<4x8x8xf32>
    %143 = tpu.matmul %142, %130, %cst_94 {dimension_numbers = #tpu.dot_dimension_numbers<[2], [1], [1], [2], [0, 0, 0, 1, 1, 2], [0], [0]>} : vector<4x8x8xbf16>, vector<4x8x8xbf16>, vector<4x8x8xf32> -> vector<4x8x8xf32>
    %144 = arith.truncf %143 : vector<4x8x8xf32> to vector<4x8x8xbf16>
    %145 = vector.extract_strided_slice %144 {offsets = [0, 0, 0], sizes = [1, 8, 8], strides = [1, 1, 1]} : vector<4x8x8xbf16> to vector<1x8x8xbf16>
    %146 = vector.shape_cast %145 : vector<1x8x8xbf16> to vector<8x8xbf16>
    %c0_95 = arith.constant 0 : index
    %c0_96 = arith.constant 0 : index
    %147 = vector.load %arg17[%c0_95, %c0_96] : memref<8x32xbf16, #tpu.memory_space<vmem>>, vector<8x8xbf16>
    tpu.vector_store %arg17[%c0_95, %c0_96], %146 {strides = array<i32>} : memref<8x32xbf16, #tpu.memory_space<vmem>>, vector<8x8xbf16>,
    %148 = vector.extract_strided_slice %144 {offsets = [1, 0, 0], sizes = [1, 8, 8], strides = [1, 1, 1]} : vector<4x8x8xbf16> to vector<1x8x8xbf16>
    %149 = vector.shape_cast %148 : vector<1x8x8xbf16> to vector<8x8xbf16>
    %c0_97 = arith.constant 0 : index
    %c8_98 = arith.constant 8 : index
    %150 = vector.load %arg17[%c0_97, %c8_98] : memref<8x32xbf16, #tpu.memory_space<vmem>>, vector<8x8xbf16>
    tpu.vector_store %arg17[%c0_97, %c8_98], %149 {strides = array<i32>} : memref<8x32xbf16, #tpu.memory_space<vmem>>, vector<8x8xbf16>,
    %151 = vector.extract_strided_slice %144 {offsets = [2, 0, 0], sizes = [1, 8, 8], strides = [1, 1, 1]} : vector<4x8x8xbf16> to vector<1x8x8xbf16>
    %152 = vector.shape_cast %151 : vector<1x8x8xbf16> to vector<8x8xbf16>
    %c0_99 = arith.constant 0 : index
    %c16_100 = arith.constant 16 : index
    %153 = vector.load %arg17[%c0_99, %c16_100] : memref<8x32xbf16, #tpu.memory_space<vmem>>, vector<8x8xbf16>
    tpu.vector_store %arg17[%c0_99, %c16_100], %152 {strides = array<i32>} : memref<8x32xbf16, #tpu.memory_space<vmem>>, vector<8x8xbf16>,
    %154 = vector.extract_strided_slice %144 {offsets = [3, 0, 0], sizes = [1, 8, 8], strides = [1, 1, 1]} : vector<4x8x8xbf16> to vector<1x8x8xbf16>
    %155 = vector.shape_cast %154 : vector<1x8x8xbf16> to vector<8x8xbf16>
    %c0_101 = arith.constant 0 : index
    %c24_102 = arith.constant 24 : index
    %156 = vector.load %arg17[%c0_101, %c24_102] : memref<8x32xbf16, #tpu.memory_space<vmem>>, vector<8x8xbf16>
    tpu.vector_store %arg17[%c0_101, %c24_102], %155 {strides = array<i32>} : memref<8x32xbf16, #tpu.memory_space<vmem>>, vector<8x8xbf16>,
    %c0_103 = arith.constant 0 : index
    %c0_104 = arith.constant 0 : index
    %157 = vector.load %arg17[%c0_103, %c0_104] : memref<8x32xbf16, #tpu.memory_space<vmem>>, vector<8x32xbf16>
    %cst_105 = arith.constant dense<0.000000e+00> : vector<8x32xf32>
    %158 = tpu.matmul %157, %103, %cst_105 {dimension_numbers = #tpu.dot_dimension_numbers<[1], [0], [0], [1], [0, 0, 1, 1], [], []>} : vector<8x32xbf16>, vector<32x32xbf16>, vector<8x32xf32> -> vector<8x32xf32>
    %159 = vector.broadcast %105 : vector<1x32xf32> to vector<8x32xf32>
    %160 = arith.addf %158, %159 : vector<8x32xf32>
    %161 = arith.addf %160, %98 : vector<8x32xf32>
    %cst_106 = arith.constant dense<0.000000e+00> : vector<8xf32>
    %162 = vector.multi_reduction <add>, %161, %cst_106 [1] : vector<8x32xf32> to vector<8xf32>
    %163 = vector.shape_cast %162 : vector<8xf32> to vector<8x1xf32>
    %cst_107 = arith.constant 3.200000e+01 : f32
    %164 = vector.broadcast %cst_107 : f32 to vector<8x1xf32>
    %165 = arith.divf %163, %164 : vector<8x1xf32>
    %166 = vector.broadcast %165 : vector<8x1xf32> to vector<8x32xf32>
    %167 = arith.subf %161, %166 : vector<8x32xf32>
    %168 = arith.mulf %167, %167 : vector<8x32xf32>
    %cst_108 = arith.constant dense<0.000000e+00> : vector<8xf32>
    %169 = vector.multi_reduction <add>, %168, %cst_108 [1] : vector<8x32xf32> to vector<8xf32>
    %170 = vector.shape_cast %169 : vector<8xf32> to vector<8x1xf32>
    %cst_109 = arith.constant 3.200000e+01 : f32
    %171 = vector.broadcast %cst_109 : f32 to vector<8x1xf32>
    %172 = arith.divf %170, %171 : vector<8x1xf32>
    %173 = vector.broadcast %165 : vector<8x1xf32> to vector<8x32xf32>
    %174 = arith.subf %161, %173 : vector<8x32xf32>
    %cst_110 = arith.constant 9.99999974E-6 : f32
    %175 = vector.broadcast %cst_110 : f32 to vector<8x1xf32>
    %176 = arith.addf %172, %175 : vector<8x1xf32>
    %177 = math.rsqrt %176 : vector<8x1xf32>
    %178 = vector.broadcast %177 : vector<8x1xf32> to vector<8x32xf32>
    %179 = arith.mulf %174, %178 : vector<8x32xf32>
    %180 = vector.broadcast %10 : vector<1x32xf32> to vector<8x32xf32>
    %181 = arith.mulf %179, %180 : vector<8x32xf32>
    %182 = vector.broadcast %13 : vector<1x32xf32> to vector<8x32xf32>
    %183 = arith.addf %181, %182 : vector<8x32xf32>
    %184 = arith.truncf %183 : vector<8x32xf32> to vector<8x32xbf16>
    %c0_111 = arith.constant 0 : index
    %c0_112 = arith.constant 0 : index
    %185 = vector.load %arg5[%c0_111, %c0_112] : memref<32x64xbf16, #tpu.memory_space<vmem>>, vector<32x64xbf16>
    %cst_113 = arith.constant dense<0.000000e+00> : vector<8x64xf32>
    %186 = tpu.matmul %184, %185, %cst_113 {dimension_numbers = #tpu.dot_dimension_numbers<[1], [0], [0], [1], [0, 0, 1, 1], [], []>} : vector<8x32xbf16>, vector<32x64xbf16>, vector<8x64xf32> -> vector<8x64xf32>
    %c0_114 = arith.constant 0 : index
    %c0_115 = arith.constant 0 : index
    %187 = vector.load %arg6[%c0_114, %c0_115] : memref<1x64xf32, #tpu.memory_space<vmem>>, vector<1x64xf32>
    %188 = vector.broadcast %187 : vector<1x64xf32> to vector<8x64xf32>
    %189 = arith.addf %186, %188 : vector<8x64xf32>
    %cst_116 = arith.constant 0.000000e+00 : f32
    %190 = vector.broadcast %cst_116 : f32 to vector<8x64xf32>
    %191 = arith.maximumf %189, %190 : vector<8x64xf32>
    %192 = arith.truncf %191 : vector<8x64xf32> to vector<8x64xbf16>
    %c0_117 = arith.constant 0 : index
    %c0_118 = arith.constant 0 : index
    %193 = vector.load %arg7[%c0_117, %c0_118] : memref<64x32xbf16, #tpu.memory_space<vmem>>, vector<64x32xbf16>
    %cst_119 = arith.constant dense<0.000000e+00> : vector<8x32xf32>
    %194 = tpu.matmul %192, %193, %cst_119 {dimension_numbers = #tpu.dot_dimension_numbers<[1], [0], [0], [1], [0, 0, 1, 1], [], []>} : vector<8x64xbf16>, vector<64x32xbf16>, vector<8x32xf32> -> vector<8x32xf32>
    %c0_120 = arith.constant 0 : index
    %c0_121 = arith.constant 0 : index
    %195 = vector.load %arg8[%c0_120, %c0_121] : memref<1x32xf32, #tpu.memory_space<vmem>>, vector<1x32xf32>
    %196 = vector.broadcast %195 : vector<1x32xf32> to vector<8x32xf32>
    %197 = arith.addf %194, %196 : vector<8x32xf32>
    %198 = arith.addf %197, %183 : vector<8x32xf32>
    %cst_122 = arith.constant dense<0.000000e+00> : vector<8xf32>
    %199 = vector.multi_reduction <add>, %198, %cst_122 [1] : vector<8x32xf32> to vector<8xf32>
    %200 = vector.shape_cast %199 : vector<8xf32> to vector<8x1xf32>
    %cst_123 = arith.constant 3.200000e+01 : f32
    %201 = vector.broadcast %cst_123 : f32 to vector<8x1xf32>
    %202 = arith.divf %200, %201 : vector<8x1xf32>
    %203 = vector.broadcast %202 : vector<8x1xf32> to vector<8x32xf32>
    %204 = arith.subf %198, %203 : vector<8x32xf32>
    %205 = arith.mulf %204, %204 : vector<8x32xf32>
    %cst_124 = arith.constant dense<0.000000e+00> : vector<8xf32>
    %206 = vector.multi_reduction <add>, %205, %cst_124 [1] : vector<8x32xf32> to vector<8xf32>
    %207 = vector.shape_cast %206 : vector<8xf32> to vector<8x1xf32>
    %cst_125 = arith.constant 3.200000e+01 : f32
    %208 = vector.broadcast %cst_125 : f32 to vector<8x1xf32>
    %209 = arith.divf %207, %208 : vector<8x1xf32>
    %210 = vector.broadcast %202 : vector<8x1xf32> to vector<8x32xf32>
    %211 = arith.subf %198, %210 : vector<8x32xf32>
    %cst_126 = arith.constant 9.99999974E-6 : f32
    %212 = vector.broadcast %cst_126 : f32 to vector<8x1xf32>
    %213 = arith.addf %209, %212 : vector<8x1xf32>
    %214 = math.rsqrt %213 : vector<8x1xf32>
    %215 = vector.broadcast %214 : vector<8x1xf32> to vector<8x32xf32>
    %216 = arith.mulf %211, %215 : vector<8x32xf32>
    %217 = vector.broadcast %11 : vector<1x32xf32> to vector<8x32xf32>
    %218 = arith.mulf %216, %217 : vector<8x32xf32>
    %219 = vector.broadcast %14 : vector<1x32xf32> to vector<8x32xf32>
    %220 = arith.addf %218, %219 : vector<8x32xf32>
    %c0_127 = arith.constant 0 : index
    %c0_128 = arith.constant 0 : index
    %c0_129 = arith.constant 0 : index
    %221 = vector.load %arg11[%c0_127, %c0_128, %c0_129] : memref<1x8x32xf32, #tpu.memory_space<vmem>>, vector<1x8x32xf32>
    %222 = vector.shape_cast %221 : vector<1x8x32xf32> to vector<8x32xf32>
    %223 = vector.shape_cast %220 : vector<8x32xf32> to vector<1x8x32xf32>
    tpu.vector_store %arg11[%c0_127, %c0_128, %c0_129], %223 {strides = array<i32>} : memref<1x8x32xf32, #tpu.memory_space<vmem>>, vector<1x8x32xf32>,
    return
  }
  func.func @transform_0(%arg0: i32, %arg1: i32) -> (i32, i32, i32) {
    %c0_i32 = arith.constant 0 : i32
    %c0_i32_0 = arith.constant 0 : i32
    %c0_i32_1 = arith.constant 0 : i32
    return %arg0, %c0_i32, %c0_i32_0 : i32, i32, i32
  }
  func.func @transform_1(%arg0: i32, %arg1: i32) -> (i32, i32, i32) {
    %c0_i32 = arith.constant 0 : i32
    %c0_i32_0 = arith.constant 0 : i32
    %c0_i32_1 = arith.constant 0 : i32
    %c0_i32_2 = arith.constant 0 : i32
    return %c0_i32, %c0_i32_0, %c0_i32_1 : i32, i32, i32
  }
  func.func @transform_2(%arg0: i32, %arg1: i32) -> (i32, i32) {
    %c0_i32 = arith.constant 0 : i32
    %c0_i32_0 = arith.constant 0 : i32
    %c0_i32_1 = arith.constant 0 : i32
    return %c0_i32, %c0_i32_0 : i32, i32
  }
  func.func @transform_3(%arg0: i32, %arg1: i32) -> (i32, i32) {
    %c0_i32 = arith.constant 0 : i32
    %c0_i32_0 = arith.constant 0 : i32
    %c0_i32_1 = arith.constant 0 : i32
    return %c0_i32, %c0_i32_0 : i32, i32
  }
  func.func @transform_4(%arg0: i32, %arg1: i32) -> (i32, i32) {
    %c0_i32 = arith.constant 0 : i32
    %c0_i32_0 = arith.constant 0 : i32
    %c0_i32_1 = arith.constant 0 : i32
    return %c0_i32, %c0_i32_0 : i32, i32
  }
  func.func @transform_5(%arg0: i32, %arg1: i32) -> (i32, i32) {
    %c0_i32 = arith.constant 0 : i32
    %c0_i32_0 = arith.constant 0 : i32
    %c0_i32_1 = arith.constant 0 : i32
    return %c0_i32, %c0_i32_0 : i32, i32
  }
  func.func @transform_6(%arg0: i32, %arg1: i32) -> (i32, i32) {
    %c0_i32 = arith.constant 0 : i32
    %c0_i32_0 = arith.constant 0 : i32
    %c0_i32_1 = arith.constant 0 : i32
    return %c0_i32, %c0_i32_0 : i32, i32
  }
  func.func @transform_7(%arg0: i32, %arg1: i32) -> (i32, i32) {
    %c0_i32 = arith.constant 0 : i32
    %c0_i32_0 = arith.constant 0 : i32
    %c0_i32_1 = arith.constant 0 : i32
    return %c0_i32, %c0_i32_0 : i32, i32
  }
  func.func @transform_8(%arg0: i32, %arg1: i32) -> (i32, i32) {
    %c0_i32 = arith.constant 0 : i32
    %c0_i32_0 = arith.constant 0 : i32
    %c0_i32_1 = arith.constant 0 : i32
    return %c0_i32, %c0_i32_0 : i32, i32
  }
  func.func @transform_9(%arg0: i32, %arg1: i32) -> (i32, i32, i32) {
    %c0_i32 = arith.constant 0 : i32
    %c0_i32_0 = arith.constant 0 : i32
    return %arg0, %arg1, %c0_i32 : i32, i32, i32
  }
}

module attributes {stable_mosaic.version = 11 : i64} {
  func.func @_decoder_layer_kernel(%arg0: i32, %arg1: i32, %arg2: memref<1x8x32xf32, #tpu.memory_space<vmem>>, %arg3: memref<8x32x32xbf16, #tpu.memory_space<vmem>>, %arg4: memref<8x32xf32, #tpu.memory_space<vmem>>, %arg5: memref<32x64xbf16, #tpu.memory_space<vmem>>, %arg6: memref<1x64xf32, #tpu.memory_space<vmem>>, %arg7: memref<64x32xbf16, #tpu.memory_space<vmem>>, %arg8: memref<1x32xf32, #tpu.memory_space<vmem>>, %arg9: memref<3x32xf32, #tpu.memory_space<vmem>>, %arg10: memref<3x32xf32, #tpu.memory_space<vmem>>, %arg11: memref<1x8x32xf32, #tpu.memory_space<vmem>>, %arg12: memref<4x8x8xbf16, #tpu.memory_space<vmem>>, %arg13: memref<4x8x8xbf16, #tpu.memory_space<vmem>>, %arg14: memref<4x8x8xbf16, #tpu.memory_space<vmem>>, %arg15: memref<4x8x8xbf16, #tpu.memory_space<vmem>>, %arg16: memref<4x8x8xbf16, #tpu.memory_space<vmem>>, %arg17: memref<8x32xbf16, #tpu.memory_space<vmem>>) attributes {dimension_semantics = [#tpu.dimension_semantics<parallel>, #tpu.dimension_semantics<arbitrary>], iteration_bounds = array<i64: 2, 1>, scalar_prefetch = 0 : i64, scratch_operands = 6 : i64, tpu.core_type = #tpu.core_type<tc>, window_params = [{transform_indices = @transform_0, window_bounds = array<i64: 1, 8, 32>}, {pipeline_mode = #tpu.pipeline_mode<synchronous>, transform_indices = @transform_1, window_bounds = array<i64: 8, 32, 32>}, {pipeline_mode = #tpu.pipeline_mode<synchronous>, transform_indices = @transform_2, window_bounds = array<i64: 8, 32>}, {pipeline_mode = #tpu.pipeline_mode<synchronous>, transform_indices = @transform_3, window_bounds = array<i64: 32, 64>}, {pipeline_mode = #tpu.pipeline_mode<synchronous>, transform_indices = @transform_4, window_bounds = array<i64: 1, 64>}, {pipeline_mode = #tpu.pipeline_mode<synchronous>, transform_indices = @transform_5, window_bounds = array<i64: 64, 32>}, {pipeline_mode = #tpu.pipeline_mode<synchronous>, transform_indices = @transform_6, window_bounds = array<i64: 1, 32>}, {pipeline_mode = #tpu.pipeline_mode<synchronous>, transform_indices = @transform_7, window_bounds = array<i64: 3, 32>}, {pipeline_mode = #tpu.pipeline_mode<synchronous>, transform_indices = @transform_8, window_bounds = array<i64: 3, 32>}, {transform_indices = @transform_9, window_bounds = array<i64: 1, 8, 32>}]} {
    %c0_i32 = arith.constant 0 : i32
    %0 = arith.cmpi eq, %arg1, %c0_i32 : i32
    %1 = arith.extui %0 : i1 to i32
    %c0_i32_0 = arith.constant 0 : i32
    %2 = arith.cmpi ne, %1, %c0_i32_0 : i32
    scf.if %2 {
      %c0_130 = arith.constant 0 : index
      %c0_131 = arith.constant 0 : index
      %c0_132 = arith.constant 0 : index
      %224 = vector.load %arg2[%c0_130, %c0_131, %c0_132] : memref<1x8x32xf32, #tpu.memory_space<vmem>>, vector<1x8x32xf32>
      %225 = vector.shape_cast %224 : vector<1x8x32xf32> to vector<8x32xf32>
      %226 = arith.truncf %225 : vector<8x32xf32> to vector<8x32xbf16>
      %c1_133 = arith.constant 1 : index
      %c0_134 = arith.constant 0 : index
      %c0_135 = arith.constant 0 : index
      %227 = vector.load %arg3[%c1_133, %c0_134, %c0_135] : memref<8x32x32xbf16, #tpu.memory_space<vmem>>, vector<1x32x32xbf16>
      %228 = vector.shape_cast %227 : vector<1x32x32xbf16> to vector<32x32xbf16>
      %cst_136 = arith.constant dense<0.000000e+00> : vector<8x32xf32>
      %229 = tpu.matmul %226, %228, %cst_136 {dimension_numbers = #tpu.dot_dimension_numbers<[1], [0], [0], [1], [0, 0, 1, 1], [], []>} : vector<8x32xbf16>, vector<32x32xbf16>, vector<8x32xf32> -> vector<8x32xf32>
      %c1_137 = arith.constant 1 : index
      %c0_138 = arith.constant 0 : index
      %230 = vector.load %arg4[%c1_137, %c0_138] : memref<8x32xf32, #tpu.memory_space<vmem>>, vector<1x32xf32>
      %231 = vector.broadcast %230 : vector<1x32xf32> to vector<8x32xf32>
      %232 = arith.addf %229, %231 : vector<8x32xf32>
      %233 = arith.truncf %232 : vector<8x32xf32> to vector<8x32xbf16>
      %234 = vector.extract_strided_slice %233 {offsets = [0, 0], sizes = [8, 8], strides = [1, 1]} : vector<8x32xbf16> to vector<8x8xbf16>
      %c0_139 = arith.constant 0 : index
      %c0_140 = arith.constant 0 : index
      %c0_141 = arith.constant 0 : index
      %235 = vector.load %arg12[%c0_139, %c0_140, %c0_141] : memref<4x8x8xbf16, #tpu.memory_space<vmem>>, vector<1x8x8xbf16>
      %236 = vector.shape_cast %235 : vector<1x8x8xbf16> to vector<8x8xbf16>
      %237 = vector.shape_cast %234 : vector<8x8xbf16> to vector<1x8x8xbf16>
      tpu.vector_store %arg12[%c0_139, %c0_140, %c0_141], %237 {strides = array<i32>} : memref<4x8x8xbf16, #tpu.memory_space<vmem>>, vector<1x8x8xbf16>,
      %238 = vector.extract_strided_slice %233 {offsets = [0, 8], sizes = [8, 8], strides = [1, 1]} : vector<8x32xbf16> to vector<8x8xbf16>
      %c1_142 = arith.constant 1 : index
      %c0_143 = arith.constant 0 : index
      %c0_144 = arith.constant 0 : index
      %239 = vector.load %arg12[%c1_142, %c0_143, %c0_144] : memref<4x8x8xbf16, #tpu.memory_space<vmem>>, vector<1x8x8xbf16>
      %240 = vector.shape_cast %239 : vector<1x8x8xbf16> to vector<8x8xbf16>
      %241 = vector.shape_cast %238 : vector<8x8xbf16> to vector<1x8x8xbf16>
      tpu.vector_store %arg12[%c1_142, %c0_143, %c0_144], %241 {strides = array<i32>} : memref<4x8x8xbf16, #tpu.memory_space<vmem>>, vector<1x8x8xbf16>,
      %242 = vector.extract_strided_slice %233 {offsets = [0, 16], sizes = [8, 8], strides = [1, 1]} : vector<8x32xbf16> to vector<8x8xbf16>
      %c2_145 = arith.constant 2 : index
      %c0_146 = arith.constant 0 : index
      %c0_147 = arith.constant 0 : index
      %243 = vector.load %arg12[%c2_145, %c0_146, %c0_147] : memref<4x8x8xbf16, #tpu.memory_space<vmem>>, vector<1x8x8xbf16>
      %244 = vector.shape_cast %243 : vector<1x8x8xbf16> to vector<8x8xbf16>
      %245 = vector.shape_cast %242 : vector<8x8xbf16> to vector<1x8x8xbf16>
      tpu.vector_store %arg12[%c2_145, %c0_146, %c0_147], %245 {strides = array<i32>} : memref<4x8x8xbf16, #tpu.memory_space<vmem>>, vector<1x8x8xbf16>,
      %246 = vector.extract_strided_slice %233 {offsets = [0, 24], sizes = [8, 8], strides = [1, 1]} : vector<8x32xbf16> to vector<8x8xbf16>
      %c3_148 = arith.constant 3 : index
      %c0_149 = arith.constant 0 : index
      %c0_150 = arith.constant 0 : index
      %247 = vector.load %arg12[%c3_148, %c0_149, %c0_150] : memref<4x8x8xbf16, #tpu.memory_space<vmem>>, vector<1x8x8xbf16>
      %248 = vector.shape_cast %247 : vector<1x8x8xbf16> to vector<8x8xbf16>
      %249 = vector.shape_cast %246 : vector<8x8xbf16> to vector<1x8x8xbf16>
      tpu.vector_store %arg12[%c3_148, %c0_149, %c0_150], %249 {strides = array<i32>} : memref<4x8x8xbf16, #tpu.memory_space<vmem>>, vector<1x8x8xbf16>,
      %c2_151 = arith.constant 2 : index
      %c0_152 = arith.constant 0 : index
      %c0_153 = arith.constant 0 : index
      %250 = vector.load %arg3[%c2_151, %c0_152, %c0_153] : memref<8x32x32xbf16, #tpu.memory_space<vmem>>, vector<1x32x32xbf16>
      %251 = vector.shape_cast %250 : vector<1x32x32xbf16> to vector<32x32xbf16>
      %cst_154 = arith.constant dense<0.000000e+00> : vector<8x32xf32>
      %252 = tpu.matmul %226, %251, %cst_154 {dimension_numbers = #tpu.dot_dimension_numbers<[1], [0], [0], [1], [0, 0, 1, 1], [], []>} : vector<8x32xbf16>, vector<32x32xbf16>, vector<8x32xf32> -> vector<8x32xf32>
      %c2_155 = arith.constant 2 : index
      %c0_156 = arith.constant 0 : index
      %253 = vector.load %arg4[%c2_155, %c0_156] : memref<8x32xf32, #tpu.memory_space<vmem>>, vector<1x32xf32>
      %254 = vector.broadcast %253 : vector<1x32xf32> to vector<8x32xf32>
      %255 = arith.addf %252, %254 : vector<8x32xf32>
      %256 = arith.truncf %255 : vector<8x32xf32> to vector<8x32xbf16>
      %257 = vector.extract_strided_slice %256 {offsets = [0, 0], sizes = [8, 8], strides = [1, 1]} : vector<8x32xbf16> to vector<8x8xbf16>
      %c0_157 = arith.constant 0 : index
      %c0_158 = arith.constant 0 : index
      %c0_159 = arith.constant 0 : index
      %258 = vector.load %arg13[%c0_157, %c0_158, %c0_159] : memref<4x8x8xbf16, #tpu.memory_space<vmem>>, vector<1x8x8xbf16>
      %259 = vector.shape_cast %258 : vector<1x8x8xbf16> to vector<8x8xbf16>
      %260 = vector.shape_cast %257 : vector<8x8xbf16> to vector<1x8x8xbf16>
      tpu.vector_store %arg13[%c0_157, %c0_158, %c0_159], %260 {strides = array<i32>} : memref<4x8x8xbf16, #tpu.memory_space<vmem>>, vector<1x8x8xbf16>,
      %261 = vector.extract_strided_slice %256 {offsets = [0, 8], sizes = [8, 8], strides = [1, 1]} : vector<8x32xbf16> to vector<8x8xbf16>
      %c1_160 = arith.constant 1 : index
      %c0_161 = arith.constant 0 : index
      %c0_162 = arith.constant 0 : index
      %262 = vector.load %arg13[%c1_160, %c0_161, %c0_162] : memref<4x8x8xbf16, #tpu.memory_space<vmem>>, vector<1x8x8xbf16>
      %263 = vector.shape_cast %262 : vector<1x8x8xbf16> to vector<8x8xbf16>
      %264 = vector.shape_cast %261 : vector<8x8xbf16> to vector<1x8x8xbf16>
      tpu.vector_store %arg13[%c1_160, %c0_161, %c0_162], %264 {strides = array<i32>} : memref<4x8x8xbf16, #tpu.memory_space<vmem>>, vector<1x8x8xbf16>,
      %265 = vector.extract_strided_slice %256 {offsets = [0, 16], sizes = [8, 8], strides = [1, 1]} : vector<8x32xbf16> to vector<8x8xbf16>
      %c2_163 = arith.constant 2 : index
      %c0_164 = arith.constant 0 : index
      %c0_165 = arith.constant 0 : index
      %266 = vector.load %arg13[%c2_163, %c0_164, %c0_165] : memref<4x8x8xbf16, #tpu.memory_space<vmem>>, vector<1x8x8xbf16>
      %267 = vector.shape_cast %266 : vector<1x8x8xbf16> to vector<8x8xbf16>
      %268 = vector.shape_cast %265 : vector<8x8xbf16> to vector<1x8x8xbf16>
      tpu.vector_store %arg13[%c2_163, %c0_164, %c0_165], %268 {strides = array<i32>} : memref<4x8x8xbf16, #tpu.memory_space<vmem>>, vector<1x8x8xbf16>,
      %269 = vector.extract_strided_slice %256 {offsets = [0, 24], sizes = [8, 8], strides = [1, 1]} : vector<8x32xbf16> to vector<8x8xbf16>
      %c3_166 = arith.constant 3 : index
      %c0_167 = arith.constant 0 : index
      %c0_168 = arith.constant 0 : index
      %270 = vector.load %arg13[%c3_166, %c0_167, %c0_168] : memref<4x8x8xbf16, #tpu.memory_space<vmem>>, vector<1x8x8xbf16>
      %271 = vector.shape_cast %270 : vector<1x8x8xbf16> to vector<8x8xbf16>
      %272 = vector.shape_cast %269 : vector<8x8xbf16> to vector<1x8x8xbf16>
      tpu.vector_store %arg13[%c3_166, %c0_167, %c0_168], %272 {strides = array<i32>} : memref<4x8x8xbf16, #tpu.memory_space<vmem>>, vector<1x8x8xbf16>,
      %c5 = arith.constant 5 : index
      %c0_169 = arith.constant 0 : index
      %c0_170 = arith.constant 0 : index
      %273 = vector.load %arg3[%c5, %c0_169, %c0_170] : memref<8x32x32xbf16, #tpu.memory_space<vmem>>, vector<1x32x32xbf16>
      %274 = vector.shape_cast %273 : vector<1x32x32xbf16> to vector<32x32xbf16>
      %cst_171 = arith.constant dense<0.000000e+00> : vector<8x32xf32>
      %275 = tpu.matmul %226, %274, %cst_171 {dimension_numbers = #tpu.dot_dimension_numbers<[1], [0], [0], [1], [0, 0, 1, 1], [], []>} : vector<8x32xbf16>, vector<32x32xbf16>, vector<8x32xf32> -> vector<8x32xf32>
      %c5_172 = arith.constant 5 : index
      %c0_173 = arith.constant 0 : index
      %276 = vector.load %arg4[%c5_172, %c0_173] : memref<8x32xf32, #tpu.memory_space<vmem>>, vector<1x32xf32>
      %277 = vector.broadcast %276 : vector<1x32xf32> to vector<8x32xf32>
      %278 = arith.addf %275, %277 : vector<8x32xf32>
      %279 = arith.truncf %278 : vector<8x32xf32> to vector<8x32xbf16>
      %280 = vector.extract_strided_slice %279 {offsets = [0, 0], sizes = [8, 8], strides = [1, 1]} : vector<8x32xbf16> to vector<8x8xbf16>
      %c0_174 = arith.constant 0 : index
      %c0_175 = arith.constant 0 : index
      %c0_176 = arith.constant 0 : index
      %281 = vector.load %arg14[%c0_174, %c0_175, %c0_176] : memref<4x8x8xbf16, #tpu.memory_space<vmem>>, vector<1x8x8xbf16>
      %282 = vector.shape_cast %281 : vector<1x8x8xbf16> to vector<8x8xbf16>
      %283 = vector.shape_cast %280 : vector<8x8xbf16> to vector<1x8x8xbf16>
      tpu.vector_store %arg14[%c0_174, %c0_175, %c0_176], %283 {strides = array<i32>} : memref<4x8x8xbf16, #tpu.memory_space<vmem>>, vector<1x8x8xbf16>,
      %284 = vector.extract_strided_slice %279 {offsets = [0, 8], sizes = [8, 8], strides = [1, 1]} : vector<8x32xbf16> to vector<8x8xbf16>
      %c1_177 = arith.constant 1 : index
      %c0_178 = arith.constant 0 : index
      %c0_179 = arith.constant 0 : index
      %285 = vector.load %arg14[%c1_177, %c0_178, %c0_179] : memref<4x8x8xbf16, #tpu.memory_space<vmem>>, vector<1x8x8xbf16>
      %286 = vector.shape_cast %285 : vector<1x8x8xbf16> to vector<8x8xbf16>
      %287 = vector.shape_cast %284 : vector<8x8xbf16> to vector<1x8x8xbf16>
      tpu.vector_store %arg14[%c1_177, %c0_178, %c0_179], %287 {strides = array<i32>} : memref<4x8x8xbf16, #tpu.memory_space<vmem>>, vector<1x8x8xbf16>,
      %288 = vector.extract_strided_slice %279 {offsets = [0, 16], sizes = [8, 8], strides = [1, 1]} : vector<8x32xbf16> to vector<8x8xbf16>
      %c2_180 = arith.constant 2 : index
      %c0_181 = arith.constant 0 : index
      %c0_182 = arith.constant 0 : index
      %289 = vector.load %arg14[%c2_180, %c0_181, %c0_182] : memref<4x8x8xbf16, #tpu.memory_space<vmem>>, vector<1x8x8xbf16>
      %290 = vector.shape_cast %289 : vector<1x8x8xbf16> to vector<8x8xbf16>
      %291 = vector.shape_cast %288 : vector<8x8xbf16> to vector<1x8x8xbf16>
      tpu.vector_store %arg14[%c2_180, %c0_181, %c0_182], %291 {strides = array<i32>} : memref<4x8x8xbf16, #tpu.memory_space<vmem>>, vector<1x8x8xbf16>,
      %292 = vector.extract_strided_slice %279 {offsets = [0, 24], sizes = [8, 8], strides = [1, 1]} : vector<8x32xbf16> to vector<8x8xbf16>
      %c3_183 = arith.constant 3 : index
      %c0_184 = arith.constant 0 : index
      %c0_185 = arith.constant 0 : index
      %293 = vector.load %arg14[%c3_183, %c0_184, %c0_185] : memref<4x8x8xbf16, #tpu.memory_space<vmem>>, vector<1x8x8xbf16>
      %294 = vector.shape_cast %293 : vector<1x8x8xbf16> to vector<8x8xbf16>
      %295 = vector.shape_cast %292 : vector<8x8xbf16> to vector<1x8x8xbf16>
      tpu.vector_store %arg14[%c3_183, %c0_184, %c0_185], %295 {strides = array<i32>} : memref<4x8x8xbf16, #tpu.memory_space<vmem>>, vector<1x8x8xbf16>,
      %c6 = arith.constant 6 : index
      %c0_186 = arith.constant 0 : index
      %c0_187 = arith.constant 0 : index
      %296 = vector.load %arg3[%c6, %c0_186, %c0_187] : memref<8x32x32xbf16, #tpu.memory_space<vmem>>, vector<1x32x32xbf16>
      %297 = vector.shape_cast %296 : vector<1x32x32xbf16> to vector<32x32xbf16>
      %cst_188 = arith.constant dense<0.000000e+00> : vector<8x32xf32>
      %298 = tpu.matmul %226, %297, %cst_188 {dimension_numbers = #tpu.dot_dimension_numbers<[1], [0], [0], [1], [0, 0, 1, 1], [], []>} : vector<8x32xbf16>, vector<32x32xbf16>, vector<8x32xf32> -> vector<8x32xf32>
      %c6_189 = arith.constant 6 : index
      %c0_190 = arith.constant 0 : index
      %299 = vector.load %arg4[%c6_189, %c0_190] : memref<8x32xf32, #tpu.memory_space<vmem>>, vector<1x32xf32>
      %300 = vector.broadcast %299 : vector<1x32xf32> to vector<8x32xf32>
      %301 = arith.addf %298, %300 : vector<8x32xf32>
      %302 = arith.truncf %301 : vector<8x32xf32> to vector<8x32xbf16>
      %303 = vector.extract_strided_slice %302 {offsets = [0, 0], sizes = [8, 8], strides = [1, 1]} : vector<8x32xbf16> to vector<8x8xbf16>
      %c0_191 = arith.constant 0 : index
      %c0_192 = arith.constant 0 : index
      %c0_193 = arith.constant 0 : index
      %304 = vector.load %arg15[%c0_191, %c0_192, %c0_193] : memref<4x8x8xbf16, #tpu.memory_space<vmem>>, vector<1x8x8xbf16>
      %305 = vector.shape_cast %304 : vector<1x8x8xbf16> to vector<8x8xbf16>
      %306 = vector.shape_cast %303 : vector<8x8xbf16> to vector<1x8x8xbf16>
      tpu.vector_store %arg15[%c0_191, %c0_192, %c0_193], %306 {strides = array<i32>} : memref<4x8x8xbf16, #tpu.memory_space<vmem>>, vector<1x8x8xbf16>,
      %307 = vector.extract_strided_slice %302 {offsets = [0, 8], sizes = [8, 8], strides = [1, 1]} : vector<8x32xbf16> to vector<8x8xbf16>
      %c1_194 = arith.constant 1 : index
      %c0_195 = arith.constant 0 : index
      %c0_196 = arith.constant 0 : index
      %308 = vector.load %arg15[%c1_194, %c0_195, %c0_196] : memref<4x8x8xbf16, #tpu.memory_space<vmem>>, vector<1x8x8xbf16>
      %309 = vector.shape_cast %308 : vector<1x8x8xbf16> to vector<8x8xbf16>
      %310 = vector.shape_cast %307 : vector<8x8xbf16> to vector<1x8x8xbf16>
      tpu.vector_store %arg15[%c1_194, %c0_195, %c0_196], %310 {strides = array<i32>} : memref<4x8x8xbf16, #tpu.memory_space<vmem>>, vector<1x8x8xbf16>,
      %311 = vector.extract_strided_slice %302 {offsets = [0, 16], sizes = [8, 8], strides = [1, 1]} : vector<8x32xbf16> to vector<8x8xbf16>
      %c2_197 = arith.constant 2 : index
      %c0_198 = arith.constant 0 : index
      %c0_199 = arith.constant 0 : index
      %312 = vector.load %arg15[%c2_197, %c0_198, %c0_199] : memref<4x8x8xbf16, #tpu.memory_space<vmem>>, vector<1x8x8xbf16>
      %313 = vector.shape_cast %312 : vector<1x8x8xbf16> to vector<8x8xbf16>
      %314 = vector.shape_cast %311 : vector<8x8xbf16> to vector<1x8x8xbf16>
      tpu.vector_store %arg15[%c2_197, %c0_198, %c0_199], %314 {strides = array<i32>} : memref<4x8x8xbf16, #tpu.memory_space<vmem>>, vector<1x8x8xbf16>,
      %315 = vector.extract_strided_slice %302 {offsets = [0, 24], sizes = [8, 8], strides = [1, 1]} : vector<8x32xbf16> to vector<8x8xbf16>
      %c3_200 = arith.constant 3 : index
      %c0_201 = arith.constant 0 : index
      %c0_202 = arith.constant 0 : index
      %316 = vector.load %arg15[%c3_200, %c0_201, %c0_202] : memref<4x8x8xbf16, #tpu.memory_space<vmem>>, vector<1x8x8xbf16>
      %317 = vector.shape_cast %316 : vector<1x8x8xbf16> to vector<8x8xbf16>
      %318 = vector.shape_cast %315 : vector<8x8xbf16> to vector<1x8x8xbf16>
      tpu.vector_store %arg15[%c3_200, %c0_201, %c0_202], %318 {strides = array<i32>} : memref<4x8x8xbf16, #tpu.memory_space<vmem>>, vector<1x8x8xbf16>,
    } else {
    }
    %c8_i32 = arith.constant 8 : i32
    %3 = arith.muli %arg1, %c8_i32 : i32
    %4 = tpu.assume_multiple %3, 8 : i32
    %c0 = arith.constant 0 : index
    %5 = arith.index_cast %4 : i32 to index
    %c0_1 = arith.constant 0 : index
    %6 = vector.load %arg2[%c0, %5, %c0_1] : memref<1x8x32xf32, #tpu.memory_space<vmem>>, vector<1x8x32xf32>
    %7 = vector.shape_cast %6 : vector<1x8x32xf32> to vector<8x32xf32>
    %8 = arith.truncf %7 : vector<8x32xf32> to vector<8x32xbf16>
    %c0_2 = arith.constant 0 : index
    %c0_3 = arith.constant 0 : index
    %9 = vector.load %arg9[%c0_2, %c0_3] : memref<3x32xf32, #tpu.memory_space<vmem>>, vector<1x32xf32>
    %c1 = arith.constant 1 : index
    %c0_4 = arith.constant 0 : index
    %10 = vector.load %arg9[%c1, %c0_4] : memref<3x32xf32, #tpu.memory_space<vmem>>, vector<1x32xf32>
    %c2 = arith.constant 2 : index
    %c0_5 = arith.constant 0 : index
    %11 = vector.load %arg9[%c2, %c0_5] : memref<3x32xf32, #tpu.memory_space<vmem>>, vector<1x32xf32>
    %c0_6 = arith.constant 0 : index
    %c0_7 = arith.constant 0 : index
    %12 = vector.load %arg10[%c0_6, %c0_7] : memref<3x32xf32, #tpu.memory_space<vmem>>, vector<1x32xf32>
    %c1_8 = arith.constant 1 : index
    %c0_9 = arith.constant 0 : index
    %13 = vector.load %arg10[%c1_8, %c0_9] : memref<3x32xf32, #tpu.memory_space<vmem>>, vector<1x32xf32>
    %c2_10 = arith.constant 2 : index
    %c0_11 = arith.constant 0 : index
    %14 = vector.load %arg10[%c2_10, %c0_11] : memref<3x32xf32, #tpu.memory_space<vmem>>, vector<1x32xf32>
    %c0_12 = arith.constant 0 : index
    %c0_13 = arith.constant 0 : index
    %c0_14 = arith.constant 0 : index
    %15 = vector.load %arg3[%c0_12, %c0_13, %c0_14] : memref<8x32x32xbf16, #tpu.memory_space<vmem>>, vector<1x32x32xbf16>
    %16 = vector.shape_cast %15 : vector<1x32x32xbf16> to vector<32x32xbf16>
    %c3 = arith.constant 3 : index
    %c0_15 = arith.constant 0 : index
    %c0_16 = arith.constant 0 : index
    %17 = vector.load %arg3[%c3, %c0_15, %c0_16] : memref<8x32x32xbf16, #tpu.memory_space<vmem>>, vector<1x32x32xbf16>
    %18 = vector.shape_cast %17 : vector<1x32x32xbf16> to vector<32x32xbf16>
    %c0_17 = arith.constant 0 : index
    %c0_18 = arith.constant 0 : index
    %19 = vector.load %arg4[%c0_17, %c0_18] : memref<8x32xf32, #tpu.memory_space<vmem>>, vector<1x32xf32>
    %c3_19 = arith.constant 3 : index
    %c0_20 = arith.constant 0 : index
    %20 = vector.load %arg4[%c3_19, %c0_20] : memref<8x32xf32, #tpu.memory_space<vmem>>, vector<1x32xf32>
    %cst = arith.constant dense<0.000000e+00> : vector<8x32xf32>
    %21 = tpu.matmul %8, %16, %cst {dimension_numbers = #tpu.dot_dimension_numbers<[1], [0], [0], [1], [0, 0, 1, 1], [], []>} : vector<8x32xbf16>, vector<32x32xbf16>, vector<8x32xf32> -> vector<8x32xf32>
    %22 = vector.broadcast %19 : vector<1x32xf32> to vector<8x32xf32>
    %23 = arith.addf %21, %22 : vector<8x32xf32>
    %cst_21 = arith.constant 0.353553385 : f32
    %24 = vector.broadcast %cst_21 : f32 to vector<8x32xf32>
    %25 = arith.mulf %23, %24 : vector<8x32xf32>
    %26 = arith.truncf %25 : vector<8x32xf32> to vector<8x32xbf16>
    %27 = vector.extract_strided_slice %26 {offsets = [0, 0], sizes = [8, 8], strides = [1, 1]} : vector<8x32xbf16> to vector<8x8xbf16>
    %c0_22 = arith.constant 0 : index
    %c0_23 = arith.constant 0 : index
    %c0_24 = arith.constant 0 : index
    %28 = vector.load %arg16[%c0_22, %c0_23, %c0_24] : memref<4x8x8xbf16, #tpu.memory_space<vmem>>, vector<1x8x8xbf16>
    %29 = vector.shape_cast %28 : vector<1x8x8xbf16> to vector<8x8xbf16>
    %30 = vector.shape_cast %27 : vector<8x8xbf16> to vector<1x8x8xbf16>
    tpu.vector_store %arg16[%c0_22, %c0_23, %c0_24], %30 {strides = array<i32>} : memref<4x8x8xbf16, #tpu.memory_space<vmem>>, vector<1x8x8xbf16>,
    %31 = vector.extract_strided_slice %26 {offsets = [0, 8], sizes = [8, 8], strides = [1, 1]} : vector<8x32xbf16> to vector<8x8xbf16>
    %c1_25 = arith.constant 1 : index
    %c0_26 = arith.constant 0 : index
    %c0_27 = arith.constant 0 : index
    %32 = vector.load %arg16[%c1_25, %c0_26, %c0_27] : memref<4x8x8xbf16, #tpu.memory_space<vmem>>, vector<1x8x8xbf16>
    %33 = vector.shape_cast %32 : vector<1x8x8xbf16> to vector<8x8xbf16>
    %34 = vector.shape_cast %31 : vector<8x8xbf16> to vector<1x8x8xbf16>
    tpu.vector_store %arg16[%c1_25, %c0_26, %c0_27], %34 {strides = array<i32>} : memref<4x8x8xbf16, #tpu.memory_space<vmem>>, vector<1x8x8xbf16>,
    %35 = vector.extract_strided_slice %26 {offsets = [0, 16], sizes = [8, 8], strides = [1, 1]} : vector<8x32xbf16> to vector<8x8xbf16>
    %c2_28 = arith.constant 2 : index
    %c0_29 = arith.constant 0 : index
    %c0_30 = arith.constant 0 : index
    %36 = vector.load %arg16[%c2_28, %c0_29, %c0_30] : memref<4x8x8xbf16, #tpu.memory_space<vmem>>, vector<1x8x8xbf16>
    %37 = vector.shape_cast %36 : vector<1x8x8xbf16> to vector<8x8xbf16>
    %38 = vector.shape_cast %35 : vector<8x8xbf16> to vector<1x8x8xbf16>
    tpu.vector_store %arg16[%c2_28, %c0_29, %c0_30], %38 {strides = array<i32>} : memref<4x8x8xbf16, #tpu.memory_space<vmem>>, vector<1x8x8xbf16>,
    %39 = vector.extract_strided_slice %26 {offsets = [0, 24], sizes = [8, 8], strides = [1, 1]} : vector<8x32xbf16> to vector<8x8xbf16>
    %c3_31 = arith.constant 3 : index
    %c0_32 = arith.constant 0 : index
    %c0_33 = arith.constant 0 : index
    %40 = vector.load %arg16[%c3_31, %c0_32, %c0_33] : memref<4x8x8xbf16, #tpu.memory_space<vmem>>, vector<1x8x8xbf16>
    %41 = vector.shape_cast %40 : vector<1x8x8xbf16> to vector<8x8xbf16>
    %42 = vector.shape_cast %39 : vector<8x8xbf16> to vector<1x8x8xbf16>
    tpu.vector_store %arg16[%c3_31, %c0_32, %c0_33], %42 {strides = array<i32>} : memref<4x8x8xbf16, #tpu.memory_space<vmem>>, vector<1x8x8xbf16>,
    %c0_34 = arith.constant 0 : index
    %c0_35 = arith.constant 0 : index
    %c0_36 = arith.constant 0 : index
    %43 = vector.load %arg16[%c0_34, %c0_35, %c0_36] : memref<4x8x8xbf16, #tpu.memory_space<vmem>>, vector<4x8x8xbf16>
    %c0_37 = arith.constant 0 : index
    %c0_38 = arith.constant 0 : index
    %c0_39 = arith.constant 0 : index
    %44 = vector.load %arg12[%c0_37, %c0_38, %c0_39] : memref<4x8x8xbf16, #tpu.memory_space<vmem>>, vector<4x8x8xbf16>
    %c0_40 = arith.constant 0 : index
    %c0_41 = arith.constant 0 : index
    %c0_42 = arith.constant 0 : index
    %45 = vector.load %arg13[%c0_40, %c0_41, %c0_42] : memref<4x8x8xbf16, #tpu.memory_space<vmem>>, vector<4x8x8xbf16>
    %cst_43 = arith.constant dense<0.000000e+00> : vector<4x8x8xf32>
    %46 = tpu.matmul %43, %44, %cst_43 {dimension_numbers = #tpu.dot_dimension_numbers<[2], [2], [1], [1], [0, 0, 0, 1, 1, 1], [0], [0]>} : vector<4x8x8xbf16>, vector<4x8x8xbf16>, vector<4x8x8xf32> -> vector<4x8x8xf32>
    %cst_44 = arith.constant dense<0xFF800000> : vector<4x8xf32>
    %47 = vector.multi_reduction <maximumf>, %46, %cst_44 [2] : vector<4x8x8xf32> to vector<4x8xf32>
    %48 = vector.shape_cast %47 : vector<4x8xf32> to vector<4x8x1xf32>
    %49 = vector.broadcast %48 : vector<4x8x1xf32> to vector<4x8x8xf32>
    %50 = arith.subf %46, %49 : vector<4x8x8xf32>
    %51 = math.exp %50 : vector<4x8x8xf32>
    %cst_45 = arith.constant dense<0.000000e+00> : vector<4x8xf32>
    %52 = vector.multi_reduction <add>, %51, %cst_45 [2] : vector<4x8x8xf32> to vector<4x8xf32>
    %53 = vector.shape_cast %52 : vector<4x8xf32> to vector<4x8x1xf32>
    %54 = tpu.reciprocal %53 {approx = true} : vector<4x8x1xf32> -> vector<4x8x1xf32>
    %55 = vector.broadcast %54 : vector<4x8x1xf32> to vector<4x8x8xf32>
    %56 = arith.mulf %51, %55 : vector<4x8x8xf32>
    %57 = arith.truncf %56 : vector<4x8x8xf32> to vector<4x8x8xbf16>
    %cst_46 = arith.constant dense<0.000000e+00> : vector<4x8x8xf32>
    %58 = tpu.matmul %57, %45, %cst_46 {dimension_numbers = #tpu.dot_dimension_numbers<[2], [1], [1], [2], [0, 0, 0, 1, 1, 2], [0], [0]>} : vector<4x8x8xbf16>, vector<4x8x8xbf16>, vector<4x8x8xf32> -> vector<4x8x8xf32>
    %59 = arith.truncf %58 : vector<4x8x8xf32> to vector<4x8x8xbf16>
    %60 = vector.extract_strided_slice %59 {offsets = [0, 0, 0], sizes = [1, 8, 8], strides = [1, 1, 1]} : vector<4x8x8xbf16> to vector<1x8x8xbf16>
    %61 = vector.shape_cast %60 : vector<1x8x8xbf16> to vector<8x8xbf16>
    %c0_47 = arith.constant 0 : index
    %c0_48 = arith.constant 0 : index
    %62 = vector.load %arg17[%c0_47, %c0_48] : memref<8x32xbf16, #tpu.memory_space<vmem>>, vector<8x8xbf16>
    tpu.vector_store %arg17[%c0_47, %c0_48], %61 {strides = array<i32>} : memref<8x32xbf16, #tpu.memory_space<vmem>>, vector<8x8xbf16>,
    %63 = vector.extract_strided_slice %59 {offsets = [1, 0, 0], sizes = [1, 8, 8], strides = [1, 1, 1]} : vector<4x8x8xbf16> to vector<1x8x8xbf16>
    %64 = vector.shape_cast %63 : vector<1x8x8xbf16> to vector<8x8xbf16>
    %c0_49 = arith.constant 0 : index
    %c8 = arith.constant 8 : index
    %65 = vector.load %arg17[%c0_49, %c8] : memref<8x32xbf16, #tpu.memory_space<vmem>>, vector<8x8xbf16>
    tpu.vector_store %arg17[%c0_49, %c8], %64 {strides = array<i32>} : memref<8x32xbf16, #tpu.memory_space<vmem>>, vector<8x8xbf16>,
    %66 = vector.extract_strided_slice %59 {offsets = [2, 0, 0], sizes = [1, 8, 8], strides = [1, 1, 1]} : vector<4x8x8xbf16> to vector<1x8x8xbf16>
    %67 = vector.shape_cast %66 : vector<1x8x8xbf16> to vector<8x8xbf16>
    %c0_50 = arith.constant 0 : index
    %c16 = arith.constant 16 : index
    %68 = vector.load %arg17[%c0_50, %c16] : memref<8x32xbf16, #tpu.memory_space<vmem>>, vector<8x8xbf16>
    tpu.vector_store %arg17[%c0_50, %c16], %67 {strides = array<i32>} : memref<8x32xbf16, #tpu.memory_space<vmem>>, vector<8x8xbf16>,
    %69 = vector.extract_strided_slice %59 {offsets = [3, 0, 0], sizes = [1, 8, 8], strides = [1, 1, 1]} : vector<4x8x8xbf16> to vector<1x8x8xbf16>
    %70 = vector.shape_cast %69 : vector<1x8x8xbf16> to vector<8x8xbf16>
    %c0_51 = arith.constant 0 : index
    %c24 = arith.constant 24 : index
    %71 = vector.load %arg17[%c0_51, %c24] : memref<8x32xbf16, #tpu.memory_space<vmem>>, vector<8x8xbf16>
    tpu.vector_store %arg17[%c0_51, %c24], %70 {strides = array<i32>} : memref<8x32xbf16, #tpu.memory_space<vmem>>, vector<8x8xbf16>,
    %c0_52 = arith.constant 0 : index
    %c0_53 = arith.constant 0 : index
    %72 = vector.load %arg17[%c0_52, %c0_53] : memref<8x32xbf16, #tpu.memory_space<vmem>>, vector<8x32xbf16>
    %cst_54 = arith.constant dense<0.000000e+00> : vector<8x32xf32>
    %73 = tpu.matmul %72, %18, %cst_54 {dimension_numbers = #tpu.dot_dimension_numbers<[1], [0], [0], [1], [0, 0, 1, 1], [], []>} : vector<8x32xbf16>, vector<32x32xbf16>, vector<8x32xf32> -> vector<8x32xf32>
    %74 = vector.broadcast %20 : vector<1x32xf32> to vector<8x32xf32>
    %75 = arith.addf %73, %74 : vector<8x32xf32>
    %76 = arith.addf %75, %7 : vector<8x32xf32>
    %cst_55 = arith.constant dense<0.000000e+00> : vector<8xf32>
    %77 = vector.multi_reduction <add>, %76, %cst_55 [1] : vector<8x32xf32> to vector<8xf32>
    %78 = vector.shape_cast %77 : vector<8xf32> to vector<8x1xf32>
    %cst_56 = arith.constant 3.200000e+01 : f32
    %79 = vector.broadcast %cst_56 : f32 to vector<8x1xf32>
    %80 = arith.divf %78, %79 : vector<8x1xf32>
    %81 = vector.broadcast %80 : vector<8x1xf32> to vector<8x32xf32>
    %82 = arith.subf %76, %81 : vector<8x32xf32>
    %83 = arith.mulf %82, %82 : vector<8x32xf32>
    %cst_57 = arith.constant dense<0.000000e+00> : vector<8xf32>
    %84 = vector.multi_reduction <add>, %83, %cst_57 [1] : vector<8x32xf32> to vector<8xf32>
    %85 = vector.shape_cast %84 : vector<8xf32> to vector<8x1xf32>
    %cst_58 = arith.constant 3.200000e+01 : f32
    %86 = vector.broadcast %cst_58 : f32 to vector<8x1xf32>
    %87 = arith.divf %85, %86 : vector<8x1xf32>
    %88 = vector.broadcast %80 : vector<8x1xf32> to vector<8x32xf32>
    %89 = arith.subf %76, %88 : vector<8x32xf32>
    %cst_59 = arith.constant 9.99999974E-6 : f32
    %90 = vector.broadcast %cst_59 : f32 to vector<8x1xf32>
    %91 = arith.addf %87, %90 : vector<8x1xf32>
    %92 = math.rsqrt %91 : vector<8x1xf32>
    %93 = vector.broadcast %92 : vector<8x1xf32> to vector<8x32xf32>
    %94 = arith.mulf %89, %93 : vector<8x32xf32>
    %95 = vector.broadcast %9 : vector<1x32xf32> to vector<8x32xf32>
    %96 = arith.mulf %94, %95 : vector<8x32xf32>
    %97 = vector.broadcast %12 : vector<1x32xf32> to vector<8x32xf32>
    %98 = arith.addf %96, %97 : vector<8x32xf32>
    %99 = arith.truncf %98 : vector<8x32xf32> to vector<8x32xbf16>
    %c4 = arith.constant 4 : index
    %c0_60 = arith.constant 0 : index
    %c0_61 = arith.constant 0 : index
    %100 = vector.load %arg3[%c4, %c0_60, %c0_61] : memref<8x32x32xbf16, #tpu.memory_space<vmem>>, vector<1x32x32xbf16>
    %101 = vector.shape_cast %100 : vector<1x32x32xbf16> to vector<32x32xbf16>
    %c7 = arith.constant 7 : index
    %c0_62 = arith.constant 0 : index
    %c0_63 = arith.constant 0 : index
    %102 = vector.load %arg3[%c7, %c0_62, %c0_63] : memref<8x32x32xbf16, #tpu.memory_space<vmem>>, vector<1x32x32xbf16>
    %103 = vector.shape_cast %102 : vector<1x32x32xbf16> to vector<32x32xbf16>
    %c4_64 = arith.constant 4 : index
    %c0_65 = arith.constant 0 : index
    %104 = vector.load %arg4[%c4_64, %c0_65] : memref<8x32xf32, #tpu.memory_space<vmem>>, vector<1x32xf32>
    %c7_66 = arith.constant 7 : index
    %c0_67 = arith.constant 0 : index
    %105 = vector.load %arg4[%c7_66, %c0_67] : memref<8x32xf32, #tpu.memory_space<vmem>>, vector<1x32xf32>
    %cst_68 = arith.constant dense<0.000000e+00> : vector<8x32xf32>
    %106 = tpu.matmul %99, %101, %cst_68 {dimension_numbers = #tpu.dot_dimension_numbers<[1], [0], [0], [1], [0, 0, 1, 1], [], []>} : vector<8x32xbf16>, vector<32x32xbf16>, vector<8x32xf32> -> vector<8x32xf32>
    %107 = vector.broadcast %104 : vector<1x32xf32> to vector<8x32xf32>
    %108 = arith.addf %106, %107 : vector<8x32xf32>
    %cst_69 = arith.constant 0.353553385 : f32
    %109 = vector.broadcast %cst_69 : f32 to vector<8x32xf32>
    %110 = arith.mulf %108, %109 : vector<8x32xf32>
    %111 = arith.truncf %110 : vector<8x32xf32> to vector<8x32xbf16>
    %112 = vector.extract_strided_slice %111 {offsets = [0, 0], sizes = [8, 8], strides = [1, 1]} : vector<8x32xbf16> to vector<8x8xbf16>
    %c0_70 = arith.constant 0 : index
    %c0_71 = arith.constant 0 : index
    %c0_72 = arith.constant 0 : index
    %113 = vector.load %arg16[%c0_70, %c0_71, %c0_72] : memref<4x8x8xbf16, #tpu.memory_space<vmem>>, vector<1x8x8xbf16>
    %114 = vector.shape_cast %113 : vector<1x8x8xbf16> to vector<8x8xbf16>
    %115 = vector.shape_cast %112 : vector<8x8xbf16> to vector<1x8x8xbf16>
    tpu.vector_store %arg16[%c0_70, %c0_71, %c0_72], %115 {strides = array<i32>} : memref<4x8x8xbf16, #tpu.memory_space<vmem>>, vector<1x8x8xbf16>,
    %116 = vector.extract_strided_slice %111 {offsets = [0, 8], sizes = [8, 8], strides = [1, 1]} : vector<8x32xbf16> to vector<8x8xbf16>
    %c1_73 = arith.constant 1 : index
    %c0_74 = arith.constant 0 : index
    %c0_75 = arith.constant 0 : index
    %117 = vector.load %arg16[%c1_73, %c0_74, %c0_75] : memref<4x8x8xbf16, #tpu.memory_space<vmem>>, vector<1x8x8xbf16>
    %118 = vector.shape_cast %117 : vector<1x8x8xbf16> to vector<8x8xbf16>
    %119 = vector.shape_cast %116 : vector<8x8xbf16> to vector<1x8x8xbf16>
    tpu.vector_store %arg16[%c1_73, %c0_74, %c0_75], %119 {strides = array<i32>} : memref<4x8x8xbf16, #tpu.memory_space<vmem>>, vector<1x8x8xbf16>,
    %120 = vector.extract_strided_slice %111 {offsets = [0, 16], sizes = [8, 8], strides = [1, 1]} : vector<8x32xbf16> to vector<8x8xbf16>
    %c2_76 = arith.constant 2 : index
    %c0_77 = arith.constant 0 : index
    %c0_78 = arith.constant 0 : index
    %121 = vector.load %arg16[%c2_76, %c0_77, %c0_78] : memref<4x8x8xbf16, #tpu.memory_space<vmem>>, vector<1x8x8xbf16>
    %122 = vector.shape_cast %121 : vector<1x8x8xbf16> to vector<8x8xbf16>
    %123 = vector.shape_cast %120 : vector<8x8xbf16> to vector<1x8x8xbf16>
    tpu.vector_store %arg16[%c2_76, %c0_77, %c0_78], %123 {strides = array<i32>} : memref<4x8x8xbf16, #tpu.memory_space<vmem>>, vector<1x8x8xbf16>,
    %124 = vector.extract_strided_slice %111 {offsets = [0, 24], sizes = [8, 8], strides = [1, 1]} : vector<8x32xbf16> to vector<8x8xbf16>
    %c3_79 = arith.constant 3 : index
    %c0_80 = arith.constant 0 : index
    %c0_81 = arith.constant 0 : index
    %125 = vector.load %arg16[%c3_79, %c0_80, %c0_81] : memref<4x8x8xbf16, #tpu.memory_space<vmem>>, vector<1x8x8xbf16>
    %126 = vector.shape_cast %125 : vector<1x8x8xbf16> to vector<8x8xbf16>
    %127 = vector.shape_cast %124 : vector<8x8xbf16> to vector<1x8x8xbf16>
    tpu.vector_store %arg16[%c3_79, %c0_80, %c0_81], %127 {strides = array<i32>} : memref<4x8x8xbf16, #tpu.memory_space<vmem>>, vector<1x8x8xbf16>,
    %c0_82 = arith.constant 0 : index
    %c0_83 = arith.constant 0 : index
    %c0_84 = arith.constant 0 : index
    %128 = vector.load %arg16[%c0_82, %c0_83, %c0_84] : memref<4x8x8xbf16, #tpu.memory_space<vmem>>, vector<4x8x8xbf16>
    %c0_85 = arith.constant 0 : index
    %c0_86 = arith.constant 0 : index
    %c0_87 = arith.constant 0 : index
    %129 = vector.load %arg14[%c0_85, %c0_86, %c0_87] : memref<4x8x8xbf16, #tpu.memory_space<vmem>>, vector<4x8x8xbf16>
    %c0_88 = arith.constant 0 : index
    %c0_89 = arith.constant 0 : index
    %c0_90 = arith.constant 0 : index
    %130 = vector.load %arg15[%c0_88, %c0_89, %c0_90] : memref<4x8x8xbf16, #tpu.memory_space<vmem>>, vector<4x8x8xbf16>
    %cst_91 = arith.constant dense<0.000000e+00> : vector<4x8x8xf32>
    %131 = tpu.matmul %128, %129, %cst_91 {dimension_numbers = #tpu.dot_dimension_numbers<[2], [2], [1], [1], [0, 0, 0, 1, 1, 1], [0], [0]>} : vector<4x8x8xbf16>, vector<4x8x8xbf16>, vector<4x8x8xf32> -> vector<4x8x8xf32>
    %cst_92 = arith.constant dense<0xFF800000> : vector<4x8xf32>
    %132 = vector.multi_reduction <maximumf>, %131, %cst_92 [2] : vector<4x8x8xf32> to vector<4x8xf32>
    %133 = vector.shape_cast %132 : vector<4x8xf32> to vector<4x8x1xf32>
    %134 = vector.broadcast %133 : vector<4x8x1xf32> to vector<4x8x8xf32>
    %135 = arith.subf %131, %134 : vector<4x8x8xf32>
    %136 = math.exp %135 : vector<4x8x8xf32>
    %cst_93 = arith.constant dense<0.000000e+00> : vector<4x8xf32>
    %137 = vector.multi_reduction <add>, %136, %cst_93 [2] : vector<4x8x8xf32> to vector<4x8xf32>
    %138 = vector.shape_cast %137 : vector<4x8xf32> to vector<4x8x1xf32>
    %139 = tpu.reciprocal %138 {approx = true} : vector<4x8x1xf32> -> vector<4x8x1xf32>
    %140 = vector.broadcast %139 : vector<4x8x1xf32> to vector<4x8x8xf32>
    %141 = arith.mulf %136, %140 : vector<4x8x8xf32>
    %142 = arith.truncf %141 : vector<4x8x8xf32> to vector<4x8x8xbf16>
    %cst_94 = arith.constant dense<0.000000e+00> : vector<4x8x8xf32>
    %143 = tpu.matmul %142, %130, %cst_94 {dimension_numbers = #tpu.dot_dimension_numbers<[2], [1], [1], [2], [0, 0, 0, 1, 1, 2], [0], [0]>} : vector<4x8x8xbf16>, vector<4x8x8xbf16>, vector<4x8x8xf32> -> vector<4x8x8xf32>
    %144 = arith.truncf %143 : vector<4x8x8xf32> to vector<4x8x8xbf16>
    %145 = vector.extract_strided_slice %144 {offsets = [0, 0, 0], sizes = [1, 8, 8], strides = [1, 1, 1]} : vector<4x8x8xbf16> to vector<1x8x8xbf16>
    %146 = vector.shape_cast %145 : vector<1x8x8xbf16> to vector<8x8xbf16>
    %c0_95 = arith.constant 0 : index
    %c0_96 = arith.constant 0 : index
    %147 = vector.load %arg17[%c0_95, %c0_96] : memref<8x32xbf16, #tpu.memory_space<vmem>>, vector<8x8xbf16>
    tpu.vector_store %arg17[%c0_95, %c0_96], %146 {strides = array<i32>} : memref<8x32xbf16, #tpu.memory_space<vmem>>, vector<8x8xbf16>,
    %148 = vector.extract_strided_slice %144 {offsets = [1, 0, 0], sizes = [1, 8, 8], strides = [1, 1, 1]} : vector<4x8x8xbf16> to vector<1x8x8xbf16>
    %149 = vector.shape_cast %148 : vector<1x8x8xbf16> to vector<8x8xbf16>
    %c0_97 = arith.constant 0 : index
    %c8_98 = arith.constant 8 : index
    %150 = vector.load %arg17[%c0_97, %c8_98] : memref<8x32xbf16, #tpu.memory_space<vmem>>, vector<8x8xbf16>
    tpu.vector_store %arg17[%c0_97, %c8_98], %149 {strides = array<i32>} : memref<8x32xbf16, #tpu.memory_space<vmem>>, vector<8x8xbf16>,
    %151 = vector.extract_strided_slice %144 {offsets = [2, 0, 0], sizes = [1, 8, 8], strides = [1, 1, 1]} : vector<4x8x8xbf16> to vector<1x8x8xbf16>
    %152 = vector.shape_cast %151 : vector<1x8x8xbf16> to vector<8x8xbf16>
    %c0_99 = arith.constant 0 : index
    %c16_100 = arith.constant 16 : index
    %153 = vector.load %arg17[%c0_99, %c16_100] : memref<8x32xbf16, #tpu.memory_space<vmem>>, vector<8x8xbf16>
    tpu.vector_store %arg17[%c0_99, %c16_100], %152 {strides = array<i32>} : memref<8x32xbf16, #tpu.memory_space<vmem>>, vector<8x8xbf16>,
    %154 = vector.extract_strided_slice %144 {offsets = [3, 0, 0], sizes = [1, 8, 8], strides = [1, 1, 1]} : vector<4x8x8xbf16> to vector<1x8x8xbf16>
    %155 = vector.shape_cast %154 : vector<1x8x8xbf16> to vector<8x8xbf16>
    %c0_101 = arith.constant 0 : index
    %c24_102 = arith.constant 24 : index
    %156 = vector.load %arg17[%c0_101, %c24_102] : memref<8x32xbf16, #tpu.memory_space<vmem>>, vector<8x8xbf16>
    tpu.vector_store %arg17[%c0_101, %c24_102], %155 {strides = array<i32>} : memref<8x32xbf16, #tpu.memory_space<vmem>>, vector<8x8xbf16>,
    %c0_103 = arith.constant 0 : index
    %c0_104 = arith.constant 0 : index
    %157 = vector.load %arg17[%c0_103, %c0_104] : memref<8x32xbf16, #tpu.memory_space<vmem>>, vector<8x32xbf16>
    %cst_105 = arith.constant dense<0.000000e+00> : vector<8x32xf32>
    %158 = tpu.matmul %157, %103, %cst_105 {dimension_numbers = #tpu.dot_dimension_numbers<[1], [0], [0], [1], [0, 0, 1, 1], [], []>} : vector<8x32xbf16>, vector<32x32xbf16>, vector<8x32xf32> -> vector<8x32xf32>
    %159 = vector.broadcast %105 : vector<1x32xf32> to vector<8x32xf32>
    %160 = arith.addf %158, %159 : vector<8x32xf32>
    %161 = arith.addf %160, %98 : vector<8x32xf32>
    %cst_106 = arith.constant dense<0.000000e+00> : vector<8xf32>
    %162 = vector.multi_reduction <add>, %161, %cst_106 [1] : vector<8x32xf32> to vector<8xf32>
    %163 = vector.shape_cast %162 : vector<8xf32> to vector<8x1xf32>
    %cst_107 = arith.constant 3.200000e+01 : f32
    %164 = vector.broadcast %cst_107 : f32 to vector<8x1xf32>
    %165 = arith.divf %163, %164 : vector<8x1xf32>
    %166 = vector.broadcast %165 : vector<8x1xf32> to vector<8x32xf32>
    %167 = arith.subf %161, %166 : vector<8x32xf32>
    %168 = arith.mulf %167, %167 : vector<8x32xf32>
    %cst_108 = arith.constant dense<0.000000e+00> : vector<8xf32>
    %169 = vector.multi_reduction <add>, %168, %cst_108 [1] : vector<8x32xf32> to vector<8xf32>
    %170 = vector.shape_cast %169 : vector<8xf32> to vector<8x1xf32>
    %cst_109 = arith.constant 3.200000e+01 : f32
    %171 = vector.broadcast %cst_109 : f32 to vector<8x1xf32>
    %172 = arith.divf %170, %171 : vector<8x1xf32>
    %173 = vector.broadcast %165 : vector<8x1xf32> to vector<8x32xf32>
    %174 = arith.subf %161, %173 : vector<8x32xf32>
    %cst_110 = arith.constant 9.99999974E-6 : f32
    %175 = vector.broadcast %cst_110 : f32 to vector<8x1xf32>
    %176 = arith.addf %172, %175 : vector<8x1xf32>
    %177 = math.rsqrt %176 : vector<8x1xf32>
    %178 = vector.broadcast %177 : vector<8x1xf32> to vector<8x32xf32>
    %179 = arith.mulf %174, %178 : vector<8x32xf32>
    %180 = vector.broadcast %10 : vector<1x32xf32> to vector<8x32xf32>
    %181 = arith.mulf %179, %180 : vector<8x32xf32>
    %182 = vector.broadcast %13 : vector<1x32xf32> to vector<8x32xf32>
    %183 = arith.addf %181, %182 : vector<8x32xf32>
    %184 = arith.truncf %183 : vector<8x32xf32> to vector<8x32xbf16>
    %c0_111 = arith.constant 0 : index
    %c0_112 = arith.constant 0 : index
    %185 = vector.load %arg5[%c0_111, %c0_112] : memref<32x64xbf16, #tpu.memory_space<vmem>>, vector<32x64xbf16>
    %cst_113 = arith.constant dense<0.000000e+00> : vector<8x64xf32>
    %186 = tpu.matmul %184, %185, %cst_113 {dimension_numbers = #tpu.dot_dimension_numbers<[1], [0], [0], [1], [0, 0, 1, 1], [], []>} : vector<8x32xbf16>, vector<32x64xbf16>, vector<8x64xf32> -> vector<8x64xf32>
    %c0_114 = arith.constant 0 : index
    %c0_115 = arith.constant 0 : index
    %187 = vector.load %arg6[%c0_114, %c0_115] : memref<1x64xf32, #tpu.memory_space<vmem>>, vector<1x64xf32>
    %188 = vector.broadcast %187 : vector<1x64xf32> to vector<8x64xf32>
    %189 = arith.addf %186, %188 : vector<8x64xf32>
    %cst_116 = arith.constant 0.000000e+00 : f32
    %190 = vector.broadcast %cst_116 : f32 to vector<8x64xf32>
    %191 = arith.maximumf %189, %190 : vector<8x64xf32>
    %192 = arith.truncf %191 : vector<8x64xf32> to vector<8x64xbf16>
    %c0_117 = arith.constant 0 : index
    %c0_118 = arith.constant 0 : index
    %193 = vector.load %arg7[%c0_117, %c0_118] : memref<64x32xbf16, #tpu.memory_space<vmem>>, vector<64x32xbf16>
    %cst_119 = arith.constant dense<0.000000e+00> : vector<8x32xf32>
    %194 = tpu.matmul %192, %193, %cst_119 {dimension_numbers = #tpu.dot_dimension_numbers<[1], [0], [0], [1], [0, 0, 1, 1], [], []>} : vector<8x64xbf16>, vector<64x32xbf16>, vector<8x32xf32> -> vector<8x32xf32>
    %c0_120 = arith.constant 0 : index
    %c0_121 = arith.constant 0 : index
    %195 = vector.load %arg8[%c0_120, %c0_121] : memref<1x32xf32, #tpu.memory_space<vmem>>, vector<1x32xf32>
    %196 = vector.broadcast %195 : vector<1x32xf32> to vector<8x32xf32>
    %197 = arith.addf %194, %196 : vector<8x32xf32>
    %198 = arith.addf %197, %183 : vector<8x32xf32>
    %cst_122 = arith.constant dense<0.000000e+00> : vector<8xf32>
    %199 = vector.multi_reduction <add>, %198, %cst_122 [1] : vector<8x32xf32> to vector<8xf32>
    %200 = vector.shape_cast %199 : vector<8xf32> to vector<8x1xf32>
    %cst_123 = arith.constant 3.200000e+01 : f32
    %201 = vector.broadcast %cst_123 : f32 to vector<8x1xf32>
    %202 = arith.divf %200, %201 : vector<8x1xf32>
    %203 = vector.broadcast %202 : vector<8x1xf32> to vector<8x32xf32>
    %204 = arith.subf %198, %203 : vector<8x32xf32>
    %205 = arith.mulf %204, %204 : vector<8x32xf32>
    %cst_124 = arith.constant dense<0.000000e+00> : vector<8xf32>
    %206 = vector.multi_reduction <add>, %205, %cst_124 [1] : vector<8x32xf32> to vector<8xf32>
    %207 = vector.shape_cast %206 : vector<8xf32> to vector<8x1xf32>
    %cst_125 = arith.constant 3.200000e+01 : f32
    %208 = vector.broadcast %cst_125 : f32 to vector<8x1xf32>
    %209 = arith.divf %207, %208 : vector<8x1xf32>
    %210 = vector.broadcast %202 : vector<8x1xf32> to vector<8x32xf32>
    %211 = arith.subf %198, %210 : vector<8x32xf32>
    %cst_126 = arith.constant 9.99999974E-6 : f32
    %212 = vector.broadcast %cst_126 : f32 to vector<8x1xf32>
    %213 = arith.addf %209, %212 : vector<8x1xf32>
    %214 = math.rsqrt %213 : vector<8x1xf32>
    %215 = vector.broadcast %214 : vector<8x1xf32> to vector<8x32xf32>
    %216 = arith.mulf %211, %215 : vector<8x32xf32>
    %217 = vector.broadcast %11 : vector<1x32xf32> to vector<8x32xf32>
    %218 = arith.mulf %216, %217 : vector<8x32xf32>
    %219 = vector.broadcast %14 : vector<1x32xf32> to vector<8x32xf32>
    %220 = arith.addf %218, %219 : vector<8x32xf32>
    %c0_127 = arith.constant 0 : index
    %c0_128 = arith.constant 0 : index
    %c0_129 = arith.constant 0 : index
    %221 = vector.load %arg11[%c0_127, %c0_128, %c0_129] : memref<1x8x32xf32, #tpu.memory_space<vmem>>, vector<1x8x32xf32>
    %222 = vector.shape_cast %221 : vector<1x8x32xf32> to vector<8x32xf32>
    %223 = vector.shape_cast %220 : vector<8x32xf32> to vector<1x8x32xf32>
    tpu.vector_store %arg11[%c0_127, %c0_128, %c0_129], %223 {strides = array<i32>} : memref<1x8x32xf32, #tpu.memory_space<vmem>>, vector<1x8x32xf32>,
    return
  }
  func.func @transform_0(%arg0: i32, %arg1: i32) -> (i32, i32, i32) {
    %c0_i32 = arith.constant 0 : i32
    %c0_i32_0 = arith.constant 0 : i32
    %c0_i32_1 = arith.constant 0 : i32
    return %arg0, %c0_i32, %c0_i32_0 : i32, i32, i32
  }
  func.func @transform_1(%arg0: i32, %arg1: i32) -> (i32, i32, i32) {
    %c0_i32 = arith.constant 0 : i32
    %c0_i32_0 = arith.constant 0 : i32
    %c0_i32_1 = arith.constant 0 : i32
    %c0_i32_2 = arith.constant 0 : i32
    return %c0_i32, %c0_i32_0, %c0_i32_1 : i32, i32, i32
  }
  func.func @transform_2(%arg0: i32, %arg1: i32) -> (i32, i32) {
    %c0_i32 = arith.constant 0 : i32
    %c0_i32_0 = arith.constant 0 : i32
    %c0_i32_1 = arith.constant 0 : i32
    return %c0_i32, %c0_i32_0 : i32, i32
  }
  func.func @transform_3(%arg0: i32, %arg1: i32) -> (i32, i32) {
    %c0_i32 = arith.constant 0 : i32
    %c0_i32_0 = arith.constant 0 : i32
    %c0_i32_1 = arith.constant 0 : i32
    return %c0_i32, %c0_i32_0 : i32, i32
  }
  func.func @transform_4(%arg0: i32, %arg1: i32) -> (i32, i32) {
    %c0_i32 = arith.constant 0 : i32
    %c0_i32_0 = arith.constant 0 : i32
    %c0_i32_1 = arith.constant 0 : i32
    return %c0_i32, %c0_i32_0 : i32, i32
  }
  func.func @transform_5(%arg0: i32, %arg1: i32) -> (i32, i32) {
    %c0_i32 = arith.constant 0 : i32
    %c0_i32_0 = arith.constant 0 : i32
    %c0_i32_1 = arith.constant 0 : i32
    return %c0_i32, %c0_i32_0 : i32, i32
  }
  func.func @transform_6(%arg0: i32, %arg1: i32) -> (i32, i32) {
    %c0_i32 = arith.constant 0 : i32
    %c0_i32_0 = arith.constant 0 : i32
    %c0_i32_1 = arith.constant 0 : i32
    return %c0_i32, %c0_i32_0 : i32, i32
  }
  func.func @transform_7(%arg0: i32, %arg1: i32) -> (i32, i32) {
    %c0_i32 = arith.constant 0 : i32
    %c0_i32_0 = arith.constant 0 : i32
    %c0_i32_1 = arith.constant 0 : i32
    return %c0_i32, %c0_i32_0 : i32, i32
  }
  func.func @transform_8(%arg0: i32, %arg1: i32) -> (i32, i32) {
    %c0_i32 = arith.constant 0 : i32
    %c0_i32_0 = arith.constant 0 : i32
    %c0_i32_1 = arith.constant 0 : i32
    return %c0_i32, %c0_i32_0 : i32, i32
  }
  func.func @transform_9(%arg0: i32, %arg1: i32) -> (i32, i32, i32) {
    %c0_i32 = arith.constant 0 : i32
    %c0_i32_0 = arith.constant 0 : i32
    return %arg0, %arg1, %c0_i32 : i32, i32, i32
  }
}

</mosaic_0001>

<bundles_post_ra>
// kernel: tpu_custom_call.1
= control target key start
LH: loop header
LB: loop body
LE: loop exit
PB: predicated region body
PF: predicated region fallthrough
CT: control target
= control target key end

     0   :  { %s3321_s0 = inlined_call_operand.vmem [shape: f32[2,8,32], index: 0, kind: input, shape index: {}]   ;;  %s3322_s1 = inlined_call_operand.hbm [shape: bf16[8,32,32], index: 1, kind: input, shape index: {}]   ;;  %s3323_s2 = inlined_call_operand.vmem [shape: f32[8,32], index: 2, kind: input, shape index: {}]   ;;  %s3324_s3 = inlined_call_operand.vmem [shape: bf16[32,64], index: 3, kind: input, shape index: {}]   ;;  %s3325_s4 = inlined_call_operand.vmem [shape: f32[1,64], index: 4, kind: input, shape index: {}]   ;;  %s3326_s5 = inlined_call_operand.vmem [shape: bf16[64,32], index: 5, kind: input, shape index: {}]   ;;  %s3327_s6 = inlined_call_operand.vmem [shape: f32[1,32], index: 6, kind: input, shape index: {}]   ;;  %s3328_s7 = inlined_call_operand.vmem [shape: f32[3,32], index: 7, kind: input, shape index: {}]   ;;  %s3329_s8 = inlined_call_operand.vmem [shape: f32[3,32], index: 8, kind: input, shape index: {}]   ;;  %s3330_s9 = inlined_call_operand.hbm [shape: f32[2,8,32], index: 9, kind: output, shape index: {}]  }
   0x1   :  { %3331 = sst [smem:[#allocation14_spill]] %s3321_s0 }
   0x2   :  { %3332 = sst [smem:[#allocation15_spill]] %s3322_s1 }
   0x3   :  { %14 = vsyncpa [#allocation9], 0 }
   0x4   :  { %15 = vsyncpa [#allocation10], 0 }
   0x5   :  { %17 = vsyncpa [#allocation10 + $0x1], 0  ;;  %s2897_s30 = smov 0   ;;  %s2899_s10 = smov 0  }
   0x6   :  { %s2901_s11 = smov 0   ;;  %s2903_s12 = smov 0  }
   0x7   :  { %s2905_s13 = smov 0   ;;  %s2907_s14 = smov 0  }
   0x8 LB: > { %s2246_s15 = sadd.s32 4294967295, %s2833_s14   ;;  %s2247_s16 = sadd.s32 4294967294, %s2833_s14   ;;  %s2833_s14 = sphi %s2907_s14, %s23_s14   ;;  %s2829_s13 = sphi %s2905_s13, %s3343_s13   ;;  %s2825_s12 = sphi %s2903_s12, %s3342_s12   ;;  %s2821_s11 = sphi %s2901_s11, %s3341_s11   ;;  %s2817_s10 = sphi %s2899_s10, %s3340_s10   ;;  %s2813_s30 = sphi %s2897_s30, %s3339_s30  }
   0x9   : > { %s35_s17 = sadd.s32 1, %s2829_s13  ;;  %s238_s18 = sadd.s32 1, %s2821_s11 }
   0xa   : > { %p37_p0 = scmp.ge.s32.totalorder %s35_s17, 2  ;;  %p248_p1 = scmp.ne.s32.totalorder %s2821_s11, %s2817_s10 }
   0xb   : > { %p249_p2 = scmp.eq.s32.totalorder %s2246_s15, 1  ;;  %p254_p3 = scmp.ne.s32.totalorder %s2817_s10, %s2813_s30 }
   0xc   : > { %s3345_s17 = smov (%p37_p0, %s35_s17), 0  ;;  %p255_p5 = scmp.eq.s32.totalorder %s2247_s16, 1 }
   0xd   : > { %p2937_p4 = por %p249_p2, %p248_p1  ;;  %s233_s20 = ssub.s32 %s2829_s13, %s3345_s17 }
   0xe   : > { %p2248_p6 = scmp.ge.s32.totalorder %s2833_s14, 1  ;;  %p236_p7 = scmp.eq.s32.totalorder %s233_s20, 0 }
   0xf   : > { %p2944_p8 = por %p255_p5, %p254_p3  ;;  %p262_p9 = scmp.lt.s32.totalorder %s2833_s14, 3 }
  0x10   : > { %s2950_s22 = scalar_select %p236_p7, %s2821_s11, %s238_s18  }
  0x11   : > { %p2952_p10 = pnand %p2248_p6, %p262_p9  ;;  %p2956_p11 = scmp.eq.s32.totalorder %s2246_s15, 0 }
  0x12   : > { %s2835_s25 = smov [#allocation8]  }
  0x13   : > { %p2597_p12 = pneg %p2952_p10  ;;  %s274_s26 = sshll.u32 %s2835_s25, 4  ;;  %s275_s26 = int_to_ptr.vmem [resolvable:$true] %s274_s26 }
  0x14   : > { %s2738_s27 = scalar_lea.vmem %s275_s26, 2048  ;;  %p2746_p5 = scmp.lt.s32.totalorder %s275_s26, %s275_s26 }
  0x15   : > { %p2598_p13 = pnand %p2956_p11, %p2597_p12  ;;  %p2739_p1 = scmp.ne.s32.totalorder %s275_s26, %s2738_s27 }
  0x16   : > { %p2747_p6 = scmp.lt.s32.totalorder %s2738_s27, %s2738_s27 }
  0x17   : > { %p2729_p0 = pneg %p2598_p13 }
  0x18   : > { %p2748_p7 = por %p2747_p6, %p2746_p5 }
  0x19   : > { %p2741_p2 = pnand %p2739_p1, %p2729_p0 }
  0x1b   : > { %p2742_p3 = pneg %p2741_p2 }
  0x1d   : > { %p2749_p9 = pnand %p2748_p7, %p2742_p3 }
  0x1f   : > { %2752 = shalt.err (!%p2749_p9)
}
  0x20   : > { %s2836_s28 = smov 64   ;;  %s2837_s29 = smov 4  }
  0x21   : > { %s3337_s1 = sld [smem:[#allocation15_spill]] }
  0x23   : > { %318 = sbr.rel (%p2952_p10) target bundleno = 4110 (0x100e), region = 56 }
  0x27   : > { %2600 = dma.hbm_to_vmem [thread:$0]  (!%p2598_p13), %s3337_s1, 2048, %s275_s26, [#allocation9], %s2836_s28, %s2836_s28, %s2837_s29  }
  0x28   : > { %2804 = dma.done.wait (%p2956_p11), [#allocation9], 2048  }
  0x29   : > { %2806 = vsyncadd (%p2956_p11), [#allocation9], 4294965248  ;;  %p353_p12 = scmp.lt.s32.totalorder %s2825_s12, 1  ;;  %v2838_v0 = vmov 0.0   ;;  %vm2839_vm0 = vmmov 0   ;;  %s3338_s0 = sld [smem:[#allocation14_spill]] }
  0x2a   : > { %2411 = vmatprep.subr.bf16.mxu0 %v2838_v0  ;;  %2415 = vmatprep.mubr.msk.bf16.mxu0 %vm2839_vm0, %v2838_v0  ;;  %v2667_v1 = vld [vmem:[#allocation8 + $0x18] sm:$0xff]   ;;  %v2668_v2 = vld [vmem:[#allocation8 + $0x10] sm:$0xff]   ;;  %vm386_vm1 = vcmask 261120   ;;  %v2673_v6 = vld [vmem:[#allocation8 + $0x28] sm:$0xff]   ;;  %vm431_vm2 = vcmask 60416   ;;  %s2840_s28 = smov 104  }
  0x2b   : > { %s354_s18 = scalar_select %p353_p12, %s2825_s12, 1  ;;  %2419 = vmatprep.subr.bf16.mxu1 %v2838_v0  ;;  %2423 = vmatprep.mubr.msk.bf16.mxu1 %vm2839_vm0, %v2838_v0  ;;  %v2669_v5 = vld [vmem:[#allocation8 + $0x58] sm:$0xff]   ;;  %v2670_v7 = vld [vmem:[#allocation8 + $0x50] sm:$0xff]   ;;  %v2671_v8 = vld [vmem:[#allocation8 + $0x8] sm:$0xff]   ;;  %vm812_vm3 = vcmask 64512   ;;  %vm1048_vm4 = vcmask 1043456  }
  0x2c   : > { %2412 = vmatpush3.bf16.msra.mxu0 %v2667_v1  ;;  %2420 = vmatpush3.bf16.msra.mxu1 %v2673_v6  ;;  %v2672_v9 = vld [vmem:[#allocation8] sm:$0xff]   ;;  %v2675_v11 = vld [vmem:[#allocation8 + $0x68] sm:$0xff]   ;;  %s2841_s29 = smov 120   ;;  %v2265_v20 = vld [vmem:[%s3323_s2 + $0x5] ss:$0 sm:$0xff]  ;;  %s2843_s15 = smov 8  }
  0x2d   : > { %s2254_s20 = sshll.u32 %s354_s18, 3  ;;  %2413 = vmatprep.subr.bf16.mxu0 %v2838_v0  ;;  %2421 = vmatprep.subr.bf16.mxu1 %v2838_v0  ;;  %v2674_v10 = vld [vmem:[#allocation8 + $0x20] sm:$0xff]   ;;  %v2255_v13 = vld [vmem:[%s3323_s2 + $0x1] ss:$0 sm:$0xff]  ;;  %s2842_s18 = smov 112   ;;  %vm1241_vm5 = vcmask 126016  }
  0x2e   : > { %v2676_v12 = vld [vmem:[#allocation8 + $0x60] sm:$0xff]   ;;  %v2275_v29 = vld [vmem:[%s3323_s2] ss:$0 sm:$0xff]  ;;  %v2260_v38 = vld [vmem:[%s3323_s2 + $0x2] ss:$0 sm:$0xff]  ;;  %s2844_s16 = smov 16  }
  0x2f   : > { %s356_s25 = scalar_lea.vmem %s3338_s0, %s2254_s20  ;;  %v2270_v45 = vld [vmem:[%s3323_s2 + $0x6] ss:$0 sm:$0xff]  ;;  %s2845_s20 = smov 24   ;;  %vm1249_vm6 = vcmask 191616   ;;  %vm1257_vm7 = vcmask 257216   ;;  %vm2080_vm8 = vcmask 523264  }
  0x30   : > { %v2984_v3 = vld [vmem:[%s356_s25] sm:$0xff]  ;;  %2414 = vmatpush3.bf16.msra.mxu0 %v2668_v2  ;;  %2422 = vmatpush3.bf16.msra.mxu1 %v2674_v10  ;;  %s2332_s26 = sshll.u32 %s2825_s12, 7 }
  0x31   : > { %v363_v4 = vpack.c.bf16 %v2984_v3, %v2984_v3  ;;  %2427 = vmatprep.subr.bf16.mxu0 %v2838_v0  ;;  %2435 = vmatprep.subr.bf16.mxu1 %v2838_v0  ;;  %s2162_s0 = scalar_lea.hbm %s3330_s9, %s2332_s26 }
  0x33   : > { %2416 = vmatmul.mubr.msk.bf16.vlgmr.msra.gmra.mxu0 %vm386_vm1, %v363_v4  ;;  %2424 = vmatmul.mubr.msk.bf16.vlgmr.msra.gmra.mxu1 %vm386_vm1, %v363_v4 }
  0x34   : > { %2428 = vmatpush3.bf16.msra.mxu0 %v2669_v5  ;;  %2431 = vmatprep.mubr.msk.bf16.mxu0 %vm2839_vm0, %v2838_v0 }
  0x35   : > { %2429 = vmatprep.subr.bf16.mxu0 %v2838_v0  ;;  %2436 = vmatpush3.bf16.msra.mxu1 %v2675_v11 }
  0x36   : > { %2439 = vmatprep.mubr.msk.bf16.mxu1 %vm2839_vm0, %v2838_v0  ;;  %2437 = vmatprep.subr.bf16.mxu1 %v2838_v0 }
  0x38   : > { %2430 = vmatpush3.bf16.msra.mxu0 %v2670_v7 }
  0x39   : > { %2443 = vmatprep.subr.bf16.mxu0 %v2838_v0  ;;  %2438 = vmatpush3.bf16.msra.mxu1 %v2676_v12 }
  0x3a   : > { %2451 = vmatprep.subr.bf16.mxu1 %v2838_v0 }
  0x3b   : > { %2432 = vmatmul.mubr.msk.bf16.vlgmr.msra.gmra.mxu0 %vm386_vm1, %v363_v4 }
  0x3c   : > { %2444 = vmatpush3.bf16.msra.mxu0 %v2671_v8  ;;  %2447 = vmatprep.mubr.msk.bf16.mxu0 %vm2839_vm0, %v2838_v0 }
  0x3d   : > { %2445 = vmatprep.subr.bf16.mxu0 %v2838_v0  ;;  %2440 = vmatmul.mubr.msk.bf16.vlgmr.msra.gmra.mxu1 %vm386_vm1, %v363_v4 }
  0x3e   : > { %2453 = vmatprep.mubr.msk.bf16.mxu1 %vm2839_vm0, %v2838_v0 }
  0x40   : > { %2446 = vmatpush3.bf16.msra.mxu0 %v2672_v9 }
  0x41   : > { %2457 = vmatprep.subr.bf16.mxu0 %v2838_v0 }
  0x43   : > { %2448 = vmatmul.mubr.msk.bf16.vlgmr.msra.gmra.mxu0 %vm386_vm1, %v363_v4 }
  0x44   : > { %2459 = vmatprep.mubr.msk.bf16.mxu0 %vm2839_vm0, %v2838_v0 }
  0xf3   : > { %v424_v14 = vpop.f32.mrf.mxu0  ;;  %v507_v39 = vpop.f32.mrf.mxu1 }
  0xf4   : > { %v425_v15 = vadd.f32 %v2255_v13, %v424_v14  ;;  %v508_v40 = vadd.f32 %v2260_v38, %v507_v39 }
  0xf5   : > { %v2417_v16 = vpop.f32.mrf.mxu0  ;;  %v2425_v41 = vpop.f32.mrf.mxu1 }
  0xf6   : > { %v430_v17 = vpack.c.bf16 %v425_v15, %v425_v15  ;;  %v3042_v42 = vpack.c.bf16 %v508_v40, %v508_v40 }
  0xf7   : > { %v427_v18 = vpop.f32.mrf.mxu0  ;;  %v510_v43 = vpop.f32.mrf.mxu1 }
  0xf8   : > { %432 = vst.msk [vmem:[#allocation2] sm:$0xf] %vm431_vm2, %v430_v17  ;;  %446 = vrot.lane.b32.xlu1 %v430_v17, %s2840_s28  ;;  %436 = vrot.lane.b32.xlu0 %v430_v17, %s2841_s29  ;;  %514 = vst.msk [vmem:[#allocation3] sm:$0xf] %vm431_vm2, %v3042_v42 }
  0xf9   : > { %v2418_v19 = vpop.f32.mrf.mxu0  ;;  %v2426_v44 = vpop.f32.mrf.mxu1 }
  0xfb   : > { %v589_v21 = vpop.f32.mrf.mxu0 }
  0xfc   : > { %v590_v22 = vadd.f32 %v2265_v20, %v589_v21  ;;  %441 = vrot.lane.b32.xlu0 %v430_v17, %s2842_s18 }
  0xfd   : > { %v2433_v23 = vpop.f32.mrf.mxu0  ;;  %v671_v46 = vpop.f32.mrf.mxu1 }
  0xfe   : > { %v3023_v24 = vpack.c.bf16 %v590_v22, %v590_v22  ;;  %v672_v47 = vadd.f32 %v2270_v45, %v671_v46 }
  0xff   : > { %v592_v25 = vpop.f32.mrf.mxu0  ;;  %v804_v26 = vld [vmem:[#allocation2] sm:$0xf]  ;;  %v2441_v48 = vpop.f32.mrf.mxu1  ;;  %v808_v62 = vld [vmem:[#allocation3] sm:$0xf] }
 0x100   : > { %596 = vst.msk [vmem:[#allocation4] sm:$0xf] %vm431_vm2, %v3023_v24  ;;  %v817_v27 = vsel %vm812_vm3, %v804_v26, 0  ;;  %v3049_v49 = vpack.c.bf16 %v672_v47, %v672_v47  ;;  %v1050_v4 = vsel %vm1048_vm4, %v808_v62, 0 }
 0x101   : > { %v2434_v28 = vpop.f32.mrf.mxu0  ;;  %2452 = vmatpush3.bf16.xpose.msra.mxu1 %v817_v27  ;;  %v674_v50 = vpop.f32.mrf.mxu1 }
 0x102   : > { %2463 = vmatprep.subr.bf16.mxu1 %v2838_v0  ;;  %678 = vst.msk [vmem:[#allocation5] sm:$0xf] %vm431_vm2, %v3049_v49 }
 0x103   : > { %v772_v30 = vpop.f32.mrf.mxu0  ;;  %v2442_v51 = vpop.f32.mrf.mxu1 }
 0x104   : > { %v773_v31 = vadd.f32 %v2275_v29, %v772_v30 }
 0x105   : > { %v2449_v32 = vpop.f32.mrf.mxu0 }
 0x106   : > { %v778_v33 = vmul.f32 0.35355338, %v773_v31 }
 0x107   : > { %v775_v34 = vpop.f32.mrf.mxu0 }
 0x108   : > { %v779_v35 = vpack.c.bf16 %v778_v33, %v778_v33 }
 0x109   : > { %v2450_v36 = vpop.f32.mrf.mxu0 }
 0x10a   : > { %781 = vst.msk [vmem:[#allocation6] sm:$0xf] %vm431_vm2, %v779_v35  ;;  %790 = vrot.lane.b32.xlu0 %v779_v35, %s2842_s18  ;;  %785 = vrot.lane.b32.xlu1 %v779_v35, %s2841_s29 }
 0x10e   : > { %795 = vrot.lane.b32.xlu1 %v779_v35, %s2840_s28 }
 0x111   : > { %v800_v37 = vld [vmem:[#allocation6] sm:$0xf] }
 0x112   : > { %2454 = vmatmul.mubr.msk.bf16.vlgmr.msra.gmra.mxu1 %vm812_vm3, %v800_v37 }
 0x113   : > { %2465 = vmatprep.mubr.msk.bf16.mxu1 %vm2839_vm0, %v2838_v0 }
 0x16a   : > { %v447_v52 = vpop.permute.xlu1 %446  ;;  %v437_v53 = vpop.permute.xlu0 %436 }
 0x16b   : > { %450 = vst.msk [vmem:[#allocation2 + $0xc] sm:$0xf] %vm431_vm2, %v447_v52  ;;  %440 = vst.msk [vmem:[#allocation2 + $0x4] sm:$0xf] %vm431_vm2, %v437_v53 }
 0x16e   : > { %v442_v54 = vpop.permute.xlu0 %441 }
 0x16f   : > { %445 = vst.msk [vmem:[#allocation2 + $0x8] sm:$0xf] %vm431_vm2, %v442_v54 }
 0x172   : > { %v805_v55 = vld [vmem:[#allocation2 + $0x4] sm:$0xf]  ;;  %v807_v63 = vld [vmem:[#allocation2 + $0xc] sm:$0xf] }
 0x173   : > { %v863_v56 = vsel %vm812_vm3, %v805_v55, 0  ;;  %v955_v5 = vsel %vm812_vm3, %v807_v63, 0 }
 0x174   : > { %2458 = vmatpush3.bf16.xpose.msra.mxu0 %v863_v56 }
 0x175   : > { %2469 = vmatprep.subr.bf16.mxu0 %v2838_v0 }
 0x176   : > { %v806_v57 = vld [vmem:[#allocation2 + $0x8] sm:$0xf] }
 0x177   : > { %v909_v58 = vsel %vm812_vm3, %v806_v57, 0 }
 0x178   : > { %2464 = vmatpush3.bf16.xpose.msra.mxu1 %v909_v58 }
 0x179   : > { %2475 = vmatprep.subr.bf16.mxu1 %v2838_v0 }
 0x17c   : > { %v791_v59 = vpop.permute.xlu0 %790  ;;  %v786_v60 = vpop.permute.xlu1 %785 }
 0x17d   : > { %794 = vst.msk [vmem:[#allocation6 + $0x8] sm:$0xf] %vm431_vm2, %v791_v59  ;;  %789 = vst.msk [vmem:[#allocation6 + $0x4] sm:$0xf] %vm431_vm2, %v786_v60 }
 0x180   : > { %v796_v61 = vpop.permute.xlu1 %795 }
 0x181   : > { %799 = vst.msk [vmem:[#allocation6 + $0xc] sm:$0xf] %vm431_vm2, %v796_v61 }
 0x184   : > { %v801_v1 = vld [vmem:[#allocation6 + $0x4] sm:$0xf]  ;;  %v802_v2 = vld [vmem:[#allocation6 + $0x8] sm:$0xf] }
 0x185   : > { %2460 = vmatmul.mubr.msk.bf16.vlgmr.msra.gmra.mxu0 %vm812_vm3, %v801_v1  ;;  %2466 = vmatmul.mubr.msk.bf16.vlgmr.msra.gmra.mxu1 %vm812_vm3, %v802_v2 }
 0x186   : > { %2470 = vmatpush3.bf16.xpose.msra.mxu0 %v955_v5  ;;  %2471 = vmatprep.mubr.msk.bf16.mxu0 %vm2839_vm0, %v2838_v0 }
 0x187   : > { %2476 = vmatpush3.bf16.msra.mxu1 %v1050_v4  ;;  %2481 = vmatprep.subr.bf16.mxu0 %v2838_v0 }
 0x188   : > { %2477 = vmatprep.mubr.msk.bf16.mxu1 %vm2839_vm0, %v2838_v0  ;;  %2487 = vmatprep.subr.bf16.mxu1 %v2838_v0  ;;  %v803_v6 = vld [vmem:[#allocation6 + $0xc] sm:$0xf] }
 0x18d   : > { %2472 = vmatmul.mubr.msk.bf16.vlgmr.msra.gmra.mxu0 %vm812_vm3, %v803_v6 }
 0x18e   : > { %2483 = vmatprep.mubr.msk.bf16.mxu0 %vm2839_vm0, %v2838_v0 }
 0x1d2   : > { %v853_v7 = vpop.f32.mrf.mxu1 }
 0x1d3   : > { %v997_v8 = vsel %vm812_vm3, %v853_v7, -inf }
 0x1d4   : > { %998 = vmax.xlane.f32.xlu0 %v997_v8  ;;  %v2455_v9 = vpop.f32.mrf.mxu1 }
 0x1d6   : > { %v856_v10 = vpop.f32.mrf.mxu1 }
 0x1d8   : > { %v2456_v11 = vpop.f32.mrf.mxu1 }
 0x245   : > { %v899_v12 = vpop.f32.mrf.mxu0  ;;  %v945_v13 = vpop.f32.mrf.mxu1 }
 0x246   : > { %v1003_v14 = vsel %vm812_vm3, %v945_v13, -inf  ;;  %v1000_v15 = vsel %vm812_vm3, %v899_v12, -inf }
 0x247   : > { %1004 = vmax.xlane.f32.xlu0 %v1003_v14  ;;  %v2467_v16 = vpop.f32.mrf.mxu1  ;;  %1001 = vmax.xlane.f32.xlu1 %v1000_v15  ;;  %v2461_v17 = vpop.f32.mrf.mxu0 }
 0x248   : > { %v2677_v17 = vld [vmem:[#allocation8 + $0x38] sm:$0xff]  }
 0x249   : > { %v902_v18 = vpop.f32.mrf.mxu0  ;;  %v948_v19 = vpop.f32.mrf.mxu1 }
 0x24a   : > { %v2678_v18 = vld [vmem:[#allocation8 + $0x30] sm:$0xff]  }
 0x24b   : > { %v2462_v20 = vpop.f32.mrf.mxu0  ;;  %v2468_v21 = vpop.f32.mrf.mxu1 }
 0x24d   : > { %v991_v22 = vpop.f32.mrf.mxu0 }
 0x24e   : > { %v1006_v23 = vsel %vm812_vm3, %v991_v22, -inf }
 0x24f   : > { %1007 = vmax.xlane.f32.xlu0 %v1006_v23  ;;  %v2473_v25 = vpop.f32.mrf.mxu0 }
 0x251   : > { %v994_v26 = vpop.f32.mrf.mxu0 }
 0x253   : > { %v2474_v27 = vpop.f32.mrf.mxu0 }
 0x258   : > { %518 = vrot.lane.b32.xlu1 %v3042_v42, %s2841_s29 }
 0x25d   : > { %v999_v28 = vpop.xlane.xlu0 %998 }
 0x25e   : > { %v1009_v29 = vsub.f32 %v853_v7, %v999_v28 }
 0x260   : > { %v1013_v30 = vmul.f32 1.442695, %v1009_v29 }
 0x262   : > { %2689 = vpow2.f32 %v1013_v30 }
 0x26f   : > { %v2690_v31 = vpop.eup %2689 }
 0x270   : > { %v1021_v32 = vsel %vm812_vm3, %v2690_v31, 0.0 }
 0x27c   : > { %1022 = vadd.xlane.f32.xlu1 %v1021_v32 }
 0x2d0   : > { %v1005_v33 = vpop.xlane.xlu0 %1004  ;;  %v1002_v34 = vpop.xlane.xlu1 %1001 }
 0x2d1   : > { %v1011_v35 = vsub.f32 %v945_v13, %v1005_v33  ;;  %v1010_v36 = vsub.f32 %v899_v12, %v1002_v34 }
 0x2d3   : > { %v1017_v37 = vmul.f32 1.442695, %v1011_v35  ;;  %v1015_v38 = vmul.f32 1.442695, %v1010_v36 }
 0x2d4   : > { %v519_v39 = vpop.permute.xlu1 %518 }
 0x2d5   : > { %2691 = vpow2.f32 %v1017_v37  ;;  %522 = vst.msk [vmem:[#allocation3 + $0x4] sm:$0xf] %vm431_vm2, %v519_v39 }
 0x2d6   : > { %2693 = vpow2.f32 %v1015_v38  ;;  %v1438_v38 = vld [vmem:[#allocation4] sm:$0xf] }
 0x2d8   : > { %v1008_v40 = vpop.xlane.xlu0 %1007 }
 0x2d9   : > { %v1012_v41 = vsub.f32 %v991_v22, %v1008_v40  ;;  %v1450_v40 = vsel %vm812_vm3, %v1438_v38, 0 }
 0x2db   : > { %v1019_v43 = vmul.f32 1.442695, %v1012_v41  ;;  %v2291_v41 = vld [vmem:[%s3323_s2 + $0x3] ss:$0 sm:$0xff] }
 0x2dc   : > { %v809_v44 = vld [vmem:[#allocation3 + $0x4] sm:$0xf] }
 0x2dd   : > { %2695 = vpow2.f32 %v1019_v43  ;;  %v1096_v45 = vsel %vm1048_vm4, %v809_v44, 0 }
 0x2de   : > { %2482 = vmatpush3.bf16.msra.mxu0 %v1096_v45 }
 0x2df   : > { %2493 = vmatprep.subr.bf16.mxu0 %v2838_v0 }
 0x2e2   : > { %v2692_v46 = vpop.eup %2691 }
 0x2e3   : > { %v2694_v47 = vpop.eup %2693  ;;  %v1027_v48 = vsel %vm812_vm3, %v2692_v46, 0.0 }
 0x2e4   : > { %1028 = vadd.xlane.f32.xlu1 %v1027_v48  ;;  %v1024_v50 = vsel %vm812_vm3, %v2694_v47, 0.0 }
 0x2e5   : > { %1025 = vadd.xlane.f32.xlu0 %v1024_v50 }
 0x2ea   : > { %v2696_v51 = vpop.eup %2695 }
 0x2eb   : > { %v1030_v52 = vsel %vm812_vm3, %v2696_v51, 0.0 }
 0x2ec   : > { %1031 = vadd.xlane.f32.xlu0 %v1030_v52 }
 0x2f5   : > { %528 = vrot.lane.b32.xlu1 %v3042_v42, %s2840_s28 }
 0x302   : > { %523 = vrot.lane.b32.xlu0 %v3042_v42, %s2842_s18 }
 0x305   : > { %v1023_v53 = vpop.xlane.xlu1 %1022 }
 0x306   : > { %2697 = vrcp.f32 %v1023_v53 }
 0x313   : > { %v2698_v54 = vpop.eup %2697 }
 0x314   : > { %v1037_v55 = vmul.f32 %v2698_v54, %v2690_v31 }
 0x316   : > { %v1041_v56 = vpack.c.bf16 %v1037_v55, %v1037_v55 }
 0x318   : > { %2478 = vmatmul.mubr.msk.bf16.vlgmr.msra.gmra.mxu1 %vm812_vm3, %v1041_v56 }
 0x319   : > { %2489 = vmatprep.mubr.msk.bf16.mxu1 %vm2839_vm0, %v2838_v0 }
 0x36d   : > { %v1029_v57 = vpop.xlane.xlu1 %1028 }
 0x36e   : > { %v1026_v58 = vpop.xlane.xlu0 %1025 }
 0x36f   : > { %2699 = vrcp.f32 %v1026_v58  ;;  %v2680_v58 = vld [vmem:[#allocation8 + $0x40] sm:$0xff]  }
 0x370   : > { %2701 = vrcp.f32 %v1029_v57  ;;  %v2679_v57 = vld [vmem:[#allocation8 + $0x48] sm:$0xff]  }
 0x371   : > { %v529_v59 = vpop.permute.xlu1 %528 }
 0x372   : > { %532 = vst.msk [vmem:[#allocation3 + $0xc] sm:$0xf] %vm431_vm2, %v529_v59 }
 0x375   : > { %v1032_v60 = vpop.xlane.xlu0 %1031 }
 0x376   : > { %2703 = vrcp.f32 %v1032_v60 }
 0x379   : > { %v524_v42 = vpop.permute.xlu0 %523  ;;  %v811_v1 = vld [vmem:[#allocation3 + $0xc] sm:$0xf] }
 0x37a   : > { %527 = vst.msk [vmem:[#allocation3 + $0x8] sm:$0xf] %vm431_vm2, %v524_v42  ;;  %v1188_v5 = vsel %vm1048_vm4, %v811_v1, 0  ;;  %v2296_v1 = vld [vmem:[%s3329_s8] ss:$0 sm:$0xff] }
 0x37c   : > { %v2700_v61 = vpop.eup %2699 }
 0x37d   : > { %v2702_v62 = vpop.eup %2701  ;;  %v1038_v63 = vmul.f32 %v2700_v61, %v2694_v47 }
 0x37e   : > { %v1039_v4 = vmul.f32 %v2702_v62, %v2692_v46 }
 0x37f   : > { %v1042_v2 = vpack.c.bf16 %v1038_v63, %v1038_v63 }
 0x380   : > { %v1043_v9 = vpack.c.bf16 %v1039_v4, %v1039_v4 }
 0x381   : > { %2484 = vmatmul.mubr.msk.bf16.vlgmr.msra.gmra.mxu0 %vm812_vm3, %v1042_v2  ;;  %v810_v6 = vld [vmem:[#allocation3 + $0x8] sm:$0xf] }
 0x382   : > { %2494 = vmatpush3.bf16.msra.mxu0 %v1188_v5  ;;  %v1142_v7 = vsel %vm1048_vm4, %v810_v6, 0  ;;  %2495 = vmatprep.mubr.msk.bf16.mxu0 %vm2839_vm0, %v2838_v0 }
 0x383   : > { %v2704_v8 = vpop.eup %2703  ;;  %2488 = vmatpush3.bf16.msra.mxu1 %v1142_v7  ;;  %2507 = vmatprep.subr.bf16.mxu0 %v2838_v0 }
 0x384   : > { %v1040_v10 = vmul.f32 %v2704_v8, %v2696_v51  ;;  %2499 = vmatprep.subr.bf16.mxu1 %v2838_v0  ;;  %v2297_v8 = vld [vmem:[%s3323_s2 + $0x4] ss:$0 sm:$0xff] }
 0x386   : > { %2490 = vmatmul.mubr.msk.bf16.vlgmr.msra.gmra.mxu1 %vm812_vm3, %v1043_v9  ;;  %v1044_v11 = vpack.c.bf16 %v1040_v10, %v1040_v10 }
 0x387   : > { %2503 = vmatprep.mubr.msk.bf16.mxu1 %vm2839_vm0, %v2838_v0  ;;  %2500 = vmatpush3.bf16.msra.mxu1 %v2677_v17 }
 0x388   : > { %2501 = vmatprep.subr.bf16.mxu1 %v2838_v0 }
 0x389   : > { %2496 = vmatmul.mubr.msk.bf16.vlgmr.msra.gmra.mxu0 %vm812_vm3, %v1044_v11 }
 0x38a   : > { %2511 = vmatprep.mubr.msk.bf16.mxu0 %vm2839_vm0, %v2838_v0  ;;  %2508 = vmatpush3.bf16.msra.mxu0 %v2679_v57 }
 0x38b   : > { %2502 = vmatpush3.bf16.msra.mxu1 %v2678_v18  ;;  %2509 = vmatprep.subr.bf16.mxu0 %v2838_v0 }
 0x38c   : > { %2515 = vmatprep.subr.bf16.mxu1 %v2838_v0 }
 0x38e   : > { %2510 = vmatpush3.bf16.msra.mxu0 %v2680_v58 }
 0x38f   : > { %2521 = vmatprep.subr.bf16.mxu0 %v2838_v0 }
 0x3d8   : > { %v1086_v12 = vpop.f32.mrf.mxu1 }
 0x3d9   : > { %v1230_v13 = vpack.c.bf16 %v1086_v12, %v1086_v12 }
 0x3da   : > { %v2479_v14 = vpop.f32.mrf.mxu1 }
 0x3db   : > { %1234 = vst.msk [vmem:[#allocation7] sm:$0xf] %vm431_vm2, %v1230_v13 }
 0x3dc   : > { %v1089_v15 = vpop.f32.mrf.mxu1 }
 0x3de   : > { %v2480_v16 = vpop.f32.mrf.mxu1 }
 0x441   : > { %v1132_v19 = vpop.f32.mrf.mxu0 }
 0x442   : > { %v2340_v20 = vpack.c.bf16 %v1132_v19, %v1132_v19 }
 0x443   : > { %v2485_v21 = vpop.f32.mrf.mxu0 }
 0x444   : > { %1238 = vrot.lane.b32.xlu1 %v2340_v20, %s2843_s15 }
 0x445   : > { %v1135_v22 = vpop.f32.mrf.mxu0 }
 0x446   : > { %v1178_v23 = vpop.f32.mrf.mxu1 }
 0x447   : > { %v2486_v25 = vpop.f32.mrf.mxu0  ;;  %v2341_v26 = vpack.c.bf16 %v1178_v23, %v1178_v23  ;;  %v1442_v23 = vld [vmem:[#allocation5] sm:$0xf] }
 0x448   : > { %v2491_v27 = vpop.f32.mrf.mxu1 }
 0x449   : > { %v1224_v28 = vpop.f32.mrf.mxu0  ;;  %1246 = vrot.lane.b32.xlu0 %v2341_v26, %s2844_s16 }
 0x44a   : > { %v2342_v29 = vpack.c.bf16 %v1224_v28, %v1224_v28  ;;  %v1181_v30 = vpop.f32.mrf.mxu1  ;;  %v1682_v28 = vsel %vm1048_vm4, %v1442_v23, 0 }
 0x44b   : > { %v2497_v31 = vpop.f32.mrf.mxu0 }
 0x44c   : > { %1254 = vrot.lane.b32.xlu1 %v2342_v29, %s2845_s20  ;;  %v2492_v32 = vpop.f32.mrf.mxu1 }
 0x44d   : > { %v1227_v33 = vpop.f32.mrf.mxu0 }
 0x44f   : > { %v2498_v34 = vpop.f32.mrf.mxu0 }
 0x4b6   : > { %v1239_v35 = vpop.permute.xlu1 %1238 }
 0x4b7   : > { %1242 = vst.msk [vmem:[#allocation7] sm:$0xf] %vm1241_vm5, %v1239_v35 }
 0x4bb   : > { %v1247_v36 = vpop.permute.xlu0 %1246 }
 0x4bc   : > { %1250 = vst.msk [vmem:[#allocation7] sm:$0xf] %vm1249_vm6, %v1247_v36 }
 0x4be   : > { %v1255_v37 = vpop.permute.xlu1 %1254 }
 0x4bf   : > { %1258 = vst.msk [vmem:[#allocation7] sm:$0xf] %vm1257_vm7, %v1255_v37 }
 0x4c6   : > { %v1259_v39 = vld [vmem:[#allocation7] sm:$0xf] }
 0x4c7   : > { %2504 = vmatmul.mubr.msk.bf16.vlgmr.msra.gmra.mxu1 %vm386_vm1, %v1259_v39 }
 0x4c8   : > { %2516 = vmatpush3.bf16.xpose.msra.mxu1 %v1450_v40  ;;  %2517 = vmatprep.mubr.msk.bf16.mxu1 %vm2839_vm0, %v2838_v0 }
 0x4c9   : > { %2527 = vmatprep.subr.bf16.mxu1 %v2838_v0 }
 0x587   : > { %v1313_v43 = vpop.f32.mrf.mxu1 }
 0x588   : > { %v1314_v44 = vadd.f32 %v2291_v41, %v1313_v43 }
 0x589   : > { %v2505_v45 = vpop.f32.mrf.mxu1 }
 0x58a   : > { %v1319_v46 = vadd.f32 %v1314_v44, %v2984_v3 }
 0x58b   : > { %v1316_v47 = vpop.f32.mrf.mxu1 }
 0x58c   : > { %v1320_v48 = vsel %vm386_vm1, %v1319_v46, 0.0 }
 0x58d   : > { %1321 = vadd.xlane.f32.xlu0 %v1320_v48  ;;  %v2506_v50 = vpop.f32.mrf.mxu1 }
 0x5a3   : > { %600 = vrot.lane.b32.xlu0 %v3023_v24, %s2841_s29 }
 0x5a7   : > { %610 = vrot.lane.b32.xlu0 %v3023_v24, %s2840_s28 }
 0x616   : > { %v1322_v51 = vpop.xlane.xlu0 %1321 }
 0x617   : > { %v1324_v52 = vmul.f32 0.03125, %v1322_v51 }
 0x619   : > { %v1325_v53 = vsub.f32 %v1319_v46, %v1324_v52 }
 0x61a   : > { %v601_v54 = vpop.permute.xlu0 %600 }
 0x61b   : > { %604 = vst.msk [vmem:[#allocation4 + $0x4] sm:$0xf] %vm431_vm2, %v601_v54  ;;  %v1326_v55 = vmul.f32 %v1325_v53, %v1325_v53 }
 0x61d   : > { %v1327_v3 = vsel %vm386_vm1, %v1326_v55, 0.0 }
 0x61e   : > { %1328 = vadd.xlane.f32.xlu1 %v1327_v3  ;;  %v611_v56 = vpop.permute.xlu0 %610 }
 0x61f   : > { %614 = vst.msk [vmem:[#allocation4 + $0xc] sm:$0xf] %vm431_vm2, %v611_v56 }
 0x622   : > { %v1439_v5 = vld [vmem:[#allocation4 + $0x4] sm:$0xf] }
 0x623   : > { %v1496_v7 = vsel %vm812_vm3, %v1439_v5, 0 }
 0x626   : > { %v1441_v22 = vld [vmem:[#allocation4 + $0xc] sm:$0xf] }
 0x627   : > { %v1588_v27 = vsel %vm812_vm3, %v1441_v22, 0 }
 0x62f   : > { %605 = vrot.lane.b32.xlu1 %v3023_v24, %s2842_s18  ;;  %v2295_v24 = vld [vmem:[%s3328_s7] ss:$0 sm:$0xff] }
 0x6a7   : > { %v1329_v59 = vpop.xlane.xlu1 %1328 }
 0x6a8   : > { %v1330_v60 = vmul.f32 0.03125, %v1329_v59 }
 0x6aa   : > { %v1331_v42 = vadd.f32 1e-05, %v1330_v60 }
 0x6ab   : > { %v606_v61 = vpop.permute.xlu1 %605 }
 0x6ac   : > { %2705 = vrsqrt.f32 %v1331_v42  ;;  %609 = vst.msk [vmem:[#allocation4 + $0x8] sm:$0xf] %vm431_vm2, %v606_v61 }
 0x6b3   : > { %v1440_v16 = vld [vmem:[#allocation4 + $0x8] sm:$0xf] }
 0x6b4   : > { %v1542_v18 = vsel %vm812_vm3, %v1440_v16, 0 }
 0x6b9   : > { %v2706_v62 = vpop.eup %2705 }
 0x6ba   : > { %v1333_v63 = vmul.f32 %v2706_v62, %v1325_v53 }
 0x6bc   : > { %v1338_v2 = vmul.f32 %v2295_v24, %v1333_v63 }
 0x6be   : > { %v3148_v4 = vadd.f32 %v2296_v1, %v1338_v2 }
 0x6c0   : > { %v1344_v6 = vpack.c.bf16 %v3148_v4, %v3148_v4 }
 0x6c2   : > { %2512 = vmatmul.mubr.msk.bf16.vlgmr.msra.gmra.mxu0 %vm386_vm1, %v1344_v6 }
 0x6c3   : > { %2522 = vmatpush3.bf16.xpose.msra.mxu0 %v1496_v7  ;;  %2523 = vmatprep.mubr.msk.bf16.mxu0 %vm2839_vm0, %v2838_v0 }
 0x6c4   : > { %2533 = vmatprep.subr.bf16.mxu0 %v2838_v0 }
 0x782   : > { %v1410_v9 = vpop.f32.mrf.mxu0 }
 0x783   : > { %v1411_v10 = vadd.f32 %v2297_v8, %v1410_v9 }
 0x784   : > { %v2513_v11 = vpop.f32.mrf.mxu0 }
 0x785   : > { %v1416_v12 = vmul.f32 0.35355338, %v1411_v10 }
 0x786   : > { %v1413_v13 = vpop.f32.mrf.mxu0 }
 0x787   : > { %v1417_v14 = vpack.c.bf16 %v1416_v12, %v1416_v12 }
 0x788   : > { %v2514_v15 = vpop.f32.mrf.mxu0 }
 0x789   : > { %1418 = vst.msk [vmem:[#allocation6] sm:$0xf] %vm431_vm2, %v1417_v14  ;;  %1426 = vrot.lane.b32.xlu0 %v1417_v14, %s2842_s18  ;;  %1422 = vrot.lane.b32.xlu1 %v1417_v14, %s2841_s29 }
 0x78d   : > { %1430 = vrot.lane.b32.xlu1 %v1417_v14, %s2840_s28 }
 0x790   : > { %v1434_v17 = vld [vmem:[#allocation6] sm:$0xf] }
 0x791   : > { %2518 = vmatmul.mubr.msk.bf16.vlgmr.msra.gmra.mxu1 %vm812_vm3, %v1434_v17 }
 0x792   : > { %2528 = vmatpush3.bf16.xpose.msra.mxu1 %v1542_v18  ;;  %2529 = vmatprep.mubr.msk.bf16.mxu1 %vm2839_vm0, %v2838_v0 }
 0x793   : > { %2539 = vmatprep.subr.bf16.mxu1 %v2838_v0 }
 0x7fb   : > { %v1427_v19 = vpop.permute.xlu0 %1426  ;;  %v1423_v20 = vpop.permute.xlu1 %1422 }
 0x7fc   : > { %1429 = vst.msk [vmem:[#allocation6 + $0x8] sm:$0xf] %vm431_vm2, %v1427_v19  ;;  %1425 = vst.msk [vmem:[#allocation6 + $0x4] sm:$0xf] %vm431_vm2, %v1423_v20 }
 0x7ff   : > { %v1431_v21 = vpop.permute.xlu1 %1430 }
 0x800   : > { %1433 = vst.msk [vmem:[#allocation6 + $0xc] sm:$0xf] %vm431_vm2, %v1431_v21 }
 0x803   : > { %v1435_v25 = vld [vmem:[#allocation6 + $0x4] sm:$0xf]  ;;  %v1436_v26 = vld [vmem:[#allocation6 + $0x8] sm:$0xf] }
 0x804   : > { %2524 = vmatmul.mubr.msk.bf16.vlgmr.msra.gmra.mxu0 %vm812_vm3, %v1435_v25  ;;  %2530 = vmatmul.mubr.msk.bf16.vlgmr.msra.gmra.mxu1 %vm812_vm3, %v1436_v26 }
 0x805   : > { %2534 = vmatpush3.bf16.xpose.msra.mxu0 %v1588_v27  ;;  %2540 = vmatpush3.bf16.msra.mxu1 %v1682_v28 }
 0x806   : > { %2535 = vmatprep.mubr.msk.bf16.mxu0 %vm2839_vm0, %v2838_v0  ;;  %2545 = vmatprep.subr.bf16.mxu0 %v2838_v0 }
 0x807   : > { %2541 = vmatprep.mubr.msk.bf16.mxu1 %vm2839_vm0, %v2838_v0  ;;  %2551 = vmatprep.subr.bf16.mxu1 %v2838_v0  ;;  %v1437_v29 = vld [vmem:[#allocation6 + $0xc] sm:$0xf] }
 0x80c   : > { %2536 = vmatmul.mubr.msk.bf16.vlgmr.msra.gmra.mxu0 %vm812_vm3, %v1437_v29 }
 0x80d   : > { %2547 = vmatprep.mubr.msk.bf16.mxu0 %vm2839_vm0, %v2838_v0 }
 0x851   : > { %v1486_v30 = vpop.f32.mrf.mxu1 }
 0x852   : > { %v1630_v31 = vsel %vm812_vm3, %v1486_v30, -inf }
 0x853   : > { %1631 = vmax.xlane.f32.xlu0 %v1630_v31  ;;  %v2519_v32 = vpop.f32.mrf.mxu1 }
 0x855   : > { %v1489_v33 = vpop.f32.mrf.mxu1 }
 0x857   : > { %v2520_v34 = vpop.f32.mrf.mxu1 }
 0x8c4   : > { %v1532_v35 = vpop.f32.mrf.mxu0  ;;  %v1578_v36 = vpop.f32.mrf.mxu1 }
 0x8c5   : > { %v1636_v37 = vsel %vm812_vm3, %v1578_v36, -inf  ;;  %v1633_v38 = vsel %vm812_vm3, %v1532_v35, -inf }
 0x8c6   : > { %1637 = vmax.xlane.f32.xlu0 %v1636_v37  ;;  %v2531_v39 = vpop.f32.mrf.mxu1  ;;  %1634 = vmax.xlane.f32.xlu1 %v1633_v38  ;;  %v2525_v40 = vpop.f32.mrf.mxu0  ;;  %v2681_v38 = vld [vmem:[#allocation8 + $0x78] sm:$0xff]  }
 0x8c7   : > { %v2682_v40 = vld [vmem:[#allocation8 + $0x70] sm:$0xff]  }
 0x8c8   : > { %v1535_v41 = vpop.f32.mrf.mxu0  ;;  %v1581_v43 = vpop.f32.mrf.mxu1 }
 0x8ca   : > { %v2526_v44 = vpop.f32.mrf.mxu0  ;;  %v2532_v45 = vpop.f32.mrf.mxu1 }
 0x8cc   : > { %v1624_v46 = vpop.f32.mrf.mxu0 }
 0x8cd   : > { %v1639_v47 = vsel %vm812_vm3, %v1624_v46, -inf }
 0x8ce   : > { %1640 = vmax.xlane.f32.xlu0 %v1639_v47  ;;  %v2537_v48 = vpop.f32.mrf.mxu0 }
 0x8d0   : > { %v1627_v50 = vpop.f32.mrf.mxu0 }
 0x8d2   : > { %v2538_v51 = vpop.f32.mrf.mxu0 }
 0x8d7   : > { %682 = vrot.lane.b32.xlu1 %v3049_v49, %s2841_s29 }
 0x8dc   : > { %v1632_v52 = vpop.xlane.xlu0 %1631 }
 0x8dd   : > { %v1642_v53 = vsub.f32 %v1486_v30, %v1632_v52 }
 0x8df   : > { %v1646_v54 = vmul.f32 1.442695, %v1642_v53 }
 0x8e1   : > { %2707 = vpow2.f32 %v1646_v54 }
 0x8ee   : > { %v2708_v55 = vpop.eup %2707 }
 0x8ef   : > { %v1654_v3 = vsel %vm812_vm3, %v2708_v55, 0.0 }
 0x8fb   : > { %1655 = vadd.xlane.f32.xlu1 %v1654_v3 }
 0x94f   : > { %v1638_v56 = vpop.xlane.xlu0 %1637  ;;  %v1635_v57 = vpop.xlane.xlu1 %1634 }
 0x950   : > { %v1644_v58 = vsub.f32 %v1578_v36, %v1638_v56  ;;  %v1643_v59 = vsub.f32 %v1532_v35, %v1635_v57 }
 0x952   : > { %v1650_v60 = vmul.f32 1.442695, %v1644_v58  ;;  %v1648_v42 = vmul.f32 1.442695, %v1643_v59 }
 0x953   : > { %v683_v61 = vpop.permute.xlu1 %682 }
 0x954   : > { %2709 = vpow2.f32 %v1650_v60  ;;  %686 = vst.msk [vmem:[#allocation5 + $0x4] sm:$0xf] %vm431_vm2, %v683_v61  ;;  %v2313_v60 = vld [vmem:[%s3323_s2 + $0x7] ss:$0 sm:$0xff] }
 0x955   : > { %2711 = vpow2.f32 %v1648_v42 }
 0x957   : > { %v1641_v62 = vpop.xlane.xlu0 %1640 }
 0x958   : > { %v1645_v24 = vsub.f32 %v1624_v46, %v1641_v62 }
 0x95a   : > { %v1652_v63 = vmul.f32 1.442695, %v1645_v24 }
 0x95b   : > { %v1443_v1 = vld [vmem:[#allocation5 + $0x4] sm:$0xf] }
 0x95c   : > { %2713 = vpow2.f32 %v1652_v63  ;;  %v1728_v2 = vsel %vm1048_vm4, %v1443_v1, 0 }
 0x95d   : > { %2546 = vmatpush3.bf16.msra.mxu0 %v1728_v2 }
 0x95e   : > { %2557 = vmatprep.subr.bf16.mxu0 %v2838_v0 }
 0x961   : > { %v2710_v5 = vpop.eup %2709 }
 0x962   : > { %v2712_v6 = vpop.eup %2711  ;;  %v1660_v7 = vsel %vm812_vm3, %v2710_v5, 0.0 }
 0x963   : > { %1661 = vadd.xlane.f32.xlu1 %v1660_v7  ;;  %v1657_v8 = vsel %vm812_vm3, %v2712_v6, 0.0 }
 0x964   : > { %1658 = vadd.xlane.f32.xlu0 %v1657_v8 }
 0x969   : > { %v2714_v9 = vpop.eup %2713 }
 0x96a   : > { %v1663_v10 = vsel %vm812_vm3, %v2714_v9, 0.0 }
 0x96b   : > { %1664 = vadd.xlane.f32.xlu0 %v1663_v10  ;;  %v2683_v10 = vld [vmem:[%s3324_s3 + $0x8] sm:$0xff]  }
 0x974   : > { %692 = vrot.lane.b32.xlu1 %v3049_v49, %s2840_s28  ;;  %s350_s28 = sand.u32 1, %s2817_s10  }
 0x975   : > { %s2253_s29 = sshll.u32 %s350_s28, 3  ;;  %s2150_s1 = scalar_lea.sflag [#allocation10], %s350_s28 }
 0x976   : > { %s352_s27 = scalar_lea.vmem [#allocation11], %s2253_s29 }
 0x977   : > { %s2164_s23 = sshll.u32 %s352_s27, 4  ;;  %s2165_s23 = int_to_ptr.vmem [resolvable:$true] %s2164_s23 }
 0x981   : > { %687 = vrot.lane.b32.xlu0 %v3049_v49, %s2842_s18  ;;  %s2753_s18 = scalar_lea.vmem %s2165_s23, 128 }
 0x982   : > { %p2754_p10 = scmp.ne.s32.totalorder %s2165_s23, %s2753_s18 }
 0x984   : > { %v1656_v11 = vpop.xlane.xlu1 %1655  ;;  %p2755_p11 = pnand %p2754_p10, %p2937_p4 }
 0x985   : > { %2715 = vrcp.f32 %v1656_v11  ;;  %v2685_v11 = vld [vmem:[%s3326_s5 + $0x18] sm:$0xff]  }
 0x986   : > { %p2756_p13 = pneg %p2755_p11 }
 0x992   : > { %v2716_v12 = vpop.eup %2715 }
 0x993   : > { %v1670_v13 = vmul.f32 %v2716_v12, %v2708_v55  ;;  %v2686_v12 = vld [vmem:[%s3326_s5 + $0x10] sm:$0xff]  }
 0x995   : > { %v1674_v14 = vpack.c.bf16 %v1670_v13, %v1670_v13 }
 0x997   : > { %2542 = vmatmul.mubr.msk.bf16.vlgmr.msra.gmra.mxu1 %vm812_vm3, %v1674_v14 }
 0x998   : > { %2553 = vmatprep.mubr.msk.bf16.mxu1 %vm2839_vm0, %v2838_v0 }
 0x9ec   : > { %v1662_v15 = vpop.xlane.xlu1 %1661 }
 0x9ed   : > { %v1659_v16 = vpop.xlane.xlu0 %1658 }
 0x9ee   : > { %2717 = vrcp.f32 %v1659_v16 }
 0x9ef   : > { %2719 = vrcp.f32 %v1662_v15 }
 0x9f0   : > { %v693_v17 = vpop.permute.xlu1 %692 }
 0x9f1   : > { %696 = vst.msk [vmem:[#allocation5 + $0xc] sm:$0xf] %vm431_vm2, %v693_v17  ;;  %v2317_v17 = vld [vmem:[%s3328_s7 + $0x1] ss:$0 sm:$0xff] }
 0x9f4   : > { %v1665_v18 = vpop.xlane.xlu0 %1664 }
 0x9f5   : > { %2721 = vrcp.f32 %v1665_v18 }
 0x9f8   : > { %v688_v49 = vpop.permute.xlu0 %687  ;;  %v1445_v22 = vld [vmem:[#allocation5 + $0xc] sm:$0xf] }
 0x9f9   : > { %691 = vst.msk [vmem:[#allocation5 + $0x8] sm:$0xf] %vm431_vm2, %v688_v49  ;;  %v1820_v26 = vsel %vm1048_vm4, %v1445_v22, 0  ;;  %v2318_v49 = vld [vmem:[%s3329_s8 + $0x1] ss:$0 sm:$0xff]  ;;  %v2687_v22 = vld [vmem:[%s3326_s5 + $0x8] sm:$0xff]  }
 0x9fb   : > { %v2718_v19 = vpop.eup %2717 }
 0x9fc   : > { %v2720_v20 = vpop.eup %2719  ;;  %v1671_v21 = vmul.f32 %v2718_v19, %v2712_v6 }
 0x9fd   : > { %v1672_v25 = vmul.f32 %v2720_v20, %v2710_v5 }
 0x9fe   : > { %v1675_v23 = vpack.c.bf16 %v1671_v21, %v1671_v21 }
 0x9ff   : > { %v1676_v30 = vpack.c.bf16 %v1672_v25, %v1672_v25  ;;  %v2319_v25 = vld [vmem:[%s3325_s4] ss:$0 sm:$0xff] }
 0xa00   : > { %2548 = vmatmul.mubr.msk.bf16.vlgmr.msra.gmra.mxu0 %vm812_vm3, %v1675_v23  ;;  %v1444_v27 = vld [vmem:[#allocation5 + $0x8] sm:$0xf]  ;;  %v2688_v23 = vld [vmem:[%s3326_s5] sm:$0xff]  }
 0xa01   : > { %2558 = vmatpush3.bf16.msra.mxu0 %v1820_v26  ;;  %v1774_v28 = vsel %vm1048_vm4, %v1444_v27, 0  ;;  %2559 = vmatprep.mubr.msk.bf16.mxu0 %vm2839_vm0, %v2838_v0 }
 0xa02   : > { %v2722_v29 = vpop.eup %2721  ;;  %2552 = vmatpush3.bf16.msra.mxu1 %v1774_v28  ;;  %2571 = vmatprep.subr.bf16.mxu0 %v2838_v0 }
 0xa03   : > { %v1673_v31 = vmul.f32 %v2722_v29, %v2714_v9  ;;  %2563 = vmatprep.subr.bf16.mxu1 %v2838_v0 }
 0xa05   : > { %2554 = vmatmul.mubr.msk.bf16.vlgmr.msra.gmra.mxu1 %vm812_vm3, %v1676_v30  ;;  %v1677_v32 = vpack.c.bf16 %v1673_v31, %v1673_v31 }
 0xa06   : > { %2567 = vmatprep.mubr.msk.bf16.mxu1 %vm2839_vm0, %v2838_v0  ;;  %2564 = vmatpush3.bf16.msra.mxu1 %v2681_v38 }
 0xa07   : > { %2565 = vmatprep.subr.bf16.mxu1 %v2838_v0 }
 0xa08   : > { %2560 = vmatmul.mubr.msk.bf16.vlgmr.msra.gmra.mxu0 %vm812_vm3, %v1677_v32 }
 0xa09   : > { %2575 = vmatprep.mubr.msk.bf16.mxu0 %vm2839_vm0, %v2838_v0  ;;  %2572 = vmatpush3.bf16.msra.mxu0 %v2683_v10 }
 0xa0a   : > { %2566 = vmatpush3.bf16.msra.mxu1 %v2682_v40  ;;  %2573 = vmatprep.subr.bf16.mxu0 %v2838_v0 }
 0xa0b   : > { %2579 = vmatprep.subr.bf16.mxu1 %v2838_v0 }
 0xa57   : > { %v1718_v33 = vpop.f32.mrf.mxu1 }
 0xa58   : > { %v1862_v34 = vpack.c.bf16 %v1718_v33, %v1718_v33 }
 0xa59   : > { %v2543_v35 = vpop.f32.mrf.mxu1 }
 0xa5a   : > { %1866 = vst.msk [vmem:[#allocation7] sm:$0xf] %vm431_vm2, %v1862_v34 }
 0xa5b   : > { %v1721_v36 = vpop.f32.mrf.mxu1 }
 0xa5d   : > { %v2544_v37 = vpop.f32.mrf.mxu1 }
 0xac0   : > { %v1764_v39 = vpop.f32.mrf.mxu0 }
 0xac1   : > { %v2344_v41 = vpack.c.bf16 %v1764_v39, %v1764_v39 }
 0xac2   : > { %v2549_v43 = vpop.f32.mrf.mxu0 }
 0xac3   : > { %1870 = vrot.lane.b32.xlu1 %v2344_v41, %s2843_s15  ;;  %s2846_s15 = smov [#allocation11]  }
 0xac4   : > { %v1767_v44 = vpop.f32.mrf.mxu0 }
 0xac5   : > { %v1810_v45 = vpop.f32.mrf.mxu1 }
 0xac6   : > { %v2550_v46 = vpop.f32.mrf.mxu0  ;;  %v2345_v47 = vpack.c.bf16 %v1810_v45, %v1810_v45 }
 0xac7   : > { %v2555_v48 = vpop.f32.mrf.mxu1 }
 0xac8   : > { %v1856_v50 = vpop.f32.mrf.mxu0  ;;  %1877 = vrot.lane.b32.xlu0 %v2345_v47, %s2844_s16  ;;  %s2757_s16 = sshll.u32 %s2846_s15, 4  ;;  %s2758_s16 = int_to_ptr.vmem [resolvable:$false] %s2757_s16 }
 0xac9   : > { %v2346_v51 = vpack.c.bf16 %v1856_v50, %v1856_v50  ;;  %v1813_v52 = vpop.f32.mrf.mxu1  ;;  %s2759_s12 = scalar_lea.vmem %s2758_s16, 256  ;;  %p2760_p0 = scmp.lt.s32.totalorder %s2165_s23, %s2758_s16 }
 0xaca   : > { %v2561_v53 = vpop.f32.mrf.mxu0  ;;  %p2761_p1 = scmp.lt.s32.totalorder %s2759_s12, %s2753_s18 }
 0xacb   : > { %1884 = vrot.lane.b32.xlu1 %v2346_v51, %s2845_s20  ;;  %v2556_v54 = vpop.f32.mrf.mxu1  ;;  %v2329_v51 = vld [vmem:[%s3328_s7 + $0x2] ss:$0 sm:$0xff] }
 0xacc   : > { %v1859_v55 = vpop.f32.mrf.mxu0  ;;  %v2330_v53 = vld [vmem:[%s3329_s8 + $0x2] ss:$0 sm:$0xff]  ;;  %p2762_p2 = por %p2761_p1, %p2760_p0 }
 0xace   : > { %v2562_v3 = vpop.f32.mrf.mxu0  ;;  %p2763_p3 = pnand %p2762_p2, %p2756_p13 }
 0xb35   : > { %v1871_v56 = vpop.permute.xlu1 %1870 }
 0xb36   : > { %1873 = vst.msk [vmem:[#allocation7] sm:$0xf] %vm1241_vm5, %v1871_v56 }
 0xb3a   : > { %v1878_v57 = vpop.permute.xlu0 %1877 }
 0xb3b   : > { %1880 = vst.msk [vmem:[#allocation7] sm:$0xf] %vm1249_vm6, %v1878_v57 }
 0xb3d   : > { %v1885_v58 = vpop.permute.xlu1 %1884 }
 0xb3e   : > { %1887 = vst.msk [vmem:[#allocation7] sm:$0xf] %vm1257_vm7, %v1885_v58 }
 0xb45   : > { %v1888_v59 = vld [vmem:[#allocation7] sm:$0xf] }
 0xb46   : > { %2568 = vmatmul.mubr.msk.bf16.vlgmr.msra.gmra.mxu1 %vm386_vm1, %v1888_v59 }
 0xb47   : > { %2587 = vmatprep.mubr.msk.bf16.mxu1 %vm2839_vm0, %v2838_v0  ;;  %2580 = vmatpush3.bf16.msra.mxu1 %v2685_v11 }
 0xb48   : > { %2581 = vmatprep.subr.bf16.mxu1 %v2838_v0 }
 0xb4b   : > { %2582 = vmatpush3.bf16.msra.mxu1 %v2686_v12 }
 0xb4c   : > { %2583 = vmatprep.subr.bf16.mxu1 %v2838_v0 }
 0xb4f   : > { %2584 = vmatpush3.bf16.msra.mxu1 %v2687_v22 }
 0xb50   : > { %2585 = vmatprep.subr.bf16.mxu1 %v2838_v0  ;;  %v2323_v0 = vld [vmem:[%s3327_s6] ss:$0 sm:$0xff] }
 0xb53   : > { %2586 = vmatpush3.bf16.msra.mxu1 %v2688_v23 }
 0xc06   : > { %v1942_v42 = vpop.f32.mrf.mxu1 }
 0xc07   : > { %v1943_v61 = vadd.f32 %v2313_v60, %v1942_v42 }
 0xc08   : > { %v2569_v62 = vpop.f32.mrf.mxu1 }
 0xc09   : > { %v1948_v24 = vadd.f32 %v1943_v61, %v3148_v4  ;;  %v2684_v4 = vld [vmem:[%s3324_s3] sm:$0xff]  }
 0xc0a   : > { %v1945_v63 = vpop.f32.mrf.mxu1  ;;  %2574 = vmatpush3.bf16.msra.mxu0 %v2684_v4 }
 0xc0b   : > { %v1949_v1 = vsel %vm386_vm1, %v1948_v24, 0.0 }
 0xc0c   : > { %1950 = vadd.xlane.f32.xlu0 %v1949_v1  ;;  %v2570_v2 = vpop.f32.mrf.mxu1 }
 0xc95   : > { %v1951_v5 = vpop.xlane.xlu0 %1950 }
 0xc96   : > { %v1952_v6 = vmul.f32 0.03125, %v1951_v5 }
 0xc98   : > { %v1953_v7 = vsub.f32 %v1948_v24, %v1952_v6 }
 0xc9a   : > { %v1954_v8 = vmul.f32 %v1953_v7, %v1953_v7 }
 0xc9c   : > { %v1955_v9 = vsel %vm386_vm1, %v1954_v8, 0.0 }
 0xc9d   : > { %1956 = vadd.xlane.f32.xlu1 %v1955_v9 }
 0xd26   : > { %v1957_v13 = vpop.xlane.xlu1 %1956 }
 0xd27   : > { %v1958_v14 = vmul.f32 0.03125, %v1957_v13 }
 0xd29   : > { %v1959_v15 = vadd.f32 1e-05, %v1958_v14 }
 0xd2b   : > { %2723 = vrsqrt.f32 %v1959_v15 }
 0xd38   : > { %v2724_v16 = vpop.eup %2723 }
 0xd39   : > { %v1961_v18 = vmul.f32 %v2724_v16, %v1953_v7 }
 0xd3b   : > { %v1966_v19 = vmul.f32 %v2317_v17, %v1961_v18 }
 0xd3d   : > { %v1971_v20 = vadd.f32 %v2318_v49, %v1966_v19 }
 0xd3f   : > { %v1972_v21 = vpack.c.bf16 %v1971_v20, %v1971_v20 }
 0xd41   : > { %2576 = vmatmul.mubr.msk.bf16.vlgmr.msra.gmra.mxu0 %vm386_vm1, %v1972_v21 }
 0xe01   : > { %v2033_v26 = vpop.f32.mrf.mxu0 }
 0xe02   : > { %v2034_v27 = vadd.f32 %v2319_v25, %v2033_v26 }
 0xe03   : > { %v2577_v28 = vpop.f32.mrf.mxu0 }
 0xe04   : > { %v2039_v29 = vmax.f32 %v2034_v27, 0.0 }
 0xe05   : > { %v2036_v30 = vpop.f32.mrf.mxu0 }
 0xe06   : > { %v2040_v31 = vpack.c.bf16 %v2039_v29, %v2039_v29 }
 0xe07   : > { %v2578_v32 = vpop.f32.mrf.mxu0 }
 0xe08   : > { %2588 = vmatmul.mubr.msk.bf16.vlgmr.msra.gmra.mxu1 %vm2080_vm8, %v2040_v31 }
 0xec8   : > { %v2118_v33 = vpop.f32.mrf.mxu1 }
 0xec9   : > { %v2119_v34 = vadd.f32 %v2323_v0, %v2118_v33 }
 0xeca   : > { %v2589_v35 = vpop.f32.mrf.mxu1 }
 0xecb   : > { %v2124_v36 = vadd.f32 %v2119_v34, %v1971_v20 }
 0xecc   : > { %v2121_v37 = vpop.f32.mrf.mxu1 }
 0xecd   : > { %v2125_v38 = vsel %vm386_vm1, %v2124_v36, 0.0 }
 0xece   : > { %2126 = vadd.xlane.f32.xlu0 %v2125_v38  ;;  %v2590_v39 = vpop.f32.mrf.mxu1 }
 0xf57   : > { %v2127_v40 = vpop.xlane.xlu0 %2126 }
 0xf58   : > { %v2128_v41 = vmul.f32 0.03125, %v2127_v40 }
 0xf5a   : > { %v2129_v43 = vsub.f32 %v2124_v36, %v2128_v41 }
 0xf5c   : > { %v2130_v44 = vmul.f32 %v2129_v43, %v2129_v43 }
 0xf5e   : > { %v2131_v45 = vsel %vm386_vm1, %v2130_v44, 0.0 }
 0xf5f   : > { %2132 = vadd.xlane.f32.xlu0 %v2131_v45 }
 0xfe8   : > { %v2133_v46 = vpop.xlane.xlu0 %2132 }
 0xfe9   : > { %v2134_v47 = vmul.f32 0.03125, %v2133_v46 }
 0xfeb   : > { %v2135_v48 = vadd.f32 1e-05, %v2134_v47 }
 0xfed   : > { %2725 = vrsqrt.f32 %v2135_v48 }
 0xffa   : > { %v2726_v50 = vpop.eup %2725 }
 0xffb   : > { %v2137_v52 = vmul.f32 %v2726_v50, %v2129_v43 }
 0xffd   : > { %v2142_v54 = vmul.f32 %v2329_v51, %v2137_v52 }
 0xfff   : > { %v2147_v55 = vadd.f32 %v2330_v53, %v2142_v54 }
0x1001   : > { %2148 = vst.msk [vmem:[%s352_s27] sm:$0xff] %vm386_vm1, %v2147_v55 }
0x1002   : > { %2766 = shalt.err (!%p2763_p3)
}
0x1003   : > { %s2767_s29 = scalar_lea.hbm %s2162_s0, 128  ;;  %s2771_s26 = scalar_lea.hbm %s3330_s9, 256 }
0x1004   : > { %p2768_p5 = scmp.ne.s32.totalorder %s2162_s0, %s2767_s29  ;;  %p2772_p9 = scmp.lt.s32.totalorder %s2162_s0, %s3330_s9 }
0x1005   : > { %p2773_p12 = scmp.lt.s32.totalorder %s2771_s26, %s2767_s29 }
0x1006   : > { %p2769_p6 = pnand %p2768_p5, %p2937_p4 }
0x1007   : > { %p2774_p10 = por %p2773_p12, %p2772_p9 }
0x1008   : > { %p2770_p7 = pneg %p2769_p6 }
0x100a   : > { %p2775_p11 = pnand %p2774_p10, %p2770_p7 }
0x100c   : > { %2778 = shalt.err (!%p2775_p11)
}
0x100d   : > { %2595 = dma.vmem_to_hbm [thread:$0]  (%p2937_p4), %s2165_s23, 128, %s2162_s0, %s2150_s1  }
0x100e PF: > { %p2607_p13 = scmp.ge.s32.totalorder %s2833_s14, 2  ;;  %s2176_s25 = sand.u32 1, %s2813_s30  }
0x100f   : > { %s2177_s18 = scalar_lea.sflag [#allocation10], %s2176_s25 }
0x1010   : > { %p2602_p0 = pnand %p2607_p13, %p2944_p8 }
0x1012   : > { %p2603_p1 = pneg %p2602_p0 }
0x1014   : > { %2808 = dma.done.wait (%p2603_p1), %s2177_s18, 128  }
0x1015   : > { %2810 = vsyncadd (%p2603_p1), %s2177_s18, 4294967168  ;;  %s23_s14 = sadd.s32 1, %s2833_s14   ;;  %s3339_s30 = smov %s2817_s10 }
0x1016   : > { %p20_p2 = scmp.ge.s32.totalorder %s23_s14, 4   ;;  %s3340_s10 = smov %s2821_s11 }
0x1017   : > { %s3341_s11 = smov %s2950_s22  ;;  %s3342_s12 = smov %s2829_s13 }
0x1018   : > { %s3343_s13 = smov %s3345_s17  ;;  %22 = sbr.rel (!%p20_p2) target bundleno = 8 (0x8), region = 123 }
0x101d   :  { %2182 = vsyncpa [#allocation9], 1 }
0x101e   :  { %2184 = vsyncpa [#allocation9 + $0x1], 1 }
0x101f   :  { %2185 = vsyncpa [#allocation10], 1 }
0x1020   :  { %2187 = vsyncpa [#allocation10 + $0x1], 1 }

// kernel: tpu_custom_call.1
= control target key start
LH: loop header
LB: loop body
LE: loop exit
PB: predicated region body
PF: predicated region fallthrough
CT: control target
= control target key end

     0   :  { %s3321_s0 = inlined_call_operand.vmem [shape: f32[2,8,32], index: 0, kind: input, shape index: {}]   ;;  %s3322_s1 = inlined_call_operand.hbm [shape: bf16[8,32,32], index: 1, kind: input, shape index: {}]   ;;  %s3323_s2 = inlined_call_operand.vmem [shape: f32[8,32], index: 2, kind: input, shape index: {}]   ;;  %s3324_s3 = inlined_call_operand.vmem [shape: bf16[32,64], index: 3, kind: input, shape index: {}]   ;;  %s3325_s4 = inlined_call_operand.vmem [shape: f32[1,64], index: 4, kind: input, shape index: {}]   ;;  %s3326_s5 = inlined_call_operand.vmem [shape: bf16[64,32], index: 5, kind: input, shape index: {}]   ;;  %s3327_s6 = inlined_call_operand.vmem [shape: f32[1,32], index: 6, kind: input, shape index: {}]   ;;  %s3328_s7 = inlined_call_operand.vmem [shape: f32[3,32], index: 7, kind: input, shape index: {}]   ;;  %s3329_s8 = inlined_call_operand.vmem [shape: f32[3,32], index: 8, kind: input, shape index: {}]   ;;  %s3330_s9 = inlined_call_operand.hbm [shape: f32[2,8,32], index: 9, kind: output, shape index: {}]  }
   0x1   :  { %3331 = sst [smem:[#allocation14_spill]] %s3321_s0 }
   0x2   :  { %3332 = sst [smem:[#allocation15_spill]] %s3322_s1 }
   0x3   :  { %14 = vsyncpa [#allocation9], 0 }
   0x4   :  { %15 = vsyncpa [#allocation10], 0 }
   0x5   :  { %17 = vsyncpa [#allocation10 + $0x1], 0  ;;  %s2897_s30 = smov 0   ;;  %s2899_s10 = smov 0  }
   0x6   :  { %s2901_s11 = smov 0   ;;  %s2903_s12 = smov 0  }
   0x7   :  { %s2905_s13 = smov 0   ;;  %s2907_s14 = smov 0  }
   0x8 LB: > { %s2246_s15 = sadd.s32 4294967295, %s2833_s14   ;;  %s2247_s16 = sadd.s32 4294967294, %s2833_s14   ;;  %s2833_s14 = sphi %s2907_s14, %s23_s14   ;;  %s2829_s13 = sphi %s2905_s13, %s3343_s13   ;;  %s2825_s12 = sphi %s2903_s12, %s3342_s12   ;;  %s2821_s11 = sphi %s2901_s11, %s3341_s11   ;;  %s2817_s10 = sphi %s2899_s10, %s3340_s10   ;;  %s2813_s30 = sphi %s2897_s30, %s3339_s30  }
   0x9   : > { %s35_s17 = sadd.s32 1, %s2829_s13  ;;  %s238_s18 = sadd.s32 1, %s2821_s11 }
   0xa   : > { %p37_p0 = scmp.ge.s32.totalorder %s35_s17, 2  ;;  %p248_p1 = scmp.ne.s32.totalorder %s2821_s11, %s2817_s10 }
   0xb   : > { %p249_p2 = scmp.eq.s32.totalorder %s2246_s15, 1  ;;  %p254_p3 = scmp.ne.s32.totalorder %s2817_s10, %s2813_s30 }
   0xc   : > { %s3345_s17 = smov (%p37_p0, %s35_s17), 0  ;;  %p255_p5 = scmp.eq.s32.totalorder %s2247_s16, 1 }
   0xd   : > { %p2937_p4 = por %p249_p2, %p248_p1  ;;  %s233_s20 = ssub.s32 %s2829_s13, %s3345_s17 }
   0xe   : > { %p2248_p6 = scmp.ge.s32.totalorder %s2833_s14, 1  ;;  %p236_p7 = scmp.eq.s32.totalorder %s233_s20, 0 }
   0xf   : > { %p2944_p8 = por %p255_p5, %p254_p3  ;;  %p262_p9 = scmp.lt.s32.totalorder %s2833_s14, 3 }
  0x10   : > { %s2950_s22 = scalar_select %p236_p7, %s2821_s11, %s238_s18  }
  0x11   : > { %p2952_p10 = pnand %p2248_p6, %p262_p9  ;;  %p2956_p11 = scmp.eq.s32.totalorder %s2246_s15, 0 }
  0x12   : > { %s2835_s25 = smov [#allocation8]  }
  0x13   : > { %p2597_p12 = pneg %p2952_p10  ;;  %s274_s26 = sshll.u32 %s2835_s25, 4  ;;  %s275_s26 = int_to_ptr.vmem [resolvable:$true] %s274_s26 }
  0x14   : > { %s2738_s27 = scalar_lea.vmem %s275_s26, 2048  ;;  %p2746_p5 = scmp.lt.s32.totalorder %s275_s26, %s275_s26 }
  0x15   : > { %p2598_p13 = pnand %p2956_p11, %p2597_p12  ;;  %p2739_p1 = scmp.ne.s32.totalorder %s275_s26, %s2738_s27 }
  0x16   : > { %p2747_p6 = scmp.lt.s32.totalorder %s2738_s27, %s2738_s27 }
  0x17   : > { %p2729_p0 = pneg %p2598_p13 }
  0x18   : > { %p2748_p7 = por %p2747_p6, %p2746_p5 }
  0x19   : > { %p2741_p2 = pnand %p2739_p1, %p2729_p0 }
  0x1b   : > { %p2742_p3 = pneg %p2741_p2 }
  0x1d   : > { %p2749_p9 = pnand %p2748_p7, %p2742_p3 }
  0x1f   : > { %2752 = shalt.err (!%p2749_p9)
}
  0x20   : > { %s2836_s28 = smov 64   ;;  %s2837_s29 = smov 4  }
  0x21   : > { %s3337_s1 = sld [smem:[#allocation15_spill]] }
  0x23   : > { %318 = sbr.rel (%p2952_p10) target bundleno = 4110 (0x100e), region = 56 }
  0x27   : > { %2600 = dma.hbm_to_vmem [thread:$0]  (!%p2598_p13), %s3337_s1, 2048, %s275_s26, [#allocation9], %s2836_s28, %s2836_s28, %s2837_s29  }
  0x28   : > { %2804 = dma.done.wait (%p2956_p11), [#allocation9], 2048  }
  0x29   : > { %2806 = vsyncadd (%p2956_p11), [#allocation9], 4294965248  ;;  %p353_p12 = scmp.lt.s32.totalorder %s2825_s12, 1  ;;  %v2838_v0 = vmov 0.0   ;;  %vm2839_vm0 = vmmov 0   ;;  %s3338_s0 = sld [smem:[#allocation14_spill]] }
  0x2a   : > { %2411 = vmatprep.subr.bf16.mxu0 %v2838_v0  ;;  %2415 = vmatprep.mubr.msk.bf16.mxu0 %vm2839_vm0, %v2838_v0  ;;  %v2667_v1 = vld [vmem:[#allocation8 + $0x18] sm:$0xff]   ;;  %v2668_v2 = vld [vmem:[#allocation8 + $0x10] sm:$0xff]   ;;  %vm386_vm1 = vcmask 261120   ;;  %v2673_v6 = vld [vmem:[#allocation8 + $0x28] sm:$0xff]   ;;  %vm431_vm2 = vcmask 60416   ;;  %s2840_s28 = smov 104  }
  0x2b   : > { %s354_s18 = scalar_select %p353_p12, %s2825_s12, 1  ;;  %2419 = vmatprep.subr.bf16.mxu1 %v2838_v0  ;;  %2423 = vmatprep.mubr.msk.bf16.mxu1 %vm2839_vm0, %v2838_v0  ;;  %v2669_v5 = vld [vmem:[#allocation8 + $0x58] sm:$0xff]   ;;  %v2670_v7 = vld [vmem:[#allocation8 + $0x50] sm:$0xff]   ;;  %v2671_v8 = vld [vmem:[#allocation8 + $0x8] sm:$0xff]   ;;  %vm812_vm3 = vcmask 64512   ;;  %vm1048_vm4 = vcmask 1043456  }
  0x2c   : > { %2412 = vmatpush3.bf16.msra.mxu0 %v2667_v1  ;;  %2420 = vmatpush3.bf16.msra.mxu1 %v2673_v6  ;;  %v2672_v9 = vld [vmem:[#allocation8] sm:$0xff]   ;;  %v2675_v11 = vld [vmem:[#allocation8 + $0x68] sm:$0xff]   ;;  %s2841_s29 = smov 120   ;;  %v2265_v20 = vld [vmem:[%s3323_s2 + $0x5] ss:$0 sm:$0xff]  ;;  %s2843_s15 = smov 8  }
  0x2d   : > { %s2254_s20 = sshll.u32 %s354_s18, 3  ;;  %2413 = vmatprep.subr.bf16.mxu0 %v2838_v0  ;;  %2421 = vmatprep.subr.bf16.mxu1 %v2838_v0  ;;  %v2674_v10 = vld [vmem:[#allocation8 + $0x20] sm:$0xff]   ;;  %v2255_v13 = vld [vmem:[%s3323_s2 + $0x1] ss:$0 sm:$0xff]  ;;  %s2842_s18 = smov 112   ;;  %vm1241_vm5 = vcmask 126016  }
  0x2e   : > { %v2676_v12 = vld [vmem:[#allocation8 + $0x60] sm:$0xff]   ;;  %v2275_v29 = vld [vmem:[%s3323_s2] ss:$0 sm:$0xff]  ;;  %v2260_v38 = vld [vmem:[%s3323_s2 + $0x2] ss:$0 sm:$0xff]  ;;  %s2844_s16 = smov 16  }
  0x2f   : > { %s356_s25 = scalar_lea.vmem %s3338_s0, %s2254_s20  ;;  %v2270_v45 = vld [vmem:[%s3323_s2 + $0x6] ss:$0 sm:$0xff]  ;;  %s2845_s20 = smov 24   ;;  %vm1249_vm6 = vcmask 191616   ;;  %vm1257_vm7 = vcmask 257216   ;;  %vm2080_vm8 = vcmask 523264  }
  0x30   : > { %v2984_v3 = vld [vmem:[%s356_s25] sm:$0xff]  ;;  %2414 = vmatpush3.bf16.msra.mxu0 %v2668_v2  ;;  %2422 = vmatpush3.bf16.msra.mxu1 %v2674_v10  ;;  %s2332_s26 = sshll.u32 %s2825_s12, 7 }
  0x31   : > { %v363_v4 = vpack.c.bf16 %v2984_v3, %v2984_v3  ;;  %2427 = vmatprep.subr.bf16.mxu0 %v2838_v0  ;;  %2435 = vmatprep.subr.bf16.mxu1 %v2838_v0  ;;  %s2162_s0 = scalar_lea.hbm %s3330_s9, %s2332_s26 }
  0x33   : > { %2416 = vmatmul.mubr.msk.bf16.vlgmr.msra.gmra.mxu0 %vm386_vm1, %v363_v4  ;;  %2424 = vmatmul.mubr.msk.bf16.vlgmr.msra.gmra.mxu1 %vm386_vm1, %v363_v4 }
  0x34   : > { %2428 = vmatpush3.bf16.msra.mxu0 %v2669_v5  ;;  %2431 = vmatprep.mubr.msk.bf16.mxu0 %vm2839_vm0, %v2838_v0 }
  0x35   : > { %2429 = vmatprep.subr.bf16.mxu0 %v2838_v0  ;;  %2436 = vmatpush3.bf16.msra.mxu1 %v2675_v11 }
  0x36   : > { %2439 = vmatprep.mubr.msk.bf16.mxu1 %vm2839_vm0, %v2838_v0  ;;  %2437 = vmatprep.subr.bf16.mxu1 %v2838_v0 }
  0x38   : > { %2430 = vmatpush3.bf16.msra.mxu0 %v2670_v7 }
  0x39   : > { %2443 = vmatprep.subr.bf16.mxu0 %v2838_v0  ;;  %2438 = vmatpush3.bf16.msra.mxu1 %v2676_v12 }
  0x3a   : > { %2451 = vmatprep.subr.bf16.mxu1 %v2838_v0 }
  0x3b   : > { %2432 = vmatmul.mubr.msk.bf16.vlgmr.msra.gmra.mxu0 %vm386_vm1, %v363_v4 }
  0x3c   : > { %2444 = vmatpush3.bf16.msra.mxu0 %v2671_v8  ;;  %2447 = vmatprep.mubr.msk.bf16.mxu0 %vm2839_vm0, %v2838_v0 }
  0x3d   : > { %2445 = vmatprep.subr.bf16.mxu0 %v2838_v0  ;;  %2440 = vmatmul.mubr.msk.bf16.vlgmr.msra.gmra.mxu1 %vm386_vm1, %v363_v4 }
  0x3e   : > { %2453 = vmatprep.mubr.msk.bf16.mxu1 %vm2839_vm0, %v2838_v0 }
  0x40   : > { %2446 = vmatpush3.bf16.msra.mxu0 %v2672_v9 }
  0x41   : > { %2457 = vmatprep.subr.bf16.mxu0 %v2838_v0 }
  0x43   : > { %2448 = vmatmul.mubr.msk.bf16.vlgmr.msra.gmra.mxu0 %vm386_vm1, %v363_v4 }
  0x44   : > { %2459 = vmatprep.mubr.msk.bf16.mxu0 %vm2839_vm0, %v2838_v0 }
  0xf3   : > { %v424_v14 = vpop.f32.mrf.mxu0  ;;  %v507_v39 = vpop.f32.mrf.mxu1 }
  0xf4   : > { %v425_v15 = vadd.f32 %v2255_v13, %v424_v14  ;;  %v508_v40 = vadd.f32 %v2260_v38, %v507_v39 }
  0xf5   : > { %v2417_v16 = vpop.f32.mrf.mxu0  ;;  %v2425_v41 = vpop.f32.mrf.mxu1 }
  0xf6   : > { %v430_v17 = vpack.c.bf16 %v425_v15, %v425_v15  ;;  %v3042_v42 = vpack.c.bf16 %v508_v40, %v508_v40 }
  0xf7   : > { %v427_v18 = vpop.f32.mrf.mxu0  ;;  %v510_v43 = vpop.f32.mrf.mxu1 }
  0xf8   : > { %432 = vst.msk [vmem:[#allocation2] sm:$0xf] %vm431_vm2, %v430_v17  ;;  %446 = vrot.lane.b32.xlu1 %v430_v17, %s2840_s28  ;;  %436 = vrot.lane.b32.xlu0 %v430_v17, %s2841_s29  ;;  %514 = vst.msk [vmem:[#allocation3] sm:$0xf] %vm431_vm2, %v3042_v42 }
  0xf9   : > { %v2418_v19 = vpop.f32.mrf.mxu0  ;;  %v2426_v44 = vpop.f32.mrf.mxu1 }
  0xfb   : > { %v589_v21 = vpop.f32.mrf.mxu0 }
  0xfc   : > { %v590_v22 = vadd.f32 %v2265_v20, %v589_v21  ;;  %441 = vrot.lane.b32.xlu0 %v430_v17, %s2842_s18 }
  0xfd   : > { %v2433_v23 = vpop.f32.mrf.mxu0  ;;  %v671_v46 = vpop.f32.mrf.mxu1 }
  0xfe   : > { %v3023_v24 = vpack.c.bf16 %v590_v22, %v590_v22  ;;  %v672_v47 = vadd.f32 %v2270_v45, %v671_v46 }
  0xff   : > { %v592_v25 = vpop.f32.mrf.mxu0  ;;  %v804_v26 = vld [vmem:[#allocation2] sm:$0xf]  ;;  %v2441_v48 = vpop.f32.mrf.mxu1  ;;  %v808_v62 = vld [vmem:[#allocation3] sm:$0xf] }
 0x100   : > { %596 = vst.msk [vmem:[#allocation4] sm:$0xf] %vm431_vm2, %v3023_v24  ;;  %v817_v27 = vsel %vm812_vm3, %v804_v26, 0  ;;  %v3049_v49 = vpack.c.bf16 %v672_v47, %v672_v47  ;;  %v1050_v4 = vsel %vm1048_vm4, %v808_v62, 0 }
 0x101   : > { %v2434_v28 = vpop.f32.mrf.mxu0  ;;  %2452 = vmatpush3.bf16.xpose.msra.mxu1 %v817_v27  ;;  %v674_v50 = vpop.f32.mrf.mxu1 }
 0x102   : > { %2463 = vmatprep.subr.bf16.mxu1 %v2838_v0  ;;  %678 = vst.msk [vmem:[#allocation5] sm:$0xf] %vm431_vm2, %v3049_v49 }
 0x103   : > { %v772_v30 = vpop.f32.mrf.mxu0  ;;  %v2442_v51 = vpop.f32.mrf.mxu1 }
 0x104   : > { %v773_v31 = vadd.f32 %v2275_v29, %v772_v30 }
 0x105   : > { %v2449_v32 = vpop.f32.mrf.mxu0 }
 0x106   : > { %v778_v33 = vmul.f32 0.35355338, %v773_v31 }
 0x107   : > { %v775_v34 = vpop.f32.mrf.mxu0 }
 0x108   : > { %v779_v35 = vpack.c.bf16 %v778_v33, %v778_v33 }
 0x109   : > { %v2450_v36 = vpop.f32.mrf.mxu0 }
 0x10a   : > { %781 = vst.msk [vmem:[#allocation6] sm:$0xf] %vm431_vm2, %v779_v35  ;;  %790 = vrot.lane.b32.xlu0 %v779_v35, %s2842_s18  ;;  %785 = vrot.lane.b32.xlu1 %v779_v35, %s2841_s29 }
 0x10e   : > { %795 = vrot.lane.b32.xlu1 %v779_v35, %s2840_s28 }
 0x111   : > { %v800_v37 = vld [vmem:[#allocation6] sm:$0xf] }
 0x112   : > { %2454 = vmatmul.mubr.msk.bf16.vlgmr.msra.gmra.mxu1 %vm812_vm3, %v800_v37 }
 0x113   : > { %2465 = vmatprep.mubr.msk.bf16.mxu1 %vm2839_vm0, %v2838_v0 }
 0x16a   : > { %v447_v52 = vpop.permute.xlu1 %446  ;;  %v437_v53 = vpop.permute.xlu0 %436 }
 0x16b   : > { %450 = vst.msk [vmem:[#allocation2 + $0xc] sm:$0xf] %vm431_vm2, %v447_v52  ;;  %440 = vst.msk [vmem:[#allocation2 + $0x4] sm:$0xf] %vm431_vm2, %v437_v53 }
 0x16e   : > { %v442_v54 = vpop.permute.xlu0 %441 }
 0x16f   : > { %445 = vst.msk [vmem:[#allocation2 + $0x8] sm:$0xf] %vm431_vm2, %v442_v54 }
 0x172   : > { %v805_v55 = vld [vmem:[#allocation2 + $0x4] sm:$0xf]  ;;  %v807_v63 = vld [vmem:[#allocation2 + $0xc] sm:$0xf] }
 0x173   : > { %v863_v56 = vsel %vm812_vm3, %v805_v55, 0  ;;  %v955_v5 = vsel %vm812_vm3, %v807_v63, 0 }
 0x174   : > { %2458 = vmatpush3.bf16.xpose.msra.mxu0 %v863_v56 }
 0x175   : > { %2469 = vmatprep.subr.bf16.mxu0 %v2838_v0 }
 0x176   : > { %v806_v57 = vld [vmem:[#allocation2 + $0x8] sm:$0xf] }
 0x177   : > { %v909_v58 = vsel %vm812_vm3, %v806_v57, 0 }
 0x178   : > { %2464 = vmatpush3.bf16.xpose.msra.mxu1 %v909_v58 }
 0x179   : > { %2475 = vmatprep.subr.bf16.mxu1 %v2838_v0 }
 0x17c   : > { %v791_v59 = vpop.permute.xlu0 %790  ;;  %v786_v60 = vpop.permute.xlu1 %785 }
 0x17d   : > { %794 = vst.msk [vmem:[#allocation6 + $0x8] sm:$0xf] %vm431_vm2, %v791_v59  ;;  %789 = vst.msk [vmem:[#allocation6 + $0x4] sm:$0xf] %vm431_vm2, %v786_v60 }
 0x180   : > { %v796_v61 = vpop.permute.xlu1 %795 }
 0x181   : > { %799 = vst.msk [vmem:[#allocation6 + $0xc] sm:$0xf] %vm431_vm2, %v796_v61 }
 0x184   : > { %v801_v1 = vld [vmem:[#allocation6 + $0x4] sm:$0xf]  ;;  %v802_v2 = vld [vmem:[#allocation6 + $0x8] sm:$0xf] }
 0x185   : > { %2460 = vmatmul.mubr.msk.bf16.vlgmr.msra.gmra.mxu0 %vm812_vm3, %v801_v1  ;;  %2466 = vmatmul.mubr.msk.bf16.vlgmr.msra.gmra.mxu1 %vm812_vm3, %v802_v2 }
 0x186   : > { %2470 = vmatpush3.bf16.xpose.msra.mxu0 %v955_v5  ;;  %2471 = vmatprep.mubr.msk.bf16.mxu0 %vm2839_vm0, %v2838_v0 }
 0x187   : > { %2476 = vmatpush3.bf16.msra.mxu1 %v1050_v4  ;;  %2481 = vmatprep.subr.bf16.mxu0 %v2838_v0 }
 0x188   : > { %2477 = vmatprep.mubr.msk.bf16.mxu1 %vm2839_vm0, %v2838_v0  ;;  %2487 = vmatprep.subr.bf16.mxu1 %v2838_v0  ;;  %v803_v6 = vld [vmem:[#allocation6 + $0xc] sm:$0xf] }
 0x18d   : > { %2472 = vmatmul.mubr.msk.bf16.vlgmr.msra.gmra.mxu0 %vm812_vm3, %v803_v6 }
 0x18e   : > { %2483 = vmatprep.mubr.msk.bf16.mxu0 %vm2839_vm0, %v2838_v0 }
 0x1d2   : > { %v853_v7 = vpop.f32.mrf.mxu1 }
 0x1d3   : > { %v997_v8 = vsel %vm812_vm3, %v853_v7, -inf }
 0x1d4   : > { %998 = vmax.xlane.f32.xlu0 %v997_v8  ;;  %v2455_v9 = vpop.f32.mrf.mxu1 }
 0x1d6   : > { %v856_v10 = vpop.f32.mrf.mxu1 }
 0x1d8   : > { %v2456_v11 = vpop.f32.mrf.mxu1 }
 0x245   : > { %v899_v12 = vpop.f32.mrf.mxu0  ;;  %v945_v13 = vpop.f32.mrf.mxu1 }
 0x246   : > { %v1003_v14 = vsel %vm812_vm3, %v945_v13, -inf  ;;  %v1000_v15 = vsel %vm812_vm3, %v899_v12, -inf }
 0x247   : > { %1004 = vmax.xlane.f32.xlu0 %v1003_v14  ;;  %v2467_v16 = vpop.f32.mrf.mxu1  ;;  %1001 = vmax.xlane.f32.xlu1 %v1000_v15  ;;  %v2461_v17 = vpop.f32.mrf.mxu0 }
 0x248   : > { %v2677_v17 = vld [vmem:[#allocation8 + $0x38] sm:$0xff]  }
 0x249   : > { %v902_v18 = vpop.f32.mrf.mxu0  ;;  %v948_v19 = vpop.f32.mrf.mxu1 }
 0x24a   : > { %v2678_v18 = vld [vmem:[#allocation8 + $0x30] sm:$0xff]  }
 0x24b   : > { %v2462_v20 = vpop.f32.mrf.mxu0  ;;  %v2468_v21 = vpop.f32.mrf.mxu1 }
 0x24d   : > { %v991_v22 = vpop.f32.mrf.mxu0 }
 0x24e   : > { %v1006_v23 = vsel %vm812_vm3, %v991_v22, -inf }
 0x24f   : > { %1007 = vmax.xlane.f32.xlu0 %v1006_v23  ;;  %v2473_v25 = vpop.f32.mrf.mxu0 }
 0x251   : > { %v994_v26 = vpop.f32.mrf.mxu0 }
 0x253   : > { %v2474_v27 = vpop.f32.mrf.mxu0 }
 0x258   : > { %518 = vrot.lane.b32.xlu1 %v3042_v42, %s2841_s29 }
 0x25d   : > { %v999_v28 = vpop.xlane.xlu0 %998 }
 0x25e   : > { %v1009_v29 = vsub.f32 %v853_v7, %v999_v28 }
 0x260   : > { %v1013_v30 = vmul.f32 1.442695, %v1009_v29 }
 0x262   : > { %2689 = vpow2.f32 %v1013_v30 }
 0x26f   : > { %v2690_v31 = vpop.eup %2689 }
 0x270   : > { %v1021_v32 = vsel %vm812_vm3, %v2690_v31, 0.0 }
 0x27c   : > { %1022 = vadd.xlane.f32.xlu1 %v1021_v32 }
 0x2d0   : > { %v1005_v33 = vpop.xlane.xlu0 %1004  ;;  %v1002_v34 = vpop.xlane.xlu1 %1001 }
 0x2d1   : > { %v1011_v35 = vsub.f32 %v945_v13, %v1005_v33  ;;  %v1010_v36 = vsub.f32 %v899_v12, %v1002_v34 }
 0x2d3   : > { %v1017_v37 = vmul.f32 1.442695, %v1011_v35  ;;  %v1015_v38 = vmul.f32 1.442695, %v1010_v36 }
 0x2d4   : > { %v519_v39 = vpop.permute.xlu1 %518 }
 0x2d5   : > { %2691 = vpow2.f32 %v1017_v37  ;;  %522 = vst.msk [vmem:[#allocation3 + $0x4] sm:$0xf] %vm431_vm2, %v519_v39 }
 0x2d6   : > { %2693 = vpow2.f32 %v1015_v38  ;;  %v1438_v38 = vld [vmem:[#allocation4] sm:$0xf] }
 0x2d8   : > { %v1008_v40 = vpop.xlane.xlu0 %1007 }
 0x2d9   : > { %v1012_v41 = vsub.f32 %v991_v22, %v1008_v40  ;;  %v1450_v40 = vsel %vm812_vm3, %v1438_v38, 0 }
 0x2db   : > { %v1019_v43 = vmul.f32 1.442695, %v1012_v41  ;;  %v2291_v41 = vld [vmem:[%s3323_s2 + $0x3] ss:$0 sm:$0xff] }
 0x2dc   : > { %v809_v44 = vld [vmem:[#allocation3 + $0x4] sm:$0xf] }
 0x2dd   : > { %2695 = vpow2.f32 %v1019_v43  ;;  %v1096_v45 = vsel %vm1048_vm4, %v809_v44, 0 }
 0x2de   : > { %2482 = vmatpush3.bf16.msra.mxu0 %v1096_v45 }
 0x2df   : > { %2493 = vmatprep.subr.bf16.mxu0 %v2838_v0 }
 0x2e2   : > { %v2692_v46 = vpop.eup %2691 }
 0x2e3   : > { %v2694_v47 = vpop.eup %2693  ;;  %v1027_v48 = vsel %vm812_vm3, %v2692_v46, 0.0 }
 0x2e4   : > { %1028 = vadd.xlane.f32.xlu1 %v1027_v48  ;;  %v1024_v50 = vsel %vm812_vm3, %v2694_v47, 0.0 }
 0x2e5   : > { %1025 = vadd.xlane.f32.xlu0 %v1024_v50 }
 0x2ea   : > { %v2696_v51 = vpop.eup %2695 }
 0x2eb   : > { %v1030_v52 = vsel %vm812_vm3, %v2696_v51, 0.0 }
 0x2ec   : > { %1031 = vadd.xlane.f32.xlu0 %v1030_v52 }
 0x2f5   : > { %528 = vrot.lane.b32.xlu1 %v3042_v42, %s2840_s28 }
 0x302   : > { %523 = vrot.lane.b32.xlu0 %v3042_v42, %s2842_s18 }
 0x305   : > { %v1023_v53 = vpop.xlane.xlu1 %1022 }
 0x306   : > { %2697 = vrcp.f32 %v1023_v53 }
 0x313   : > { %v2698_v54 = vpop.eup %2697 }
 0x314   : > { %v1037_v55 = vmul.f32 %v2698_v54, %v2690_v31 }
 0x316   : > { %v1041_v56 = vpack.c.bf16 %v1037_v55, %v1037_v55 }
 0x318   : > { %2478 = vmatmul.mubr.msk.bf16.vlgmr.msra.gmra.mxu1 %vm812_vm3, %v1041_v56 }
 0x319   : > { %2489 = vmatprep.mubr.msk.bf16.mxu1 %vm2839_vm0, %v2838_v0 }
 0x36d   : > { %v1029_v57 = vpop.xlane.xlu1 %1028 }
 0x36e   : > { %v1026_v58 = vpop.xlane.xlu0 %1025 }
 0x36f   : > { %2699 = vrcp.f32 %v1026_v58  ;;  %v2680_v58 = vld [vmem:[#allocation8 + $0x40] sm:$0xff]  }
 0x370   : > { %2701 = vrcp.f32 %v1029_v57  ;;  %v2679_v57 = vld [vmem:[#allocation8 + $0x48] sm:$0xff]  }
 0x371   : > { %v529_v59 = vpop.permute.xlu1 %528 }
 0x372   : > { %532 = vst.msk [vmem:[#allocation3 + $0xc] sm:$0xf] %vm431_vm2, %v529_v59 }
 0x375   : > { %v1032_v60 = vpop.xlane.xlu0 %1031 }
 0x376   : > { %2703 = vrcp.f32 %v1032_v60 }
 0x379   : > { %v524_v42 = vpop.permute.xlu0 %523  ;;  %v811_v1 = vld [vmem:[#allocation3 + $0xc] sm:$0xf] }
 0x37a   : > { %527 = vst.msk [vmem:[#allocation3 + $0x8] sm:$0xf] %vm431_vm2, %v524_v42  ;;  %v1188_v5 = vsel %vm1048_vm4, %v811_v1, 0  ;;  %v2296_v1 = vld [vmem:[%s3329_s8] ss:$0 sm:$0xff] }
 0x37c   : > { %v2700_v61 = vpop.eup %2699 }
 0x37d   : > { %v2702_v62 = vpop.eup %2701  ;;  %v1038_v63 = vmul.f32 %v2700_v61, %v2694_v47 }
 0x37e   : > { %v1039_v4 = vmul.f32 %v2702_v62, %v2692_v46 }
 0x37f   : > { %v1042_v2 = vpack.c.bf16 %v1038_v63, %v1038_v63 }
 0x380   : > { %v1043_v9 = vpack.c.bf16 %v1039_v4, %v1039_v4 }
 0x381   : > { %2484 = vmatmul.mubr.msk.bf16.vlgmr.msra.gmra.mxu0 %vm812_vm3, %v1042_v2  ;;  %v810_v6 = vld [vmem:[#allocation3 + $0x8] sm:$0xf] }
 0x382   : > { %2494 = vmatpush3.bf16.msra.mxu0 %v1188_v5  ;;  %v1142_v7 = vsel %vm1048_vm4, %v810_v6, 0  ;;  %2495 = vmatprep.mubr.msk.bf16.mxu0 %vm2839_vm0, %v2838_v0 }
 0x383   : > { %v2704_v8 = vpop.eup %2703  ;;  %2488 = vmatpush3.bf16.msra.mxu1 %v1142_v7  ;;  %2507 = vmatprep.subr.bf16.mxu0 %v2838_v0 }
 0x384   : > { %v1040_v10 = vmul.f32 %v2704_v8, %v2696_v51  ;;  %2499 = vmatprep.subr.bf16.mxu1 %v2838_v0  ;;  %v2297_v8 = vld [vmem:[%s3323_s2 + $0x4] ss:$0 sm:$0xff] }
 0x386   : > { %2490 = vmatmul.mubr.msk.bf16.vlgmr.msra.gmra.mxu1 %vm812_vm3, %v1043_v9  ;;  %v1044_v11 = vpack.c.bf16 %v1040_v10, %v1040_v10 }
 0x387   : > { %2503 = vmatprep.mubr.msk.bf16.mxu1 %vm2839_vm0, %v2838_v0  ;;  %2500 = vmatpush3.bf16.msra.mxu1 %v2677_v17 }
 0x388   : > { %2501 = vmatprep.subr.bf16.mxu1 %v2838_v0 }
 0x389   : > { %2496 = vmatmul.mubr.msk.bf16.vlgmr.msra.gmra.mxu0 %vm812_vm3, %v1044_v11 }
 0x38a   : > { %2511 = vmatprep.mubr.msk.bf16.mxu0 %vm2839_vm0, %v2838_v0  ;;  %2508 = vmatpush3.bf16.msra.mxu0 %v2679_v57 }
 0x38b   : > { %2502 = vmatpush3.bf16.msra.mxu1 %v2678_v18  ;;  %2509 = vmatprep.subr.bf16.mxu0 %v2838_v0 }
 0x38c   : > { %2515 = vmatprep.subr.bf16.mxu1 %v2838_v0 }
 0x38e   : > { %2510 = vmatpush3.bf16.msra.mxu0 %v2680_v58 }
 0x38f   : > { %2521 = vmatprep.subr.bf16.mxu0 %v2838_v0 }
 0x3d8   : > { %v1086_v12 = vpop.f32.mrf.mxu1 }
 0x3d9   : > { %v1230_v13 = vpack.c.bf16 %v1086_v12, %v1086_v12 }
 0x3da   : > { %v2479_v14 = vpop.f32.mrf.mxu1 }
 0x3db   : > { %1234 = vst.msk [vmem:[#allocation7] sm:$0xf] %vm431_vm2, %v1230_v13 }
 0x3dc   : > { %v1089_v15 = vpop.f32.mrf.mxu1 }
 0x3de   : > { %v2480_v16 = vpop.f32.mrf.mxu1 }
 0x441   : > { %v1132_v19 = vpop.f32.mrf.mxu0 }
 0x442   : > { %v2340_v20 = vpack.c.bf16 %v1132_v19, %v1132_v19 }
 0x443   : > { %v2485_v21 = vpop.f32.mrf.mxu0 }
 0x444   : > { %1238 = vrot.lane.b32.xlu1 %v2340_v20, %s2843_s15 }
 0x445   : > { %v1135_v22 = vpop.f32.mrf.mxu0 }
 0x446   : > { %v1178_v23 = vpop.f32.mrf.mxu1 }
 0x447   : > { %v2486_v25 = vpop.f32.mrf.mxu0  ;;  %v2341_v26 = vpack.c.bf16 %v1178_v23, %v1178_v23  ;;  %v1442_v23 = vld [vmem:[#allocation5] sm:$0xf] }
 0x448   : > { %v2491_v27 = vpop.f32.mrf.mxu1 }
 0x449   : > { %v1224_v28 = vpop.f32.mrf.mxu0  ;;  %1246 = vrot.lane.b32.xlu0 %v2341_v26, %s2844_s16 }
 0x44a   : > { %v2342_v29 = vpack.c.bf16 %v1224_v28, %v1224_v28  ;;  %v1181_v30 = vpop.f32.mrf.mxu1  ;;  %v1682_v28 = vsel %vm1048_vm4, %v1442_v23, 0 }
 0x44b   : > { %v2497_v31 = vpop.f32.mrf.mxu0 }
 0x44c   : > { %1254 = vrot.lane.b32.xlu1 %v2342_v29, %s2845_s20  ;;  %v2492_v32 = vpop.f32.mrf.mxu1 }
 0x44d   : > { %v1227_v33 = vpop.f32.mrf.mxu0 }
 0x44f   : > { %v2498_v34 = vpop.f32.mrf.mxu0 }
 0x4b6   : > { %v1239_v35 = vpop.permute.xlu1 %1238 }
 0x4b7   : > { %1242 = vst.msk [vmem:[#allocation7] sm:$0xf] %vm1241_vm5, %v1239_v35 }
 0x4bb   : > { %v1247_v36 = vpop.permute.xlu0 %1246 }
 0x4bc   : > { %1250 = vst.msk [vmem:[#allocation7] sm:$0xf] %vm1249_vm6, %v1247_v36 }
 0x4be   : > { %v1255_v37 = vpop.permute.xlu1 %1254 }
 0x4bf   : > { %1258 = vst.msk [vmem:[#allocation7] sm:$0xf] %vm1257_vm7, %v1255_v37 }
 0x4c6   : > { %v1259_v39 = vld [vmem:[#allocation7] sm:$0xf] }
 0x4c7   : > { %2504 = vmatmul.mubr.msk.bf16.vlgmr.msra.gmra.mxu1 %vm386_vm1, %v1259_v39 }
 0x4c8   : > { %2516 = vmatpush3.bf16.xpose.msra.mxu1 %v1450_v40  ;;  %2517 = vmatprep.mubr.msk.bf16.mxu1 %vm2839_vm0, %v2838_v0 }
 0x4c9   : > { %2527 = vmatprep.subr.bf16.mxu1 %v2838_v0 }
 0x587   : > { %v1313_v43 = vpop.f32.mrf.mxu1 }
 0x588   : > { %v1314_v44 = vadd.f32 %v2291_v41, %v1313_v43 }
 0x589   : > { %v2505_v45 = vpop.f32.mrf.mxu1 }
 0x58a   : > { %v1319_v46 = vadd.f32 %v1314_v44, %v2984_v3 }
 0x58b   : > { %v1316_v47 = vpop.f32.mrf.mxu1 }
 0x58c   : > { %v1320_v48 = vsel %vm386_vm1, %v1319_v46, 0.0 }
 0x58d   : > { %1321 = vadd.xlane.f32.xlu0 %v1320_v48  ;;  %v2506_v50 = vpop.f32.mrf.mxu1 }
 0x5a3   : > { %600 = vrot.lane.b32.xlu0 %v3023_v24, %s2841_s29 }
 0x5a7   : > { %610 = vrot.lane.b32.xlu0 %v3023_v24, %s2840_s28 }
 0x616   : > { %v1322_v51 = vpop.xlane.xlu0 %1321 }
 0x617   : > { %v1324_v52 = vmul.f32 0.03125, %v1322_v51 }
 0x619   : > { %v1325_v53 = vsub.f32 %v1319_v46, %v1324_v52 }
 0x61a   : > { %v601_v54 = vpop.permute.xlu0 %600 }
 0x61b   : > { %604 = vst.msk [vmem:[#allocation4 + $0x4] sm:$0xf] %vm431_vm2, %v601_v54  ;;  %v1326_v55 = vmul.f32 %v1325_v53, %v1325_v53 }
 0x61d   : > { %v1327_v3 = vsel %vm386_vm1, %v1326_v55, 0.0 }
 0x61e   : > { %1328 = vadd.xlane.f32.xlu1 %v1327_v3  ;;  %v611_v56 = vpop.permute.xlu0 %610 }
 0x61f   : > { %614 = vst.msk [vmem:[#allocation4 + $0xc] sm:$0xf] %vm431_vm2, %v611_v56 }
 0x622   : > { %v1439_v5 = vld [vmem:[#allocation4 + $0x4] sm:$0xf] }
 0x623   : > { %v1496_v7 = vsel %vm812_vm3, %v1439_v5, 0 }
 0x626   : > { %v1441_v22 = vld [vmem:[#allocation4 + $0xc] sm:$0xf] }
 0x627   : > { %v1588_v27 = vsel %vm812_vm3, %v1441_v22, 0 }
 0x62f   : > { %605 = vrot.lane.b32.xlu1 %v3023_v24, %s2842_s18  ;;  %v2295_v24 = vld [vmem:[%s3328_s7] ss:$0 sm:$0xff] }
 0x6a7   : > { %v1329_v59 = vpop.xlane.xlu1 %1328 }
 0x6a8   : > { %v1330_v60 = vmul.f32 0.03125, %v1329_v59 }
 0x6aa   : > { %v1331_v42 = vadd.f32 1e-05, %v1330_v60 }
 0x6ab   : > { %v606_v61 = vpop.permute.xlu1 %605 }
 0x6ac   : > { %2705 = vrsqrt.f32 %v1331_v42  ;;  %609 = vst.msk [vmem:[#allocation4 + $0x8] sm:$0xf] %vm431_vm2, %v606_v61 }
 0x6b3   : > { %v1440_v16 = vld [vmem:[#allocation4 + $0x8] sm:$0xf] }
 0x6b4   : > { %v1542_v18 = vsel %vm812_vm3, %v1440_v16, 0 }
 0x6b9   : > { %v2706_v62 = vpop.eup %2705 }
 0x6ba   : > { %v1333_v63 = vmul.f32 %v2706_v62, %v1325_v53 }
 0x6bc   : > { %v1338_v2 = vmul.f32 %v2295_v24, %v1333_v63 }
 0x6be   : > { %v3148_v4 = vadd.f32 %v2296_v1, %v1338_v2 }
 0x6c0   : > { %v1344_v6 = vpack.c.bf16 %v3148_v4, %v3148_v4 }
 0x6c2   : > { %2512 = vmatmul.mubr.msk.bf16.vlgmr.msra.gmra.mxu0 %vm386_vm1, %v1344_v6 }
 0x6c3   : > { %2522 = vmatpush3.bf16.xpose.msra.mxu0 %v1496_v7  ;;  %2523 = vmatprep.mubr.msk.bf16.mxu0 %vm2839_vm0, %v2838_v0 }
 0x6c4   : > { %2533 = vmatprep.subr.bf16.mxu0 %v2838_v0 }
 0x782   : > { %v1410_v9 = vpop.f32.mrf.mxu0 }
 0x783   : > { %v1411_v10 = vadd.f32 %v2297_v8, %v1410_v9 }
 0x784   : > { %v2513_v11 = vpop.f32.mrf.mxu0 }
 0x785   : > { %v1416_v12 = vmul.f32 0.35355338, %v1411_v10 }
 0x786   : > { %v1413_v13 = vpop.f32.mrf.mxu0 }
 0x787   : > { %v1417_v14 = vpack.c.bf16 %v1416_v12, %v1416_v12 }
 0x788   : > { %v2514_v15 = vpop.f32.mrf.mxu0 }
 0x789   : > { %1418 = vst.msk [vmem:[#allocation6] sm:$0xf] %vm431_vm2, %v1417_v14  ;;  %1426 = vrot.lane.b32.xlu0 %v1417_v14, %s2842_s18  ;;  %1422 = vrot.lane.b32.xlu1 %v1417_v14, %s2841_s29 }
 0x78d   : > { %1430 = vrot.lane.b32.xlu1 %v1417_v14, %s2840_s28 }
 0x790   : > { %v1434_v17 = vld [vmem:[#allocation6] sm:$0xf] }
 0x791   : > { %2518 = vmatmul.mubr.msk.bf16.vlgmr.msra.gmra.mxu1 %vm812_vm3, %v1434_v17 }
 0x792   : > { %2528 = vmatpush3.bf16.xpose.msra.mxu1 %v1542_v18  ;;  %2529 = vmatprep.mubr.msk.bf16.mxu1 %vm2839_vm0, %v2838_v0 }
 0x793   : > { %2539 = vmatprep.subr.bf16.mxu1 %v2838_v0 }
 0x7fb   : > { %v1427_v19 = vpop.permute.xlu0 %1426  ;;  %v1423_v20 = vpop.permute.xlu1 %1422 }
 0x7fc   : > { %1429 = vst.msk [vmem:[#allocation6 + $0x8] sm:$0xf] %vm431_vm2, %v1427_v19  ;;  %1425 = vst.msk [vmem:[#allocation6 + $0x4] sm:$0xf] %vm431_vm2, %v1423_v20 }
 0x7ff   : > { %v1431_v21 = vpop.permute.xlu1 %1430 }
 0x800   : > { %1433 = vst.msk [vmem:[#allocation6 + $0xc] sm:$0xf] %vm431_vm2, %v1431_v21 }
 0x803   : > { %v1435_v25 = vld [vmem:[#allocation6 + $0x4] sm:$0xf]  ;;  %v1436_v26 = vld [vmem:[#allocation6 + $0x8] sm:$0xf] }
 0x804   : > { %2524 = vmatmul.mubr.msk.bf16.vlgmr.msra.gmra.mxu0 %vm812_vm3, %v1435_v25  ;;  %2530 = vmatmul.mubr.msk.bf16.vlgmr.msra.gmra.mxu1 %vm812_vm3, %v1436_v26 }
 0x805   : > { %2534 = vmatpush3.bf16.xpose.msra.mxu0 %v1588_v27  ;;  %2540 = vmatpush3.bf16.msra.mxu1 %v1682_v28 }
 0x806   : > { %2535 = vmatprep.mubr.msk.bf16.mxu0 %vm2839_vm0, %v2838_v0  ;;  %2545 = vmatprep.subr.bf16.mxu0 %v2838_v0 }
 0x807   : > { %2541 = vmatprep.mubr.msk.bf16.mxu1 %vm2839_vm0, %v2838_v0  ;;  %2551 = vmatprep.subr.bf16.mxu1 %v2838_v0  ;;  %v1437_v29 = vld [vmem:[#allocation6 + $0xc] sm:$0xf] }
 0x80c   : > { %2536 = vmatmul.mubr.msk.bf16.vlgmr.msra.gmra.mxu0 %vm812_vm3, %v1437_v29 }
 0x80d   : > { %2547 = vmatprep.mubr.msk.bf16.mxu0 %vm2839_vm0, %v2838_v0 }
 0x851   : > { %v1486_v30 = vpop.f32.mrf.mxu1 }
 0x852   : > { %v1630_v31 = vsel %vm812_vm3, %v1486_v30, -inf }
 0x853   : > { %1631 = vmax.xlane.f32.xlu0 %v1630_v31  ;;  %v2519_v32 = vpop.f32.mrf.mxu1 }
 0x855   : > { %v1489_v33 = vpop.f32.mrf.mxu1 }
 0x857   : > { %v2520_v34 = vpop.f32.mrf.mxu1 }
 0x8c4   : > { %v1532_v35 = vpop.f32.mrf.mxu0  ;;  %v1578_v36 = vpop.f32.mrf.mxu1 }
 0x8c5   : > { %v1636_v37 = vsel %vm812_vm3, %v1578_v36, -inf  ;;  %v1633_v38 = vsel %vm812_vm3, %v1532_v35, -inf }
 0x8c6   : > { %1637 = vmax.xlane.f32.xlu0 %v1636_v37  ;;  %v2531_v39 = vpop.f32.mrf.mxu1  ;;  %1634 = vmax.xlane.f32.xlu1 %v1633_v38  ;;  %v2525_v40 = vpop.f32.mrf.mxu0  ;;  %v2681_v38 = vld [vmem:[#allocation8 + $0x78] sm:$0xff]  }
 0x8c7   : > { %v2682_v40 = vld [vmem:[#allocation8 + $0x70] sm:$0xff]  }
 0x8c8   : > { %v1535_v41 = vpop.f32.mrf.mxu0  ;;  %v1581_v43 = vpop.f32.mrf.mxu1 }
 0x8ca   : > { %v2526_v44 = vpop.f32.mrf.mxu0  ;;  %v2532_v45 = vpop.f32.mrf.mxu1 }
 0x8cc   : > { %v1624_v46 = vpop.f32.mrf.mxu0 }
 0x8cd   : > { %v1639_v47 = vsel %vm812_vm3, %v1624_v46, -inf }
 0x8ce   : > { %1640 = vmax.xlane.f32.xlu0 %v1639_v47  ;;  %v2537_v48 = vpop.f32.mrf.mxu0 }
 0x8d0   : > { %v1627_v50 = vpop.f32.mrf.mxu0 }
 0x8d2   : > { %v2538_v51 = vpop.f32.mrf.mxu0 }
 0x8d7   : > { %682 = vrot.lane.b32.xlu1 %v3049_v49, %s2841_s29 }
 0x8dc   : > { %v1632_v52 = vpop.xlane.xlu0 %1631 }
 0x8dd   : > { %v1642_v53 = vsub.f32 %v1486_v30, %v1632_v52 }
 0x8df   : > { %v1646_v54 = vmul.f32 1.442695, %v1642_v53 }
 0x8e1   : > { %2707 = vpow2.f32 %v1646_v54 }
 0x8ee   : > { %v2708_v55 = vpop.eup %2707 }
 0x8ef   : > { %v1654_v3 = vsel %vm812_vm3, %v2708_v55, 0.0 }
 0x8fb   : > { %1655 = vadd.xlane.f32.xlu1 %v1654_v3 }
 0x94f   : > { %v1638_v56 = vpop.xlane.xlu0 %1637  ;;  %v1635_v57 = vpop.xlane.xlu1 %1634 }
 0x950   : > { %v1644_v58 = vsub.f32 %v1578_v36, %v1638_v56  ;;  %v1643_v59 = vsub.f32 %v1532_v35, %v1635_v57 }
 0x952   : > { %v1650_v60 = vmul.f32 1.442695, %v1644_v58  ;;  %v1648_v42 = vmul.f32 1.442695, %v1643_v59 }
 0x953   : > { %v683_v61 = vpop.permute.xlu1 %682 }
 0x954   : > { %2709 = vpow2.f32 %v1650_v60  ;;  %686 = vst.msk [vmem:[#allocation5 + $0x4] sm:$0xf] %vm431_vm2, %v683_v61  ;;  %v2313_v60 = vld [vmem:[%s3323_s2 + $0x7] ss:$0 sm:$0xff] }
 0x955   : > { %2711 = vpow2.f32 %v1648_v42 }
 0x957   : > { %v1641_v62 = vpop.xlane.xlu0 %1640 }
 0x958   : > { %v1645_v24 = vsub.f32 %v1624_v46, %v1641_v62 }
 0x95a   : > { %v1652_v63 = vmul.f32 1.442695, %v1645_v24 }
 0x95b   : > { %v1443_v1 = vld [vmem:[#allocation5 + $0x4] sm:$0xf] }
 0x95c   : > { %2713 = vpow2.f32 %v1652_v63  ;;  %v1728_v2 = vsel %vm1048_vm4, %v1443_v1, 0 }
 0x95d   : > { %2546 = vmatpush3.bf16.msra.mxu0 %v1728_v2 }
 0x95e   : > { %2557 = vmatprep.subr.bf16.mxu0 %v2838_v0 }
 0x961   : > { %v2710_v5 = vpop.eup %2709 }
 0x962   : > { %v2712_v6 = vpop.eup %2711  ;;  %v1660_v7 = vsel %vm812_vm3, %v2710_v5, 0.0 }
 0x963   : > { %1661 = vadd.xlane.f32.xlu1 %v1660_v7  ;;  %v1657_v8 = vsel %vm812_vm3, %v2712_v6, 0.0 }
 0x964   : > { %1658 = vadd.xlane.f32.xlu0 %v1657_v8 }
 0x969   : > { %v2714_v9 = vpop.eup %2713 }
 0x96a   : > { %v1663_v10 = vsel %vm812_vm3, %v2714_v9, 0.0 }
 0x96b   : > { %1664 = vadd.xlane.f32.xlu0 %v1663_v10  ;;  %v2683_v10 = vld [vmem:[%s3324_s3 + $0x8] sm:$0xff]  }
 0x974   : > { %692 = vrot.lane.b32.xlu1 %v3049_v49, %s2840_s28  ;;  %s350_s28 = sand.u32 1, %s2817_s10  }
 0x975   : > { %s2253_s29 = sshll.u32 %s350_s28, 3  ;;  %s2150_s1 = scalar_lea.sflag [#allocation10], %s350_s28 }
 0x976   : > { %s352_s27 = scalar_lea.vmem [#allocation11], %s2253_s29 }
 0x977   : > { %s2164_s23 = sshll.u32 %s352_s27, 4  ;;  %s2165_s23 = int_to_ptr.vmem [resolvable:$true] %s2164_s23 }
 0x981   : > { %687 = vrot.lane.b32.xlu0 %v3049_v49, %s2842_s18  ;;  %s2753_s18 = scalar_lea.vmem %s2165_s23, 128 }
 0x982   : > { %p2754_p10 = scmp.ne.s32.totalorder %s2165_s23, %s2753_s18 }
 0x984   : > { %v1656_v11 = vpop.xlane.xlu1 %1655  ;;  %p2755_p11 = pnand %p2754_p10, %p2937_p4 }
 0x985   : > { %2715 = vrcp.f32 %v1656_v11  ;;  %v2685_v11 = vld [vmem:[%s3326_s5 + $0x18] sm:$0xff]  }
 0x986   : > { %p2756_p13 = pneg %p2755_p11 }
 0x992   : > { %v2716_v12 = vpop.eup %2715 }
 0x993   : > { %v1670_v13 = vmul.f32 %v2716_v12, %v2708_v55  ;;  %v2686_v12 = vld [vmem:[%s3326_s5 + $0x10] sm:$0xff]  }
 0x995   : > { %v1674_v14 = vpack.c.bf16 %v1670_v13, %v1670_v13 }
 0x997   : > { %2542 = vmatmul.mubr.msk.bf16.vlgmr.msra.gmra.mxu1 %vm812_vm3, %v1674_v14 }
 0x998   : > { %2553 = vmatprep.mubr.msk.bf16.mxu1 %vm2839_vm0, %v2838_v0 }
 0x9ec   : > { %v1662_v15 = vpop.xlane.xlu1 %1661 }
 0x9ed   : > { %v1659_v16 = vpop.xlane.xlu0 %1658 }
 0x9ee   : > { %2717 = vrcp.f32 %v1659_v16 }
 0x9ef   : > { %2719 = vrcp.f32 %v1662_v15 }
 0x9f0   : > { %v693_v17 = vpop.permute.xlu1 %692 }
 0x9f1   : > { %696 = vst.msk [vmem:[#allocation5 + $0xc] sm:$0xf] %vm431_vm2, %v693_v17  ;;  %v2317_v17 = vld [vmem:[%s3328_s7 + $0x1] ss:$0 sm:$0xff] }
 0x9f4   : > { %v1665_v18 = vpop.xlane.xlu0 %1664 }
 0x9f5   : > { %2721 = vrcp.f32 %v1665_v18 }
 0x9f8   : > { %v688_v49 = vpop.permute.xlu0 %687  ;;  %v1445_v22 = vld [vmem:[#allocation5 + $0xc] sm:$0xf] }
 0x9f9   : > { %691 = vst.msk [vmem:[#allocation5 + $0x8] sm:$0xf] %vm431_vm2, %v688_v49  ;;  %v1820_v26 = vsel %vm1048_vm4, %v1445_v22, 0  ;;  %v2318_v49 = vld [vmem:[%s3329_s8 + $0x1] ss:$0 sm:$0xff]  ;;  %v2687_v22 = vld [vmem:[%s3326_s5 + $0x8] sm:$0xff]  }
 0x9fb   : > { %v2718_v19 = vpop.eup %2717 }
 0x9fc   : > { %v2720_v20 = vpop.eup %2719  ;;  %v1671_v21 = vmul.f32 %v2718_v19, %v2712_v6 }
 0x9fd   : > { %v1672_v25 = vmul.f32 %v2720_v20, %v2710_v5 }
 0x9fe   : > { %v1675_v23 = vpack.c.bf16 %v1671_v21, %v1671_v21 }
 0x9ff   : > { %v1676_v30 = vpack.c.bf16 %v1672_v25, %v1672_v25  ;;  %v2319_v25 = vld [vmem:[%s3325_s4] ss:$0 sm:$0xff] }
 0xa00   : > { %2548 = vmatmul.mubr.msk.bf16.vlgmr.msra.gmra.mxu0 %vm812_vm3, %v1675_v23  ;;  %v1444_v27 = vld [vmem:[#allocation5 + $0x8] sm:$0xf]  ;;  %v2688_v23 = vld [vmem:[%s3326_s5] sm:$0xff]  }
 0xa01   : > { %2558 = vmatpush3.bf16.msra.mxu0 %v1820_v26  ;;  %v1774_v28 = vsel %vm1048_vm4, %v1444_v27, 0  ;;  %2559 = vmatprep.mubr.msk.bf16.mxu0 %vm2839_vm0, %v2838_v0 }
 0xa02   : > { %v2722_v29 = vpop.eup %2721  ;;  %2552 = vmatpush3.bf16.msra.mxu1 %v1774_v28  ;;  %2571 = vmatprep.subr.bf16.mxu0 %v2838_v0 }
 0xa03   : > { %v1673_v31 = vmul.f32 %v2722_v29, %v2714_v9  ;;  %2563 = vmatprep.subr.bf16.mxu1 %v2838_v0 }
 0xa05   : > { %2554 = vmatmul.mubr.msk.bf16.vlgmr.msra.gmra.mxu1 %vm812_vm3, %v1676_v30  ;;  %v1677_v32 = vpack.c.bf16 %v1673_v31, %v1673_v31 }
 0xa06   : > { %2567 = vmatprep.mubr.msk.bf16.mxu1 %vm2839_vm0, %v2838_v0  ;;  %2564 = vmatpush3.bf16.msra.mxu1 %v2681_v38 }
 0xa07   : > { %2565 = vmatprep.subr.bf16.mxu1 %v2838_v0 }
 0xa08   : > { %2560 = vmatmul.mubr.msk.bf16.vlgmr.msra.gmra.mxu0 %vm812_vm3, %v1677_v32 }
 0xa09   : > { %2575 = vmatprep.mubr.msk.bf16.mxu0 %vm2839_vm0, %v2838_v0  ;;  %2572 = vmatpush3.bf16.msra.mxu0 %v2683_v10 }
 0xa0a   : > { %2566 = vmatpush3.bf16.msra.mxu1 %v2682_v40  ;;  %2573 = vmatprep.subr.bf16.mxu0 %v2838_v0 }
 0xa0b   : > { %2579 = vmatprep.subr.bf16.mxu1 %v2838_v0 }
 0xa57   : > { %v1718_v33 = vpop.f32.mrf.mxu1 }
 0xa58   : > { %v1862_v34 = vpack.c.bf16 %v1718_v33, %v1718_v33 }
 0xa59   : > { %v2543_v35 = vpop.f32.mrf.mxu1 }
 0xa5a   : > { %1866 = vst.msk [vmem:[#allocation7] sm:$0xf] %vm431_vm2, %v1862_v34 }
 0xa5b   : > { %v1721_v36 = vpop.f32.mrf.mxu1 }
 0xa5d   : > { %v2544_v37 = vpop.f32.mrf.mxu1 }
 0xac0   : > { %v1764_v39 = vpop.f32.mrf.mxu0 }
 0xac1   : > { %v2344_v41 = vpack.c.bf16 %v1764_v39, %v1764_v39 }
 0xac2   : > { %v2549_v43 = vpop.f32.mrf.mxu0 }
 0xac3   : > { %1870 = vrot.lane.b32.xlu1 %v2344_v41, %s2843_s15  ;;  %s2846_s15 = smov [#allocation11]  }
 0xac4   : > { %v1767_v44 = vpop.f32.mrf.mxu0 }
 0xac5   : > { %v1810_v45 = vpop.f32.mrf.mxu1 }
 0xac6   : > { %v2550_v46 = vpop.f32.mrf.mxu0  ;;  %v2345_v47 = vpack.c.bf16 %v1810_v45, %v1810_v45 }
 0xac7   : > { %v2555_v48 = vpop.f32.mrf.mxu1 }
 0xac8   : > { %v1856_v50 = vpop.f32.mrf.mxu0  ;;  %1877 = vrot.lane.b32.xlu0 %v2345_v47, %s2844_s16  ;;  %s2757_s16 = sshll.u32 %s2846_s15, 4  ;;  %s2758_s16 = int_to_ptr.vmem [resolvable:$false] %s2757_s16 }
 0xac9   : > { %v2346_v51 = vpack.c.bf16 %v1856_v50, %v1856_v50  ;;  %v1813_v52 = vpop.f32.mrf.mxu1  ;;  %s2759_s12 = scalar_lea.vmem %s2758_s16, 256  ;;  %p2760_p0 = scmp.lt.s32.totalorder %s2165_s23, %s2758_s16 }
 0xaca   : > { %v2561_v53 = vpop.f32.mrf.mxu0  ;;  %p2761_p1 = scmp.lt.s32.totalorder %s2759_s12, %s2753_s18 }
 0xacb   : > { %1884 = vrot.lane.b32.xlu1 %v2346_v51, %s2845_s20  ;;  %v2556_v54 = vpop.f32.mrf.mxu1  ;;  %v2329_v51 = vld [vmem:[%s3328_s7 + $0x2] ss:$0 sm:$0xff] }
 0xacc   : > { %v1859_v55 = vpop.f32.mrf.mxu0  ;;  %v2330_v53 = vld [vmem:[%s3329_s8 + $0x2] ss:$0 sm:$0xff]  ;;  %p2762_p2 = por %p2761_p1, %p2760_p0 }
 0xace   : > { %v2562_v3 = vpop.f32.mrf.mxu0  ;;  %p2763_p3 = pnand %p2762_p2, %p2756_p13 }
 0xb35   : > { %v1871_v56 = vpop.permute.xlu1 %1870 }
 0xb36   : > { %1873 = vst.msk [vmem:[#allocation7] sm:$0xf] %vm1241_vm5, %v1871_v56 }
 0xb3a   : > { %v1878_v57 = vpop.permute.xlu0 %1877 }
 0xb3b   : > { %1880 = vst.msk [vmem:[#allocation7] sm:$0xf] %vm1249_vm6, %v1878_v57 }
 0xb3d   : > { %v1885_v58 = vpop.permute.xlu1 %1884 }
 0xb3e   : > { %1887 = vst.msk [vmem:[#allocation7] sm:$0xf] %vm1257_vm7, %v1885_v58 }
 0xb45   : > { %v1888_v59 = vld [vmem:[#allocation7] sm:$0xf] }
 0xb46   : > { %2568 = vmatmul.mubr.msk.bf16.vlgmr.msra.gmra.mxu1 %vm386_vm1, %v1888_v59 }
 0xb47   : > { %2587 = vmatprep.mubr.msk.bf16.mxu1 %vm2839_vm0, %v2838_v0  ;;  %2580 = vmatpush3.bf16.msra.mxu1 %v2685_v11 }
 0xb48   : > { %2581 = vmatprep.subr.bf16.mxu1 %v2838_v0 }
 0xb4b   : > { %2582 = vmatpush3.bf16.msra.mxu1 %v2686_v12 }
 0xb4c   : > { %2583 = vmatprep.subr.bf16.mxu1 %v2838_v0 }
 0xb4f   : > { %2584 = vmatpush3.bf16.msra.mxu1 %v2687_v22 }
 0xb50   : > { %2585 = vmatprep.subr.bf16.mxu1 %v2838_v0  ;;  %v2323_v0 = vld [vmem:[%s3327_s6] ss:$0 sm:$0xff] }
 0xb53   : > { %2586 = vmatpush3.bf16.msra.mxu1 %v2688_v23 }
 0xc06   : > { %v1942_v42 = vpop.f32.mrf.mxu1 }
 0xc07   : > { %v1943_v61 = vadd.f32 %v2313_v60, %v1942_v42 }
 0xc08   : > { %v2569_v62 = vpop.f32.mrf.mxu1 }
 0xc09   : > { %v1948_v24 = vadd.f32 %v1943_v61, %v3148_v4  ;;  %v2684_v4 = vld [vmem:[%s3324_s3] sm:$0xff]  }
 0xc0a   : > { %v1945_v63 = vpop.f32.mrf.mxu1  ;;  %2574 = vmatpush3.bf16.msra.mxu0 %v2684_v4 }
 0xc0b   : > { %v1949_v1 = vsel %vm386_vm1, %v1948_v24, 0.0 }
 0xc0c   : > { %1950 = vadd.xlane.f32.xlu0 %v1949_v1  ;;  %v2570_v2 = vpop.f32.mrf.mxu1 }
 0xc95   : > { %v1951_v5 = vpop.xlane.xlu0 %1950 }
 0xc96   : > { %v1952_v6 = vmul.f32 0.03125, %v1951_v5 }
 0xc98   : > { %v1953_v7 = vsub.f32 %v1948_v24, %v1952_v6 }
 0xc9a   : > { %v1954_v8 = vmul.f32 %v1953_v7, %v1953_v7 }
 0xc9c   : > { %v1955_v9 = vsel %vm386_vm1, %v1954_v8, 0.0 }
 0xc9d   : > { %1956 = vadd.xlane.f32.xlu1 %v1955_v9 }
 0xd26   : > { %v1957_v13 = vpop.xlane.xlu1 %1956 }
 0xd27   : > { %v1958_v14 = vmul.f32 0.03125, %v1957_v13 }
 0xd29   : > { %v1959_v15 = vadd.f32 1e-05, %v1958_v14 }
 0xd2b   : > { %2723 = vrsqrt.f32 %v1959_v15 }
 0xd38   : > { %v2724_v16 = vpop.eup %2723 }
 0xd39   : > { %v1961_v18 = vmul.f32 %v2724_v16, %v1953_v7 }
 0xd3b   : > { %v1966_v19 = vmul.f32 %v2317_v17, %v1961_v18 }
 0xd3d   : > { %v1971_v20 = vadd.f32 %v2318_v49, %v1966_v19 }
 0xd3f   : > { %v1972_v21 = vpack.c.bf16 %v1971_v20, %v1971_v20 }
 0xd41   : > { %2576 = vmatmul.mubr.msk.bf16.vlgmr.msra.gmra.mxu0 %vm386_vm1, %v1972_v21 }
 0xe01   : > { %v2033_v26 = vpop.f32.mrf.mxu0 }
 0xe02   : > { %v2034_v27 = vadd.f32 %v2319_v25, %v2033_v26 }
 0xe03   : > { %v2577_v28 = vpop.f32.mrf.mxu0 }
 0xe04   : > { %v2039_v29 = vmax.f32 %v2034_v27, 0.0 }
 0xe05   : > { %v2036_v30 = vpop.f32.mrf.mxu0 }
 0xe06   : > { %v2040_v31 = vpack.c.bf16 %v2039_v29, %v2039_v29 }
 0xe07   : > { %v2578_v32 = vpop.f32.mrf.mxu0 }
 0xe08   : > { %2588 = vmatmul.mubr.msk.bf16.vlgmr.msra.gmra.mxu1 %vm2080_vm8, %v2040_v31 }
 0xec8   : > { %v2118_v33 = vpop.f32.mrf.mxu1 }
 0xec9   : > { %v2119_v34 = vadd.f32 %v2323_v0, %v2118_v33 }
 0xeca   : > { %v2589_v35 = vpop.f32.mrf.mxu1 }
 0xecb   : > { %v2124_v36 = vadd.f32 %v2119_v34, %v1971_v20 }
 0xecc   : > { %v2121_v37 = vpop.f32.mrf.mxu1 }
 0xecd   : > { %v2125_v38 = vsel %vm386_vm1, %v2124_v36, 0.0 }
 0xece   : > { %2126 = vadd.xlane.f32.xlu0 %v2125_v38  ;;  %v2590_v39 = vpop.f32.mrf.mxu1 }
 0xf57   : > { %v2127_v40 = vpop.xlane.xlu0 %2126 }
 0xf58   : > { %v2128_v41 = vmul.f32 0.03125, %v2127_v40 }
 0xf5a   : > { %v2129_v43 = vsub.f32 %v2124_v36, %v2128_v41 }
 0xf5c   : > { %v2130_v44 = vmul.f32 %v2129_v43, %v2129_v43 }
 0xf5e   : > { %v2131_v45 = vsel %vm386_vm1, %v2130_v44, 0.0 }
 0xf5f   : > { %2132 = vadd.xlane.f32.xlu0 %v2131_v45 }
 0xfe8   : > { %v2133_v46 = vpop.xlane.xlu0 %2132 }
 0xfe9   : > { %v2134_v47 = vmul.f32 0.03125, %v2133_v46 }
 0xfeb   : > { %v2135_v48 = vadd.f32 1e-05, %v2134_v47 }
 0xfed   : > { %2725 = vrsqrt.f32 %v2135_v48 }
 0xffa   : > { %v2726_v50 = vpop.eup %2725 }
 0xffb   : > { %v2137_v52 = vmul.f32 %v2726_v50, %v2129_v43 }
 0xffd   : > { %v2142_v54 = vmul.f32 %v2329_v51, %v2137_v52 }
 0xfff   : > { %v2147_v55 = vadd.f32 %v2330_v53, %v2142_v54 }
0x1001   : > { %2148 = vst.msk [vmem:[%s352_s27] sm:$0xff] %vm386_vm1, %v2147_v55 }
0x1002   : > { %2766 = shalt.err (!%p2763_p3)
}
0x1003   : > { %s2767_s29 = scalar_lea.hbm %s2162_s0, 128  ;;  %s2771_s26 = scalar_lea.hbm %s3330_s9, 256 }
0x1004   : > { %p2768_p5 = scmp.ne.s32.totalorder %s2162_s0, %s2767_s29  ;;  %p2772_p9 = scmp.lt.s32.totalorder %s2162_s0, %s3330_s9 }
0x1005   : > { %p2773_p12 = scmp.lt.s32.totalorder %s2771_s26, %s2767_s29 }
0x1006   : > { %p2769_p6 = pnand %p2768_p5, %p2937_p4 }
0x1007   : > { %p2774_p10 = por %p2773_p12, %p2772_p9 }
0x1008   : > { %p2770_p7 = pneg %p2769_p6 }
0x100a   : > { %p2775_p11 = pnand %p2774_p10, %p2770_p7 }
0x100c   : > { %2778 = shalt.err (!%p2775_p11)
}
0x100d   : > { %2595 = dma.vmem_to_hbm [thread:$0]  (%p2937_p4), %s2165_s23, 128, %s2162_s0, %s2150_s1  }
0x100e PF: > { %p2607_p13 = scmp.ge.s32.totalorder %s2833_s14, 2  ;;  %s2176_s25 = sand.u32 1, %s2813_s30  }
0x100f   : > { %s2177_s18 = scalar_lea.sflag [#allocation10], %s2176_s25 }
0x1010   : > { %p2602_p0 = pnand %p2607_p13, %p2944_p8 }
0x1012   : > { %p2603_p1 = pneg %p2602_p0 }
0x1014   : > { %2808 = dma.done.wait (%p2603_p1), %s2177_s18, 128  }
0x1015   : > { %2810 = vsyncadd (%p2603_p1), %s2177_s18, 4294967168  ;;  %s23_s14 = sadd.s32 1, %s2833_s14   ;;  %s3339_s30 = smov %s2817_s10 }
0x1016   : > { %p20_p2 = scmp.ge.s32.totalorder %s23_s14, 4   ;;  %s3340_s10 = smov %s2821_s11 }
0x1017   : > { %s3341_s11 = smov %s2950_s22  ;;  %s3342_s12 = smov %s2829_s13 }
0x1018   : > { %s3343_s13 = smov %s3345_s17  ;;  %22 = sbr.rel (!%p20_p2) target bundleno = 8 (0x8), region = 123 }
0x101d   :  { %2182 = vsyncpa [#allocation9], 1 }
0x101e   :  { %2184 = vsyncpa [#allocation9 + $0x1], 1 }
0x101f   :  { %2185 = vsyncpa [#allocation10], 1 }
0x1020   :  { %2187 = vsyncpa [#allocation10 + $0x1], 1 }

</bundles_post_ra>
